<compile_context>
chip_gen: v6e
topology: v6e:2x2x1
jax: 0.10.0
libtpu: 0.0.40
codegen_flags: <defaults>
</compile_context>

<pallas_src>
import jax
import jax.numpy as jnp
from jax.experimental import pallas as pl
from jax.experimental.pallas import tpu as pltpu


# ----------------------------------------------------------------------------
# Generation-aware VMEM limit
# ----------------------------------------------------------------------------
def _vmem_limit_bytes():
    cap = None
    try:
        info = pltpu.get_tpu_info()
        for name in ("vmem_capacity_bytes", "vmem_size_bytes", "vmem_bytes"):
            v = getattr(info, name, None)
            if v:
                cap = int(v)
                break
    except Exception:
        cap = None
    if cap is None:
        cap = 128 * 1024 * 1024
    # leave headroom for double-buffering / compiler scratch, cap at ~110 MiB
    return min(int(cap * 85 // 100), 110 * 1024 * 1024)


# ----------------------------------------------------------------------------
# Pallas kernels
# ----------------------------------------------------------------------------
def conv3x3_prelu_stats_kernel(x_ref, w_ref, b_ref, a_ref, y_ref, s_ref, ssc_ref):
    """One batch element:
         in-VMEM reflection pad -> in-VMEM im2col (M, 9*Cin) -> single MXU
         matmul (K = 9*Cin) -> bias -> PReLU,
       emitting the bf16 activation plus per-image per-channel
       (sum, centered sum-of-squares) partials for BatchNorm (taken from the
       f32 accumulator before any downcast)."""
    _, h, w, cout = y_ref.shape              # output block (1, H, W, Cout)
    cin = x_ref.shape[-1]
    m = h * w

    x = x_ref[0]                             # (H, W, Cin) bf16, in VMEM

    # ---- reflection pad (pad=1) entirely in VMEM -----------------------
    top = x[1:2, :, :]                       # reflect: row -1 -> row 1
    bot = x[h - 2:h - 1, :, :]               # reflect: row H  -> row H-2
    xp = jnp.concatenate([top, x, bot], axis=0)            # (H+2, W, Cin)
    left = xp[:, 1:2, :]
    right = xp[:, w - 2:w - 1, :]
    xp = jnp.concatenate([left, xp, right], axis=1)         # (H+2, W+2, Cin)

    # ---- im2col slab, then one matmul with K = 9*Cin --------------------
    cols = []
    for dy in range(3):                      # unrolled at trace time
        for dx in range(3):
            cols.append(xp[dy:dy + h, dx:dx + w, :].reshape(m, cin))
    slab = jnp.concatenate(cols, axis=-1)    # (M, 9*Cin) bf16

    acc = jnp.dot(slab, w_ref[...], preferred_element_type=jnp.float32)
    acc = acc + b_ref[...]                   # (1, Cout) bias broadcast
    alpha = a_ref[...]                       # (1, Cout) PReLU slope
    y = jnp.where(acc > 0, acc, alpha * acc)  # f32

    y_ref[...] = y.reshape(1, h, w, cout).astype(y_ref.dtype)

    # Per-image partial statistics (f32, before the bf16 downcast).
    s = jnp.sum(y, axis=0, keepdims=True)    # (1, Cout)
    mu = s * (1.0 / m)
    d = y - mu
    s_ref[...] = s.reshape(1, 1, cout)
    ssc_ref[...] = jnp.sum(d * d, axis=0, keepdims=True).reshape(1, 1, cout)


def bn_apply_kernel(y_ref, scale_ref, shift_ref, o_ref):
    """Elementwise batch-norm apply: o = y * scale + shift (per channel).
       Reads bf16, computes in f32, writes the output dtype."""
    y = y_ref[...].astype(jnp.float32)
    o_ref[...] = (y * scale_ref[...] + shift_ref[...]).astype(o_ref.dtype)


# ----------------------------------------------------------------------------
# Pallas call wrappers
# ----------------------------------------------------------------------------
def _conv3x3_prelu_stats(x, w2d, b, alpha):
    """x: (N, H, W, Cin) bf16 (unpadded).  w2d: (9*Cin, Cout) f32.
       b, alpha: (Cout,) f32.  Returns (y bf16, sum, centered-SS)."""
    n, h, w, cin = x.shape
    cout = w2d.shape[-1]

    return pl.pallas_call(
        conv3x3_prelu_stats_kernel,
        out_shape=(
            jax.ShapeDtypeStruct((n, h, w, cout), jnp.bfloat16),
            jax.ShapeDtypeStruct((n, 1, cout), jnp.float32),
            jax.ShapeDtypeStruct((n, 1, cout), jnp.float32),
        ),
        grid_spec=pltpu.PrefetchScalarGridSpec(
            num_scalar_prefetch=0,
            grid=(n,),
            in_specs=[
                pl.BlockSpec((1, h, w, cin), lambda i: (i, 0, 0, 0)),
                pl.BlockSpec((9 * cin, cout), lambda i: (0, 0)),
                pl.BlockSpec((1, cout), lambda i: (0, 0)),
                pl.BlockSpec((1, cout), lambda i: (0, 0)),
            ],
            out_specs=(
                pl.BlockSpec((1, h, w, cout), lambda i: (i, 0, 0, 0)),
                pl.BlockSpec((1, 1, cout), lambda i: (i, 0, 0)),
                pl.BlockSpec((1, 1, cout), lambda i: (i, 0, 0)),
            ),
        ),
        compiler_params=pltpu.CompilerParams(
            dimension_semantics=("parallel",),
            vmem_limit_bytes=_vmem_limit_bytes()),
    )(x,
      w2d.astype(jnp.bfloat16),
      b.reshape(1, -1).astype(jnp.float32),
      alpha.reshape(1, -1).astype(jnp.float32))


def _bn_apply(y2d, scale, shift, out_dtype, tr=2048):
    """y2d: (M, Cout) bf16; scale/shift: (1, Cout) f32."""
    m, c = y2d.shape
    tr = min(tr, m)
    grid = (pl.cdiv(m, tr),)
    return pl.pallas_call(
        bn_apply_kernel,
        out_shape=jax.ShapeDtypeStruct((m, c), out_dtype),
        grid_spec=pltpu.PrefetchScalarGridSpec(
            num_scalar_prefetch=0,
            grid=grid,
            in_specs=[
                pl.BlockSpec((tr, c), lambda i: (i, 0)),
                pl.BlockSpec((1, c), lambda i: (0, 0)),
                pl.BlockSpec((1, c), lambda i: (0, 0)),
            ],
            out_specs=pl.BlockSpec((tr, c), lambda i: (i, 0)),
        ),
        compiler_params=pltpu.CompilerParams(
            dimension_semantics=("parallel",),
            vmem_limit_bytes=_vmem_limit_bytes()),
    )(y2d, scale, shift)


def _combine_stats(s, ssc, count):
    """Combine per-image (sum, centered-SS) partials into biased mean/var."""
    s = s[:, 0, :]
    ssc = ssc[:, 0, :]
    n = s.shape[0]
    total = n * count
    mean = jnp.sum(s, axis=0) / total
    mu = s / count
    var = (jnp.sum(ssc, axis=0) + count * jnp.sum((mu - mean) ** 2, axis=0)) / total
    return mean, var


# ----------------------------------------------------------------------------
# EncodingBlock forward (batch_norm=True, dropout=False, defaults)
# ----------------------------------------------------------------------------
def _encoding_block_forward_impl(x_nchw, params, eps=1e-5):
    n, cin, h, w = x_nchw.shape
    cout = params["b1"].shape[0]
    m_img = h * w

    # NHWC bf16 activations (transpose + downcast fuse into one XLA pass).
    x = jnp.transpose(x_nchw, (0, 2, 3, 1)).astype(jnp.bfloat16)

    # ---------------- layer 1: reflect-pad -> conv1 -> PReLU1 (+ stats) ----
    w1 = params["w1"].reshape(9 * cin, cout)          # (kh*kw*Cin, Cout)
    a1 = jnp.broadcast_to(params["alpha1"].reshape(-1), (cout,))

    y1, s1, ssc1 = _conv3x3_prelu_stats(x, w1, params["b1"], a1)
    mean1, var1 = _combine_stats(s1, ssc1, m_img)
    scale1 = params["gamma1"] * jax.lax.rsqrt(var1 + eps)
    shift1 = params["beta1"] - mean1 * scale1

    # ------------- fold BN1 exactly into conv2's weights / bias ------------
    # bn1(a) = a*scale1 + shift1 commutes with reflection padding, so:
    #   conv2(pad(bn1(a))) = conv2'(pad(a)) with
    #   w2' = w2 * scale1[cin],  b2' = b2 + sum_{kh,kw,cin} w2 * shift1[cin]
    w2f = params["w2"] * scale1[None, None, :, None]
    b2f = params["b2"] + jnp.einsum("hwio,i->o", params["w2"], shift1)
    w2 = w2f.reshape(9 * cout, cout)
    a2 = jnp.broadcast_to(params["alpha2"].reshape(-1), (cout,))

    # ---------------- layer 2: reflect-pad -> conv2' -> PReLU2 (+ stats) ---
    y2, s2, ssc2 = _conv3x3_prelu_stats(y1, w2, b2f, a2)
    mean2, var2 = _combine_stats(s2, ssc2, m_img)
    scale2 = params["gamma2"] * jax.lax.rsqrt(var2 + eps)
    shift2 = params["beta2"] - mean2 * scale2

    # ---------------- BN2 apply (memory-bound, bf16 in / f32 out) ----------
    out = _bn_apply(y2.reshape(n * h * w, cout),
                    scale2.reshape(1, cout).astype(jnp.float32),
                    shift2.reshape(1, cout).astype(jnp.float32),
                    out_dtype=x_nchw.dtype)
    out = out.reshape(n, h, w, cout)
    # TODO(synk): drop this transpose if the downstream consumer accepts NHWC.
    return jnp.transpose(out, (0, 3, 1, 2))                          # NCHW


@jax.jit
def encoding_block_forward(x_nchw, params):
    return _encoding_block_forward_impl(x_nchw, params)


# ----------------------------------------------------------------------------
# Parameter initialization (deterministic, PyTorch-like shapes / scales)
# ----------------------------------------------------------------------------
def init_encoding_block_params(key, in_size, out_size, kernel_size=3):
    params = {}
    keys = jax.random.split(key, 4)

    def conv_init(k, cin, cout):
        kw, kb = jax.random.split(k)
        fan_in = cin * kernel_size * kernel_size
        bound = 1.0 / jnp.sqrt(fan_in)
        # PyTorch layout [Cout, Cin, KH, KW] -> our [KH, KW, Cin, Cout]
        wgt = jax.random.uniform(kw, (cout, cin, kernel_size, kernel_size),
                                 jnp.float32, -bound, bound)
        wgt = jnp.transpose(wgt, (2, 3, 1, 0))
        b = jax.random.uniform(kb, (cout,), jnp.float32, -bound, bound)
        return wgt, b

    params["w1"], params["b1"] = conv_init(keys[0], in_size, out_size)
    params["w2"], params["b2"] = conv_init(keys[1], out_size, out_size)
    # PReLU default: single slope 0.25
    params["alpha1"] = jnp.array([0.25], jnp.float32)
    params["alpha2"] = jnp.array([0.25], jnp.float32)
    # BatchNorm2d affine defaults: weight=1, bias=0
    params["gamma1"] = jnp.ones((out_size,), jnp.float32)
    params["beta1"] = jnp.zeros((out_size,), jnp.float32)
    params["gamma2"] = jnp.ones((out_size,), jnp.float32)
    params["beta2"] = jnp.zeros((out_size,), jnp.float32)
    return params


if __name__ == "__main__":
    key = jax.random.PRNGKey(0)
    k_x, k_p = jax.random.split(key)

    N, Cin, Cout, HW = 2, 4, 8, 16
    x = jax.random.normal(k_x, (N, Cin, HW, HW), jnp.float32)
    params = init_encoding_block_params(k_p, Cin, Cout)

    out = encoding_block_forward(x, params)
    out = jax.block_until_ready(out)
    assert out.shape == (N, Cout, HW, HW), out.shape
    assert bool(jnp.all(jnp.isfinite(out))), "non-finite output"
    print("KERNEL_OK")
</pallas_src>

<mosaic_0001>
module attributes {stable_mosaic.version = 11 : i64} {
  func.func @conv3x3_prelu_stats_kernel(%arg0: i32, %arg1: memref<1x16x16x4xbf16, #tpu.memory_space<vmem>>, %arg2: memref<36x8xbf16, #tpu.memory_space<vmem>>, %arg3: memref<1x8xf32, #tpu.memory_space<vmem>>, %arg4: memref<1x8xf32, #tpu.memory_space<vmem>>, %arg5: memref<1x16x16x8xbf16, #tpu.memory_space<vmem>>, %arg6: memref<1x1x8xf32, #tpu.memory_space<vmem>>, %arg7: memref<1x1x8xf32, #tpu.memory_space<vmem>>) attributes {dimension_semantics = [#tpu.dimension_semantics<parallel>], iteration_bounds = array<i64: 2>, scalar_prefetch = 0 : i64, scratch_operands = 0 : i64, tpu.core_type = #tpu.core_type<tc>, window_params = [{transform_indices = @transform_0, window_bounds = array<i64: 1, 16, 16, 4>}, {pipeline_mode = #tpu.pipeline_mode<synchronous>, transform_indices = @transform_1, window_bounds = array<i64: 36, 8>}, {pipeline_mode = #tpu.pipeline_mode<synchronous>, transform_indices = @transform_2, window_bounds = array<i64: 1, 8>}, {pipeline_mode = #tpu.pipeline_mode<synchronous>, transform_indices = @transform_3, window_bounds = array<i64: 1, 8>}, {transform_indices = @transform_4, window_bounds = array<i64: 1, 16, 16, 8>}, {transform_indices = @transform_5, window_bounds = array<i64: 1, 1, 8>}, {transform_indices = @transform_6, window_bounds = array<i64: 1, 1, 8>}]} {
    %c0 = arith.constant 0 : index
    %c0_0 = arith.constant 0 : index
    %c0_1 = arith.constant 0 : index
    %c0_2 = arith.constant 0 : index
    %0 = vector.load %arg1[%c0, %c0_0, %c0_1, %c0_2] : memref<1x16x16x4xbf16, #tpu.memory_space<vmem>>, vector<1x16x16x4xbf16>
    %1 = vector.shape_cast %0 : vector<1x16x16x4xbf16> to vector<16x16x4xbf16>
    %2 = vector.extract_strided_slice %1 {offsets = [1, 0, 0], sizes = [1, 16, 4], strides = [1, 1, 1]} : vector<16x16x4xbf16> to vector<1x16x4xbf16>
    %3 = vector.extract_strided_slice %1 {offsets = [14, 0, 0], sizes = [1, 16, 4], strides = [1, 1, 1]} : vector<16x16x4xbf16> to vector<1x16x4xbf16>
    %4 = tpu.concatenate %2, %1, %3 in 0 : vector<1x16x4xbf16>, vector<16x16x4xbf16>, vector<1x16x4xbf16> -> vector<18x16x4xbf16>
    %5 = vector.extract_strided_slice %4 {offsets = [0, 1, 0], sizes = [18, 1, 4], strides = [1, 1, 1]} : vector<18x16x4xbf16> to vector<18x1x4xbf16>
    %6 = vector.extract_strided_slice %4 {offsets = [0, 14, 0], sizes = [18, 1, 4], strides = [1, 1, 1]} : vector<18x16x4xbf16> to vector<18x1x4xbf16>
    %7 = tpu.concatenate %5, %4, %6 in 1 : vector<18x1x4xbf16>, vector<18x16x4xbf16>, vector<18x1x4xbf16> -> vector<18x18x4xbf16>
    %8 = vector.extract_strided_slice %7 {offsets = [0, 0, 0], sizes = [16, 16, 4], strides = [1, 1, 1]} : vector<18x18x4xbf16> to vector<16x16x4xbf16>
    %9 = vector.shape_cast %8 : vector<16x16x4xbf16> to vector<256x4xbf16>
    %10 = vector.extract_strided_slice %7 {offsets = [0, 1, 0], sizes = [16, 16, 4], strides = [1, 1, 1]} : vector<18x18x4xbf16> to vector<16x16x4xbf16>
    %11 = vector.shape_cast %10 : vector<16x16x4xbf16> to vector<256x4xbf16>
    %12 = vector.extract_strided_slice %7 {offsets = [0, 2, 0], sizes = [16, 16, 4], strides = [1, 1, 1]} : vector<18x18x4xbf16> to vector<16x16x4xbf16>
    %13 = vector.shape_cast %12 : vector<16x16x4xbf16> to vector<256x4xbf16>
    %14 = vector.extract_strided_slice %7 {offsets = [1, 0, 0], sizes = [16, 16, 4], strides = [1, 1, 1]} : vector<18x18x4xbf16> to vector<16x16x4xbf16>
    %15 = vector.shape_cast %14 : vector<16x16x4xbf16> to vector<256x4xbf16>
    %16 = vector.extract_strided_slice %7 {offsets = [1, 1, 0], sizes = [16, 16, 4], strides = [1, 1, 1]} : vector<18x18x4xbf16> to vector<16x16x4xbf16>
    %17 = vector.shape_cast %16 : vector<16x16x4xbf16> to vector<256x4xbf16>
    %18 = vector.extract_strided_slice %7 {offsets = [1, 2, 0], sizes = [16, 16, 4], strides = [1, 1, 1]} : vector<18x18x4xbf16> to vector<16x16x4xbf16>
    %19 = vector.shape_cast %18 : vector<16x16x4xbf16> to vector<256x4xbf16>
    %20 = vector.extract_strided_slice %7 {offsets = [2, 0, 0], sizes = [16, 16, 4], strides = [1, 1, 1]} : vector<18x18x4xbf16> to vector<16x16x4xbf16>
    %21 = vector.shape_cast %20 : vector<16x16x4xbf16> to vector<256x4xbf16>
    %22 = vector.extract_strided_slice %7 {offsets = [2, 1, 0], sizes = [16, 16, 4], strides = [1, 1, 1]} : vector<18x18x4xbf16> to vector<16x16x4xbf16>
    %23 = vector.shape_cast %22 : vector<16x16x4xbf16> to vector<256x4xbf16>
    %24 = vector.extract_strided_slice %7 {offsets = [2, 2, 0], sizes = [16, 16, 4], strides = [1, 1, 1]} : vector<18x18x4xbf16> to vector<16x16x4xbf16>
    %25 = vector.shape_cast %24 : vector<16x16x4xbf16> to vector<256x4xbf16>
    %26 = tpu.concatenate %9, %11, %13, %15, %17, %19, %21, %23, %25 in 1 : vector<256x4xbf16>, vector<256x4xbf16>, vector<256x4xbf16>, vector<256x4xbf16>, vector<256x4xbf16>, vector<256x4xbf16>, vector<256x4xbf16>, vector<256x4xbf16>, vector<256x4xbf16> -> vector<256x36xbf16>
    %c0_3 = arith.constant 0 : index
    %c0_4 = arith.constant 0 : index
    %27 = vector.load %arg2[%c0_3, %c0_4] : memref<36x8xbf16, #tpu.memory_space<vmem>>, vector<36x8xbf16>
    %cst = arith.constant dense<0.000000e+00> : vector<256x8xf32>
    %28 = tpu.matmul %26, %27, %cst {dimension_numbers = #tpu.dot_dimension_numbers<[1], [0], [0], [1], [0, 0, 1, 1], [], []>} : vector<256x36xbf16>, vector<36x8xbf16>, vector<256x8xf32> -> vector<256x8xf32>
    %c0_5 = arith.constant 0 : index
    %c0_6 = arith.constant 0 : index
    %29 = vector.load %arg3[%c0_5, %c0_6] : memref<1x8xf32, #tpu.memory_space<vmem>>, vector<1x8xf32>
    %30 = vector.broadcast %29 : vector<1x8xf32> to vector<256x8xf32>
    %31 = arith.addf %28, %30 : vector<256x8xf32>
    %c0_7 = arith.constant 0 : index
    %c0_8 = arith.constant 0 : index
    %32 = vector.load %arg4[%c0_7, %c0_8] : memref<1x8xf32, #tpu.memory_space<vmem>>, vector<1x8xf32>
    %cst_9 = arith.constant 0.000000e+00 : f32
    %33 = vector.broadcast %cst_9 : f32 to vector<256x8xf32>
    %34 = arith.cmpf ogt, %31, %33 : vector<256x8xf32>
    %35 = vector.broadcast %32 : vector<1x8xf32> to vector<256x8xf32>
    %36 = arith.mulf %35, %31 : vector<256x8xf32>
    %37 = arith.select %34, %31, %36 : vector<256x8xi1>, vector<256x8xf32>
    %38 = vector.shape_cast %37 : vector<256x8xf32> to vector<1x16x16x8xf32>
    %39 = arith.truncf %38 : vector<1x16x16x8xf32> to vector<1x16x16x8xbf16>
    %c0_10 = arith.constant 0 : index
    %c0_11 = arith.constant 0 : index
    %c0_12 = arith.constant 0 : index
    %c0_13 = arith.constant 0 : index
    %40 = vector.load %arg5[%c0_10, %c0_11, %c0_12, %c0_13] : memref<1x16x16x8xbf16, #tpu.memory_space<vmem>>, vector<1x16x16x8xbf16>
    tpu.vector_store %arg5[%c0_10, %c0_11, %c0_12, %c0_13], %39 {strides = array<i32>} : memref<1x16x16x8xbf16, #tpu.memory_space<vmem>>, vector<1x16x16x8xbf16>,
    %cst_14 = arith.constant dense<0.000000e+00> : vector<8xf32>
    %41 = vector.multi_reduction <add>, %37, %cst_14 [0] : vector<256x8xf32> to vector<8xf32>
    %42 = vector.shape_cast %41 : vector<8xf32> to vector<1x8xf32>
    %cst_15 = arith.constant 3.906250e-03 : f32
    %43 = vector.broadcast %cst_15 : f32 to vector<1x8xf32>
    %44 = arith.mulf %42, %43 : vector<1x8xf32>
    %45 = vector.broadcast %44 : vector<1x8xf32> to vector<256x8xf32>
    %46 = arith.subf %37, %45 : vector<256x8xf32>
    %47 = vector.shape_cast %42 : vector<1x8xf32> to vector<1x1x8xf32>
    %c0_16 = arith.constant 0 : index
    %c0_17 = arith.constant 0 : index
    %c0_18 = arith.constant 0 : index
    %48 = vector.load %arg6[%c0_16, %c0_17, %c0_18] : memref<1x1x8xf32, #tpu.memory_space<vmem>>, vector<1x1x8xf32>
    tpu.vector_store %arg6[%c0_16, %c0_17, %c0_18], %47 {strides = array<i32>} : memref<1x1x8xf32, #tpu.memory_space<vmem>>, vector<1x1x8xf32>,
    %49 = arith.mulf %46, %46 : vector<256x8xf32>
    %cst_19 = arith.constant dense<0.000000e+00> : vector<8xf32>
    %50 = vector.multi_reduction <add>, %49, %cst_19 [0] : vector<256x8xf32> to vector<8xf32>
    %51 = vector.shape_cast %50 : vector<8xf32> to vector<1x8xf32>
    %52 = vector.shape_cast %51 : vector<1x8xf32> to vector<1x1x8xf32>
    %c0_20 = arith.constant 0 : index
    %c0_21 = arith.constant 0 : index
    %c0_22 = arith.constant 0 : index
    %53 = vector.load %arg7[%c0_20, %c0_21, %c0_22] : memref<1x1x8xf32, #tpu.memory_space<vmem>>, vector<1x1x8xf32>
    tpu.vector_store %arg7[%c0_20, %c0_21, %c0_22], %52 {strides = array<i32>} : memref<1x1x8xf32, #tpu.memory_space<vmem>>, vector<1x1x8xf32>,
    return
  }
  func.func @transform_0(%arg0: i32) -> (i32, i32, i32, i32) {
    %c0_i32 = arith.constant 0 : i32
    %c0_i32_0 = arith.constant 0 : i32
    %c0_i32_1 = arith.constant 0 : i32
    %c0_i32_2 = arith.constant 0 : i32
    return %arg0, %c0_i32, %c0_i32_0, %c0_i32_1 : i32, i32, i32, i32
  }
  func.func @transform_1(%arg0: i32) -> (i32, i32) {
    %c0_i32 = arith.constant 0 : i32
    %c0_i32_0 = arith.constant 0 : i32
    %c0_i32_1 = arith.constant 0 : i32
    return %c0_i32, %c0_i32_0 : i32, i32
  }
  func.func @transform_2(%arg0: i32) -> (i32, i32) {
    %c0_i32 = arith.constant 0 : i32
    %c0_i32_0 = arith.constant 0 : i32
    %c0_i32_1 = arith.constant 0 : i32
    return %c0_i32, %c0_i32_0 : i32, i32
  }
  func.func @transform_3(%arg0: i32) -> (i32, i32) {
    %c0_i32 = arith.constant 0 : i32
    %c0_i32_0 = arith.constant 0 : i32
    %c0_i32_1 = arith.constant 0 : i32
    return %c0_i32, %c0_i32_0 : i32, i32
  }
  func.func @transform_4(%arg0: i32) -> (i32, i32, i32, i32) {
    %c0_i32 = arith.constant 0 : i32
    %c0_i32_0 = arith.constant 0 : i32
    %c0_i32_1 = arith.constant 0 : i32
    %c0_i32_2 = arith.constant 0 : i32
    return %arg0, %c0_i32, %c0_i32_0, %c0_i32_1 : i32, i32, i32, i32
  }
  func.func @transform_5(%arg0: i32) -> (i32, i32, i32) {
    %c0_i32 = arith.constant 0 : i32
    %c0_i32_0 = arith.constant 0 : i32
    %c0_i32_1 = arith.constant 0 : i32
    return %arg0, %c0_i32, %c0_i32_0 : i32, i32, i32
  }
  func.func @transform_6(%arg0: i32) -> (i32, i32, i32) {
    %c0_i32 = arith.constant 0 : i32
    %c0_i32_0 = arith.constant 0 : i32
    %c0_i32_1 = arith.constant 0 : i32
    return %arg0, %c0_i32, %c0_i32_0 : i32, i32, i32
  }
}

module attributes {stable_mosaic.version = 11 : i64} {
  func.func @bn_apply_kernel(%arg0: i32, %arg1: memref<512x8xbf16, #tpu.memory_space<vmem>>, %arg2: memref<1x8xf32, #tpu.memory_space<vmem>>, %arg3: memref<1x8xf32, #tpu.memory_space<vmem>>, %arg4: memref<512x8xf32, #tpu.memory_space<vmem>>) attributes {dimension_semantics = [#tpu.dimension_semantics<parallel>], iteration_bounds = array<i64: 1>, scalar_prefetch = 0 : i64, scratch_operands = 0 : i64, tpu.core_type = #tpu.core_type<tc>, window_params = [{transform_indices = @transform_0, window_bounds = array<i64: 512, 8>}, {pipeline_mode = #tpu.pipeline_mode<synchronous>, transform_indices = @transform_1, window_bounds = array<i64: 1, 8>}, {pipeline_mode = #tpu.pipeline_mode<synchronous>, transform_indices = @transform_2, window_bounds = array<i64: 1, 8>}, {transform_indices = @transform_3, window_bounds = array<i64: 512, 8>}]} {
    %c0 = arith.constant 0 : index
    %c0_0 = arith.constant 0 : index
    %0 = vector.load %arg1[%c0, %c0_0] : memref<512x8xbf16, #tpu.memory_space<vmem>>, vector<512x8xbf16>
    %1 = arith.extf %0 : vector<512x8xbf16> to vector<512x8xf32>
    %c0_1 = arith.constant 0 : index
    %c0_2 = arith.constant 0 : index
    %2 = vector.load %arg2[%c0_1, %c0_2] : memref<1x8xf32, #tpu.memory_space<vmem>>, vector<1x8xf32>
    %3 = vector.broadcast %2 : vector<1x8xf32> to vector<512x8xf32>
    %4 = arith.mulf %1, %3 : vector<512x8xf32>
    %c0_3 = arith.constant 0 : index
    %c0_4 = arith.constant 0 : index
    %5 = vector.load %arg3[%c0_3, %c0_4] : memref<1x8xf32, #tpu.memory_space<vmem>>, vector<1x8xf32>
    %6 = vector.broadcast %5 : vector<1x8xf32> to vector<512x8xf32>
    %7 = arith.addf %4, %6 : vector<512x8xf32>
    %c0_5 = arith.constant 0 : index
    %c0_6 = arith.constant 0 : index
    %8 = vector.load %arg4[%c0_5, %c0_6] : memref<512x8xf32, #tpu.memory_space<vmem>>, vector<512x8xf32>
    tpu.vector_store %arg4[%c0_5, %c0_6], %7 {strides = array<i32>} : memref<512x8xf32, #tpu.memory_space<vmem>>, vector<512x8xf32>,
    return
  }
  func.func @transform_0(%arg0: i32) -> (i32, i32) {
    %c0_i32 = arith.constant 0 : i32
    %c0_i32_0 = arith.constant 0 : i32
    return %arg0, %c0_i32 : i32, i32
  }
  func.func @transform_1(%arg0: i32) -> (i32, i32) {
    %c0_i32 = arith.constant 0 : i32
    %c0_i32_0 = arith.constant 0 : i32
    %c0_i32_1 = arith.constant 0 : i32
    return %c0_i32, %c0_i32_0 : i32, i32
  }
  func.func @transform_2(%arg0: i32) -> (i32, i32) {
    %c0_i32 = arith.constant 0 : i32
    %c0_i32_0 = arith.constant 0 : i32
    %c0_i32_1 = arith.constant 0 : i32
    return %c0_i32, %c0_i32_0 : i32, i32
  }
  func.func @transform_3(%arg0: i32) -> (i32, i32) {
    %c0_i32 = arith.constant 0 : i32
    %c0_i32_0 = arith.constant 0 : i32
    return %arg0, %c0_i32 : i32, i32
  }
}

module attributes {stable_mosaic.version = 11 : i64} {
  func.func @conv3x3_prelu_stats_kernel(%arg0: i32, %arg1: memref<1x16x16x8xbf16, #tpu.memory_space<vmem>>, %arg2: memref<72x8xbf16, #tpu.memory_space<vmem>>, %arg3: memref<1x8xf32, #tpu.memory_space<vmem>>, %arg4: memref<1x8xf32, #tpu.memory_space<vmem>>, %arg5: memref<1x16x16x8xbf16, #tpu.memory_space<vmem>>, %arg6: memref<1x1x8xf32, #tpu.memory_space<vmem>>, %arg7: memref<1x1x8xf32, #tpu.memory_space<vmem>>) attributes {dimension_semantics = [#tpu.dimension_semantics<parallel>], iteration_bounds = array<i64: 2>, scalar_prefetch = 0 : i64, scratch_operands = 0 : i64, tpu.core_type = #tpu.core_type<tc>, window_params = [{transform_indices = @transform_0, window_bounds = array<i64: 1, 16, 16, 8>}, {pipeline_mode = #tpu.pipeline_mode<synchronous>, transform_indices = @transform_1, window_bounds = array<i64: 72, 8>}, {pipeline_mode = #tpu.pipeline_mode<synchronous>, transform_indices = @transform_2, window_bounds = array<i64: 1, 8>}, {pipeline_mode = #tpu.pipeline_mode<synchronous>, transform_indices = @transform_3, window_bounds = array<i64: 1, 8>}, {transform_indices = @transform_4, window_bounds = array<i64: 1, 16, 16, 8>}, {transform_indices = @transform_5, window_bounds = array<i64: 1, 1, 8>}, {transform_indices = @transform_6, window_bounds = array<i64: 1, 1, 8>}]} {
    %c0 = arith.constant 0 : index
    %c0_0 = arith.constant 0 : index
    %c0_1 = arith.constant 0 : index
    %c0_2 = arith.constant 0 : index
    %0 = vector.load %arg1[%c0, %c0_0, %c0_1, %c0_2] : memref<1x16x16x8xbf16, #tpu.memory_space<vmem>>, vector<1x16x16x8xbf16>
    %1 = vector.shape_cast %0 : vector<1x16x16x8xbf16> to vector<16x16x8xbf16>
    %2 = vector.extract_strided_slice %1 {offsets = [1, 0, 0], sizes = [1, 16, 8], strides = [1, 1, 1]} : vector<16x16x8xbf16> to vector<1x16x8xbf16>
    %3 = vector.extract_strided_slice %1 {offsets = [14, 0, 0], sizes = [1, 16, 8], strides = [1, 1, 1]} : vector<16x16x8xbf16> to vector<1x16x8xbf16>
    %4 = tpu.concatenate %2, %1, %3 in 0 : vector<1x16x8xbf16>, vector<16x16x8xbf16>, vector<1x16x8xbf16> -> vector<18x16x8xbf16>
    %5 = vector.extract_strided_slice %4 {offsets = [0, 1, 0], sizes = [18, 1, 8], strides = [1, 1, 1]} : vector<18x16x8xbf16> to vector<18x1x8xbf16>
    %6 = vector.extract_strided_slice %4 {offsets = [0, 14, 0], sizes = [18, 1, 8], strides = [1, 1, 1]} : vector<18x16x8xbf16> to vector<18x1x8xbf16>
    %7 = tpu.concatenate %5, %4, %6 in 1 : vector<18x1x8xbf16>, vector<18x16x8xbf16>, vector<18x1x8xbf16> -> vector<18x18x8xbf16>
    %8 = vector.extract_strided_slice %7 {offsets = [0, 0, 0], sizes = [16, 16, 8], strides = [1, 1, 1]} : vector<18x18x8xbf16> to vector<16x16x8xbf16>
    %9 = vector.shape_cast %8 : vector<16x16x8xbf16> to vector<256x8xbf16>
    %10 = vector.extract_strided_slice %7 {offsets = [0, 1, 0], sizes = [16, 16, 8], strides = [1, 1, 1]} : vector<18x18x8xbf16> to vector<16x16x8xbf16>
    %11 = vector.shape_cast %10 : vector<16x16x8xbf16> to vector<256x8xbf16>
    %12 = vector.extract_strided_slice %7 {offsets = [0, 2, 0], sizes = [16, 16, 8], strides = [1, 1, 1]} : vector<18x18x8xbf16> to vector<16x16x8xbf16>
    %13 = vector.shape_cast %12 : vector<16x16x8xbf16> to vector<256x8xbf16>
    %14 = vector.extract_strided_slice %7 {offsets = [1, 0, 0], sizes = [16, 16, 8], strides = [1, 1, 1]} : vector<18x18x8xbf16> to vector<16x16x8xbf16>
    %15 = vector.shape_cast %14 : vector<16x16x8xbf16> to vector<256x8xbf16>
    %16 = vector.extract_strided_slice %7 {offsets = [1, 1, 0], sizes = [16, 16, 8], strides = [1, 1, 1]} : vector<18x18x8xbf16> to vector<16x16x8xbf16>
    %17 = vector.shape_cast %16 : vector<16x16x8xbf16> to vector<256x8xbf16>
    %18 = vector.extract_strided_slice %7 {offsets = [1, 2, 0], sizes = [16, 16, 8], strides = [1, 1, 1]} : vector<18x18x8xbf16> to vector<16x16x8xbf16>
    %19 = vector.shape_cast %18 : vector<16x16x8xbf16> to vector<256x8xbf16>
    %20 = vector.extract_strided_slice %7 {offsets = [2, 0, 0], sizes = [16, 16, 8], strides = [1, 1, 1]} : vector<18x18x8xbf16> to vector<16x16x8xbf16>
    %21 = vector.shape_cast %20 : vector<16x16x8xbf16> to vector<256x8xbf16>
    %22 = vector.extract_strided_slice %7 {offsets = [2, 1, 0], sizes = [16, 16, 8], strides = [1, 1, 1]} : vector<18x18x8xbf16> to vector<16x16x8xbf16>
    %23 = vector.shape_cast %22 : vector<16x16x8xbf16> to vector<256x8xbf16>
    %24 = vector.extract_strided_slice %7 {offsets = [2, 2, 0], sizes = [16, 16, 8], strides = [1, 1, 1]} : vector<18x18x8xbf16> to vector<16x16x8xbf16>
    %25 = vector.shape_cast %24 : vector<16x16x8xbf16> to vector<256x8xbf16>
    %26 = tpu.concatenate %9, %11, %13, %15, %17, %19, %21, %23, %25 in 1 : vector<256x8xbf16>, vector<256x8xbf16>, vector<256x8xbf16>, vector<256x8xbf16>, vector<256x8xbf16>, vector<256x8xbf16>, vector<256x8xbf16>, vector<256x8xbf16>, vector<256x8xbf16> -> vector<256x72xbf16>
    %c0_3 = arith.constant 0 : index
    %c0_4 = arith.constant 0 : index
    %27 = vector.load %arg2[%c0_3, %c0_4] : memref<72x8xbf16, #tpu.memory_space<vmem>>, vector<72x8xbf16>
    %cst = arith.constant dense<0.000000e+00> : vector<256x8xf32>
    %28 = tpu.matmul %26, %27, %cst {dimension_numbers = #tpu.dot_dimension_numbers<[1], [0], [0], [1], [0, 0, 1, 1], [], []>} : vector<256x72xbf16>, vector<72x8xbf16>, vector<256x8xf32> -> vector<256x8xf32>
    %c0_5 = arith.constant 0 : index
    %c0_6 = arith.constant 0 : index
    %29 = vector.load %arg3[%c0_5, %c0_6] : memref<1x8xf32, #tpu.memory_space<vmem>>, vector<1x8xf32>
    %30 = vector.broadcast %29 : vector<1x8xf32> to vector<256x8xf32>
    %31 = arith.addf %28, %30 : vector<256x8xf32>
    %c0_7 = arith.constant 0 : index
    %c0_8 = arith.constant 0 : index
    %32 = vector.load %arg4[%c0_7, %c0_8] : memref<1x8xf32, #tpu.memory_space<vmem>>, vector<1x8xf32>
    %cst_9 = arith.constant 0.000000e+00 : f32
    %33 = vector.broadcast %cst_9 : f32 to vector<256x8xf32>
    %34 = arith.cmpf ogt, %31, %33 : vector<256x8xf32>
    %35 = vector.broadcast %32 : vector<1x8xf32> to vector<256x8xf32>
    %36 = arith.mulf %35, %31 : vector<256x8xf32>
    %37 = arith.select %34, %31, %36 : vector<256x8xi1>, vector<256x8xf32>
    %38 = vector.shape_cast %37 : vector<256x8xf32> to vector<1x16x16x8xf32>
    %39 = arith.truncf %38 : vector<1x16x16x8xf32> to vector<1x16x16x8xbf16>
    %c0_10 = arith.constant 0 : index
    %c0_11 = arith.constant 0 : index
    %c0_12 = arith.constant 0 : index
    %c0_13 = arith.constant 0 : index
    %40 = vector.load %arg5[%c0_10, %c0_11, %c0_12, %c0_13] : memref<1x16x16x8xbf16, #tpu.memory_space<vmem>>, vector<1x16x16x8xbf16>
    tpu.vector_store %arg5[%c0_10, %c0_11, %c0_12, %c0_13], %39 {strides = array<i32>} : memref<1x16x16x8xbf16, #tpu.memory_space<vmem>>, vector<1x16x16x8xbf16>,
    %cst_14 = arith.constant dense<0.000000e+00> : vector<8xf32>
    %41 = vector.multi_reduction <add>, %37, %cst_14 [0] : vector<256x8xf32> to vector<8xf32>
    %42 = vector.shape_cast %41 : vector<8xf32> to vector<1x8xf32>
    %cst_15 = arith.constant 3.906250e-03 : f32
    %43 = vector.broadcast %cst_15 : f32 to vector<1x8xf32>
    %44 = arith.mulf %42, %43 : vector<1x8xf32>
    %45 = vector.broadcast %44 : vector<1x8xf32> to vector<256x8xf32>
    %46 = arith.subf %37, %45 : vector<256x8xf32>
    %47 = vector.shape_cast %42 : vector<1x8xf32> to vector<1x1x8xf32>
    %c0_16 = arith.constant 0 : index
    %c0_17 = arith.constant 0 : index
    %c0_18 = arith.constant 0 : index
    %48 = vector.load %arg6[%c0_16, %c0_17, %c0_18] : memref<1x1x8xf32, #tpu.memory_space<vmem>>, vector<1x1x8xf32>
    tpu.vector_store %arg6[%c0_16, %c0_17, %c0_18], %47 {strides = array<i32>} : memref<1x1x8xf32, #tpu.memory_space<vmem>>, vector<1x1x8xf32>,
    %49 = arith.mulf %46, %46 : vector<256x8xf32>
    %cst_19 = arith.constant dense<0.000000e+00> : vector<8xf32>
    %50 = vector.multi_reduction <add>, %49, %cst_19 [0] : vector<256x8xf32> to vector<8xf32>
    %51 = vector.shape_cast %50 : vector<8xf32> to vector<1x8xf32>
    %52 = vector.shape_cast %51 : vector<1x8xf32> to vector<1x1x8xf32>
    %c0_20 = arith.constant 0 : index
    %c0_21 = arith.constant 0 : index
    %c0_22 = arith.constant 0 : index
    %53 = vector.load %arg7[%c0_20, %c0_21, %c0_22] : memref<1x1x8xf32, #tpu.memory_space<vmem>>, vector<1x1x8xf32>
    tpu.vector_store %arg7[%c0_20, %c0_21, %c0_22], %52 {strides = array<i32>} : memref<1x1x8xf32, #tpu.memory_space<vmem>>, vector<1x1x8xf32>,
    return
  }
  func.func @transform_0(%arg0: i32) -> (i32, i32, i32, i32) {
    %c0_i32 = arith.constant 0 : i32
    %c0_i32_0 = arith.constant 0 : i32
    %c0_i32_1 = arith.constant 0 : i32
    %c0_i32_2 = arith.constant 0 : i32
    return %arg0, %c0_i32, %c0_i32_0, %c0_i32_1 : i32, i32, i32, i32
  }
  func.func @transform_1(%arg0: i32) -> (i32, i32) {
    %c0_i32 = arith.constant 0 : i32
    %c0_i32_0 = arith.constant 0 : i32
    %c0_i32_1 = arith.constant 0 : i32
    return %c0_i32, %c0_i32_0 : i32, i32
  }
  func.func @transform_2(%arg0: i32) -> (i32, i32) {
    %c0_i32 = arith.constant 0 : i32
    %c0_i32_0 = arith.constant 0 : i32
    %c0_i32_1 = arith.constant 0 : i32
    return %c0_i32, %c0_i32_0 : i32, i32
  }
  func.func @transform_3(%arg0: i32) -> (i32, i32) {
    %c0_i32 = arith.constant 0 : i32
    %c0_i32_0 = arith.constant 0 : i32
    %c0_i32_1 = arith.constant 0 : i32
    return %c0_i32, %c0_i32_0 : i32, i32
  }
  func.func @transform_4(%arg0: i32) -> (i32, i32, i32, i32) {
    %c0_i32 = arith.constant 0 : i32
    %c0_i32_0 = arith.constant 0 : i32
    %c0_i32_1 = arith.constant 0 : i32
    %c0_i32_2 = arith.constant 0 : i32
    return %arg0, %c0_i32, %c0_i32_0, %c0_i32_1 : i32, i32, i32, i32
  }
  func.func @transform_5(%arg0: i32) -> (i32, i32, i32) {
    %c0_i32 = arith.constant 0 : i32
    %c0_i32_0 = arith.constant 0 : i32
    %c0_i32_1 = arith.constant 0 : i32
    return %arg0, %c0_i32, %c0_i32_0 : i32, i32, i32
  }
  func.func @transform_6(%arg0: i32) -> (i32, i32, i32) {
    %c0_i32 = arith.constant 0 : i32
    %c0_i32_0 = arith.constant 0 : i32
    %c0_i32_1 = arith.constant 0 : i32
    return %arg0, %c0_i32, %c0_i32_0 : i32, i32, i32
  }
}

</mosaic_0001>

<bundles_post_ra>
// kernel: encoding_block_forward.5
= control target key start
LH: loop header
LB: loop body
LE: loop exit
PB: predicated region body
PF: predicated region fallthrough
CT: control target
= control target key end

     0   :  { %vm284_vm0 = vcmask 64512   ;;  %s1024_s0 = inlined_call_operand.vmem [shape: bf16[512,8], index: 0, kind: input, shape index: {}]   ;;  %s1025_s1 = inlined_call_operand.vmem [shape: f32[1,8], index: 1, kind: input, shape index: {}]   ;;  %s1026_s2 = inlined_call_operand.vmem [shape: f32[1,8], index: 2, kind: input, shape index: {}]   ;;  %s1027_s3 = inlined_call_operand.vmem [shape: f32[512,8], index: 3, kind: output, shape index: {}]  }
   0x1   :  { %v356_v0 = vld [vmem:[%s1024_s0] sm:$0xff]   ;;  %v483_v4 = vld [vmem:[%s1024_s0 + $0x8] sm:$0xff]   ;;  %v484_v5 = vld [vmem:[%s1024_s0 + $0x10] sm:$0xff]  }
   0x2   :  { %v540_v1 = vld [vmem:[%s1025_s1] ss:$0 sm:$0xff]  ;;  %v357_v2 = vunpack.c.l.bf16 %v356_v0  ;;  %v358_v3 = vunpack.c.h.bf16 %v356_v0  ;;  %v485_v6 = vld [vmem:[%s1024_s0 + $0x18] sm:$0xff]   ;;  %v361_v8 = vunpack.c.l.bf16 %v483_v4  ;;  %v362_v9 = vunpack.c.h.bf16 %v483_v4  ;;  %v487_v25 = vld [vmem:[%s1024_s0 + $0x28] sm:$0xff]  }
   0x3   :  { %v554_v7 = vld [vmem:[%s1026_s2] ss:$0 sm:$0xff]  ;;  %v365_v10 = vunpack.c.l.bf16 %v484_v5  ;;  %v366_v11 = vunpack.c.h.bf16 %v484_v5  ;;  %v369_v14 = vunpack.c.l.bf16 %v485_v6  ;;  %v370_v15 = vunpack.c.h.bf16 %v485_v6  ;;  %v488_v26 = vld [vmem:[%s1024_s0 + $0x30] sm:$0xff]   ;;  %v489_v31 = vld [vmem:[%s1024_s0 + $0x38] sm:$0xff]  }
   0x4   :  { %v149_v12 = vmul.f32 %v357_v2, %v540_v1  ;;  %v150_v13 = vmul.f32 %v358_v3, %v540_v1  ;;  %v151_v16 = vmul.f32 %v361_v8, %v540_v1  ;;  %v152_v17 = vmul.f32 %v362_v9, %v540_v1  ;;  %v486_v20 = vld [vmem:[%s1024_s0 + $0x20] sm:$0xff]   ;;  %v491_v53 = vld [vmem:[%s1024_s0 + $0x48] sm:$0xff]   ;;  %v492_v54 = vld [vmem:[%s1024_s0 + $0x50] sm:$0xff]  }
   0x5   :  { %v153_v18 = vmul.f32 %v365_v10, %v540_v1  ;;  %v154_v19 = vmul.f32 %v366_v11, %v540_v1  ;;  %v155_v23 = vmul.f32 %v369_v14, %v540_v1  ;;  %v156_v24 = vmul.f32 %v370_v15, %v540_v1  ;;  %v490_v48 = vld [vmem:[%s1024_s0 + $0x40] sm:$0xff]   ;;  %v493_v59 = vld [vmem:[%s1024_s0 + $0x58] sm:$0xff]  }
   0x6   :  { %v220_v21 = vadd.f32 %v554_v7, %v149_v12  ;;  %v221_v22 = vadd.f32 %v554_v7, %v150_v13  ;;  %v222_v27 = vadd.f32 %v554_v7, %v151_v16  ;;  %v223_v28 = vadd.f32 %v554_v7, %v152_v17  ;;  %v494_v14 = vld [vmem:[%s1024_s0 + $0x60] sm:$0xff]  }
   0x7   :  { %v224_v29 = vadd.f32 %v554_v7, %v153_v18  ;;  %v225_v30 = vadd.f32 %v554_v7, %v154_v19  ;;  %v226_v32 = vadd.f32 %v554_v7, %v155_v23  ;;  %v227_v33 = vadd.f32 %v554_v7, %v156_v24  ;;  %v495_v19 = vld [vmem:[%s1024_s0 + $0x68] sm:$0xff]  }
   0x8   :  { %285 = vst.msk [vmem:[%s1027_s3] sm:$0xff] %vm284_vm0, %v220_v21  ;;  %286 = vst.msk [vmem:[%s1027_s3 + $0x8] sm:$0xff] %vm284_vm0, %v221_v22  ;;  %v373_v34 = vunpack.c.l.bf16 %v486_v20  ;;  %v374_v35 = vunpack.c.h.bf16 %v486_v20  ;;  %v377_v36 = vunpack.c.l.bf16 %v487_v25  ;;  %v378_v37 = vunpack.c.h.bf16 %v487_v25  ;;  %v496_v20 = vld [vmem:[%s1024_s0 + $0x70] sm:$0xff]   ;;  %v497_v25 = vld [vmem:[%s1024_s0 + $0x78] sm:$0xff]  }
   0x9   :  { %287 = vst.msk [vmem:[%s1027_s3 + $0x10] sm:$0xff] %vm284_vm0, %v222_v27  ;;  %288 = vst.msk [vmem:[%s1027_s3 + $0x18] sm:$0xff] %vm284_vm0, %v223_v28  ;;  %v381_v38 = vunpack.c.l.bf16 %v488_v26  ;;  %v382_v39 = vunpack.c.h.bf16 %v488_v26  ;;  %v385_v42 = vunpack.c.l.bf16 %v489_v31  ;;  %v386_v43 = vunpack.c.h.bf16 %v489_v31 }
   0xa   :  { %289 = vst.msk [vmem:[%s1027_s3 + $0x20] sm:$0xff] %vm284_vm0, %v224_v29  ;;  %290 = vst.msk [vmem:[%s1027_s3 + $0x28] sm:$0xff] %vm284_vm0, %v225_v30  ;;  %v157_v40 = vmul.f32 %v373_v34, %v540_v1  ;;  %v158_v41 = vmul.f32 %v374_v35, %v540_v1  ;;  %v159_v44 = vmul.f32 %v377_v36, %v540_v1  ;;  %v389_v62 = vunpack.c.l.bf16 %v490_v48 }
   0xb   :  { %291 = vst.msk [vmem:[%s1027_s3 + $0x30] sm:$0xff] %vm284_vm0, %v226_v32  ;;  %292 = vst.msk [vmem:[%s1027_s3 + $0x38] sm:$0xff] %vm284_vm0, %v227_v33  ;;  %v160_v45 = vmul.f32 %v378_v37, %v540_v1  ;;  %v161_v46 = vmul.f32 %v381_v38, %v540_v1  ;;  %v162_v47 = vmul.f32 %v382_v39, %v540_v1  ;;  %v390_v63 = vunpack.c.h.bf16 %v490_v48  ;;  %v500_v48 = vld [vmem:[%s1024_s0 + $0x90] sm:$0xff]  }
   0xc   :  { %v228_v49 = vadd.f32 %v554_v7, %v157_v40  ;;  %v229_v50 = vadd.f32 %v554_v7, %v158_v41  ;;  %v163_v51 = vmul.f32 %v385_v42, %v540_v1  ;;  %v164_v52 = vmul.f32 %v386_v43, %v540_v1  ;;  %v498_v42 = vld [vmem:[%s1024_s0 + $0x80] sm:$0xff]  }
   0xd   :  { %v230_v55 = vadd.f32 %v554_v7, %v159_v44  ;;  %v231_v56 = vadd.f32 %v554_v7, %v160_v45  ;;  %v232_v57 = vadd.f32 %v554_v7, %v161_v46  ;;  %v233_v58 = vadd.f32 %v554_v7, %v162_v47  ;;  %v499_v47 = vld [vmem:[%s1024_s0 + $0x88] sm:$0xff]  }
   0xe   :  { %293 = vst.msk [vmem:[%s1027_s3 + $0x40] sm:$0xff] %vm284_vm0, %v228_v49  ;;  %294 = vst.msk [vmem:[%s1027_s3 + $0x48] sm:$0xff] %vm284_vm0, %v229_v50  ;;  %v234_v60 = vadd.f32 %v554_v7, %v163_v51  ;;  %v235_v61 = vadd.f32 %v554_v7, %v164_v52  ;;  %v393_v0 = vunpack.c.l.bf16 %v491_v53  ;;  %v394_v2 = vunpack.c.h.bf16 %v491_v53  ;;  %v501_v53 = vld [vmem:[%s1024_s0 + $0x98] sm:$0xff]  }
   0xf   :  { %295 = vst.msk [vmem:[%s1027_s3 + $0x50] sm:$0xff] %vm284_vm0, %v230_v55  ;;  %296 = vst.msk [vmem:[%s1027_s3 + $0x58] sm:$0xff] %vm284_vm0, %v231_v56  ;;  %v397_v3 = vunpack.c.l.bf16 %v492_v54  ;;  %v398_v4 = vunpack.c.h.bf16 %v492_v54  ;;  %v165_v5 = vmul.f32 %v389_v62, %v540_v1  ;;  %v166_v6 = vmul.f32 %v390_v63, %v540_v1 }
  0x10   :  { %297 = vst.msk [vmem:[%s1027_s3 + $0x60] sm:$0xff] %vm284_vm0, %v232_v57  ;;  %298 = vst.msk [vmem:[%s1027_s3 + $0x68] sm:$0xff] %vm284_vm0, %v233_v58  ;;  %v401_v8 = vunpack.c.l.bf16 %v493_v59  ;;  %v402_v9 = vunpack.c.h.bf16 %v493_v59  ;;  %v167_v10 = vmul.f32 %v393_v0, %v540_v1  ;;  %v168_v11 = vmul.f32 %v394_v2, %v540_v1 }
  0x11   :  { %299 = vst.msk [vmem:[%s1027_s3 + $0x70] sm:$0xff] %vm284_vm0, %v234_v60  ;;  %300 = vst.msk [vmem:[%s1027_s3 + $0x78] sm:$0xff] %vm284_vm0, %v235_v61  ;;  %v169_v12 = vmul.f32 %v397_v3, %v540_v1  ;;  %v170_v13 = vmul.f32 %v398_v4, %v540_v1  ;;  %v236_v15 = vadd.f32 %v554_v7, %v165_v5  ;;  %v405_v28 = vunpack.c.l.bf16 %v494_v14 }
  0x12   :  { %v237_v16 = vadd.f32 %v554_v7, %v166_v6  ;;  %v171_v17 = vmul.f32 %v401_v8, %v540_v1  ;;  %v172_v18 = vmul.f32 %v402_v9, %v540_v1  ;;  %v238_v21 = vadd.f32 %v554_v7, %v167_v10  ;;  %v502_v8 = vld [vmem:[%s1024_s0 + $0xa0] sm:$0xff]  }
  0x13   :  { %v239_v22 = vadd.f32 %v554_v7, %v168_v11  ;;  %v240_v23 = vadd.f32 %v554_v7, %v169_v12  ;;  %v241_v24 = vadd.f32 %v554_v7, %v170_v13  ;;  %301 = vst.msk [vmem:[%s1027_s3 + $0x80] sm:$0xff] %vm284_vm0, %v236_v15  ;;  %v406_v29 = vunpack.c.h.bf16 %v494_v14  ;;  %v503_v13 = vld [vmem:[%s1024_s0 + $0xa8] sm:$0xff]   ;;  %v504_v14 = vld [vmem:[%s1024_s0 + $0xb0] sm:$0xff]  }
  0x14   :  { %302 = vst.msk [vmem:[%s1027_s3 + $0x88] sm:$0xff] %vm284_vm0, %v237_v16  ;;  %v242_v26 = vadd.f32 %v554_v7, %v171_v17  ;;  %v243_v27 = vadd.f32 %v554_v7, %v172_v18  ;;  %303 = vst.msk [vmem:[%s1027_s3 + $0x90] sm:$0xff] %vm284_vm0, %v238_v21  ;;  %v409_v30 = vunpack.c.l.bf16 %v495_v19  ;;  %v410_v31 = vunpack.c.h.bf16 %v495_v19  ;;  %v505_v19 = vld [vmem:[%s1024_s0 + $0xb8] sm:$0xff]  }
  0x15   :  { %304 = vst.msk [vmem:[%s1027_s3 + $0x98] sm:$0xff] %vm284_vm0, %v239_v22  ;;  %305 = vst.msk [vmem:[%s1027_s3 + $0xa0] sm:$0xff] %vm284_vm0, %v240_v23  ;;  %v413_v32 = vunpack.c.l.bf16 %v496_v20  ;;  %v414_v33 = vunpack.c.h.bf16 %v496_v20  ;;  %v173_v34 = vmul.f32 %v405_v28, %v540_v1  ;;  %v174_v35 = vmul.f32 %v406_v29, %v540_v1 }
  0x16   :  { %306 = vst.msk [vmem:[%s1027_s3 + $0xa8] sm:$0xff] %vm284_vm0, %v241_v24  ;;  %307 = vst.msk [vmem:[%s1027_s3 + $0xb0] sm:$0xff] %vm284_vm0, %v242_v26  ;;  %v417_v36 = vunpack.c.l.bf16 %v497_v25  ;;  %v418_v37 = vunpack.c.h.bf16 %v497_v25  ;;  %v175_v38 = vmul.f32 %v409_v30, %v540_v1  ;;  %v176_v39 = vmul.f32 %v410_v31, %v540_v1 }
  0x17   :  { %308 = vst.msk [vmem:[%s1027_s3 + $0xb8] sm:$0xff] %vm284_vm0, %v243_v27  ;;  %v177_v40 = vmul.f32 %v413_v32, %v540_v1  ;;  %v178_v41 = vmul.f32 %v414_v33, %v540_v1  ;;  %v244_v43 = vadd.f32 %v554_v7, %v173_v34  ;;  %v245_v44 = vadd.f32 %v554_v7, %v174_v35 }
  0x18   :  { %v179_v45 = vmul.f32 %v417_v36, %v540_v1  ;;  %v180_v46 = vmul.f32 %v418_v37, %v540_v1  ;;  %v246_v49 = vadd.f32 %v554_v7, %v175_v38  ;;  %v247_v50 = vadd.f32 %v554_v7, %v176_v39  ;;  %v506_v36 = vld [vmem:[%s1024_s0 + $0xc0] sm:$0xff]  }
  0x19   :  { %v248_v51 = vadd.f32 %v554_v7, %v177_v40  ;;  %v249_v52 = vadd.f32 %v554_v7, %v178_v41  ;;  %309 = vst.msk [vmem:[%s1027_s3 + $0xc0] sm:$0xff] %vm284_vm0, %v244_v43  ;;  %310 = vst.msk [vmem:[%s1027_s3 + $0xc8] sm:$0xff] %vm284_vm0, %v245_v44  ;;  %v421_v56 = vunpack.c.l.bf16 %v498_v42  ;;  %v422_v57 = vunpack.c.h.bf16 %v498_v42  ;;  %v507_v41 = vld [vmem:[%s1024_s0 + $0xc8] sm:$0xff]   ;;  %v508_v42 = vld [vmem:[%s1024_s0 + $0xd0] sm:$0xff]  }
  0x1a   :  { %v250_v54 = vadd.f32 %v554_v7, %v179_v45  ;;  %v251_v55 = vadd.f32 %v554_v7, %v180_v46  ;;  %311 = vst.msk [vmem:[%s1027_s3 + $0xd0] sm:$0xff] %vm284_vm0, %v246_v49  ;;  %312 = vst.msk [vmem:[%s1027_s3 + $0xd8] sm:$0xff] %vm284_vm0, %v247_v50  ;;  %v425_v58 = vunpack.c.l.bf16 %v499_v47  ;;  %v426_v59 = vunpack.c.h.bf16 %v499_v47  ;;  %v509_v47 = vld [vmem:[%s1024_s0 + $0xd8] sm:$0xff]  }
  0x1b   :  { %313 = vst.msk [vmem:[%s1027_s3 + $0xe0] sm:$0xff] %vm284_vm0, %v248_v51  ;;  %314 = vst.msk [vmem:[%s1027_s3 + $0xe8] sm:$0xff] %vm284_vm0, %v249_v52  ;;  %v429_v60 = vunpack.c.l.bf16 %v500_v48  ;;  %v430_v61 = vunpack.c.h.bf16 %v500_v48  ;;  %v181_v62 = vmul.f32 %v421_v56, %v540_v1  ;;  %v182_v63 = vmul.f32 %v422_v57, %v540_v1 }
  0x1c   :  { %315 = vst.msk [vmem:[%s1027_s3 + $0xf0] sm:$0xff] %vm284_vm0, %v250_v54  ;;  %316 = vst.msk [vmem:[%s1027_s3 + $0xf8] sm:$0xff] %vm284_vm0, %v251_v55  ;;  %v433_v0 = vunpack.c.l.bf16 %v501_v53  ;;  %v434_v2 = vunpack.c.h.bf16 %v501_v53  ;;  %v183_v3 = vmul.f32 %v425_v58, %v540_v1  ;;  %v184_v4 = vmul.f32 %v426_v59, %v540_v1 }
  0x1d   :  { %v185_v5 = vmul.f32 %v429_v60, %v540_v1  ;;  %v186_v6 = vmul.f32 %v430_v61, %v540_v1  ;;  %v252_v9 = vadd.f32 %v554_v7, %v181_v62  ;;  %v253_v10 = vadd.f32 %v554_v7, %v182_v63 }
  0x1e   :  { %v187_v11 = vmul.f32 %v433_v0, %v540_v1  ;;  %v188_v12 = vmul.f32 %v434_v2, %v540_v1  ;;  %v254_v15 = vadd.f32 %v554_v7, %v183_v3  ;;  %v255_v16 = vadd.f32 %v554_v7, %v184_v4  ;;  %v510_v0 = vld [vmem:[%s1024_s0 + $0xe0] sm:$0xff]  }
  0x1f   :  { %v256_v17 = vadd.f32 %v554_v7, %v185_v5  ;;  %v257_v18 = vadd.f32 %v554_v7, %v186_v6  ;;  %317 = vst.msk [vmem:[%s1027_s3 + $0x100] sm:$0xff] %vm284_vm0, %v252_v9  ;;  %318 = vst.msk [vmem:[%s1027_s3 + $0x108] sm:$0xff] %vm284_vm0, %v253_v10  ;;  %v437_v22 = vunpack.c.l.bf16 %v502_v8  ;;  %v438_v23 = vunpack.c.h.bf16 %v502_v8  ;;  %v511_v6 = vld [vmem:[%s1024_s0 + $0xe8] sm:$0xff]   ;;  %v512_v8 = vld [vmem:[%s1024_s0 + $0xf0] sm:$0xff]  }
  0x20   :  { %v258_v20 = vadd.f32 %v554_v7, %v187_v11  ;;  %v259_v21 = vadd.f32 %v554_v7, %v188_v12  ;;  %319 = vst.msk [vmem:[%s1027_s3 + $0x110] sm:$0xff] %vm284_vm0, %v254_v15  ;;  %320 = vst.msk [vmem:[%s1027_s3 + $0x118] sm:$0xff] %vm284_vm0, %v255_v16  ;;  %v441_v24 = vunpack.c.l.bf16 %v503_v13  ;;  %v442_v25 = vunpack.c.h.bf16 %v503_v13  ;;  %v513_v13 = vld [vmem:[%s1024_s0 + $0xf8] sm:$0xff]  }
  0x21   :  { %321 = vst.msk [vmem:[%s1027_s3 + $0x120] sm:$0xff] %vm284_vm0, %v256_v17  ;;  %322 = vst.msk [vmem:[%s1027_s3 + $0x128] sm:$0xff] %vm284_vm0, %v257_v18  ;;  %v445_v26 = vunpack.c.l.bf16 %v504_v14  ;;  %v446_v27 = vunpack.c.h.bf16 %v504_v14  ;;  %v189_v28 = vmul.f32 %v437_v22, %v540_v1  ;;  %v190_v29 = vmul.f32 %v438_v23, %v540_v1 }
  0x22   :  { %323 = vst.msk [vmem:[%s1027_s3 + $0x130] sm:$0xff] %vm284_vm0, %v258_v20  ;;  %324 = vst.msk [vmem:[%s1027_s3 + $0x138] sm:$0xff] %vm284_vm0, %v259_v21  ;;  %v449_v30 = vunpack.c.l.bf16 %v505_v19  ;;  %v450_v31 = vunpack.c.h.bf16 %v505_v19  ;;  %v191_v32 = vmul.f32 %v441_v24, %v540_v1  ;;  %v192_v33 = vmul.f32 %v442_v25, %v540_v1 }
  0x23   :  { %v193_v34 = vmul.f32 %v445_v26, %v540_v1  ;;  %v194_v35 = vmul.f32 %v446_v27, %v540_v1  ;;  %v260_v37 = vadd.f32 %v554_v7, %v189_v28  ;;  %v261_v38 = vadd.f32 %v554_v7, %v190_v29 }
  0x24   :  { %v195_v39 = vmul.f32 %v449_v30, %v540_v1  ;;  %v196_v40 = vmul.f32 %v450_v31, %v540_v1  ;;  %v262_v43 = vadd.f32 %v554_v7, %v191_v32  ;;  %v263_v44 = vadd.f32 %v554_v7, %v192_v33 }
  0x25   :  { %v264_v45 = vadd.f32 %v554_v7, %v193_v34  ;;  %v265_v46 = vadd.f32 %v554_v7, %v194_v35  ;;  %325 = vst.msk [vmem:[%s1027_s3 + $0x140] sm:$0xff] %vm284_vm0, %v260_v37  ;;  %326 = vst.msk [vmem:[%s1027_s3 + $0x148] sm:$0xff] %vm284_vm0, %v261_v38  ;;  %v453_v50 = vunpack.c.l.bf16 %v506_v36  ;;  %v454_v51 = vunpack.c.h.bf16 %v506_v36 }
  0x26   :  { %v266_v48 = vadd.f32 %v554_v7, %v195_v39  ;;  %v267_v49 = vadd.f32 %v554_v7, %v196_v40  ;;  %327 = vst.msk [vmem:[%s1027_s3 + $0x150] sm:$0xff] %vm284_vm0, %v262_v43  ;;  %328 = vst.msk [vmem:[%s1027_s3 + $0x158] sm:$0xff] %vm284_vm0, %v263_v44  ;;  %v457_v52 = vunpack.c.l.bf16 %v507_v41  ;;  %v458_v53 = vunpack.c.h.bf16 %v507_v41 }
  0x27   :  { %329 = vst.msk [vmem:[%s1027_s3 + $0x160] sm:$0xff] %vm284_vm0, %v264_v45  ;;  %330 = vst.msk [vmem:[%s1027_s3 + $0x168] sm:$0xff] %vm284_vm0, %v265_v46  ;;  %v461_v54 = vunpack.c.l.bf16 %v508_v42  ;;  %v462_v55 = vunpack.c.h.bf16 %v508_v42  ;;  %v197_v56 = vmul.f32 %v453_v50, %v540_v1  ;;  %v198_v57 = vmul.f32 %v454_v51, %v540_v1 }
  0x28   :  { %331 = vst.msk [vmem:[%s1027_s3 + $0x170] sm:$0xff] %vm284_vm0, %v266_v48  ;;  %332 = vst.msk [vmem:[%s1027_s3 + $0x178] sm:$0xff] %vm284_vm0, %v267_v49  ;;  %v465_v58 = vunpack.c.l.bf16 %v509_v47  ;;  %v466_v59 = vunpack.c.h.bf16 %v509_v47  ;;  %v199_v60 = vmul.f32 %v457_v52, %v540_v1  ;;  %v200_v61 = vmul.f32 %v458_v53, %v540_v1 }
  0x29   :  { %v201_v62 = vmul.f32 %v461_v54, %v540_v1  ;;  %v202_v63 = vmul.f32 %v462_v55, %v540_v1  ;;  %v268_v2 = vadd.f32 %v554_v7, %v197_v56  ;;  %v269_v3 = vadd.f32 %v554_v7, %v198_v57 }
  0x2a   :  { %v203_v4 = vmul.f32 %v465_v58, %v540_v1  ;;  %v204_v5 = vmul.f32 %v466_v59, %v540_v1  ;;  %v270_v9 = vadd.f32 %v554_v7, %v199_v60  ;;  %v271_v10 = vadd.f32 %v554_v7, %v200_v61 }
  0x2b   :  { %v272_v11 = vadd.f32 %v554_v7, %v201_v62  ;;  %v273_v12 = vadd.f32 %v554_v7, %v202_v63  ;;  %333 = vst.msk [vmem:[%s1027_s3 + $0x180] sm:$0xff] %vm284_vm0, %v268_v2  ;;  %334 = vst.msk [vmem:[%s1027_s3 + $0x188] sm:$0xff] %vm284_vm0, %v269_v3  ;;  %v469_v16 = vunpack.c.l.bf16 %v510_v0  ;;  %v470_v17 = vunpack.c.h.bf16 %v510_v0 }
  0x2c   :  { %v274_v14 = vadd.f32 %v554_v7, %v203_v4  ;;  %v275_v15 = vadd.f32 %v554_v7, %v204_v5  ;;  %335 = vst.msk [vmem:[%s1027_s3 + $0x190] sm:$0xff] %vm284_vm0, %v270_v9  ;;  %336 = vst.msk [vmem:[%s1027_s3 + $0x198] sm:$0xff] %vm284_vm0, %v271_v10  ;;  %v473_v18 = vunpack.c.l.bf16 %v511_v6  ;;  %v474_v19 = vunpack.c.h.bf16 %v511_v6 }
  0x2d   :  { %337 = vst.msk [vmem:[%s1027_s3 + $0x1a0] sm:$0xff] %vm284_vm0, %v272_v11  ;;  %338 = vst.msk [vmem:[%s1027_s3 + $0x1a8] sm:$0xff] %vm284_vm0, %v273_v12  ;;  %v477_v20 = vunpack.c.l.bf16 %v512_v8  ;;  %v478_v21 = vunpack.c.h.bf16 %v512_v8  ;;  %v205_v22 = vmul.f32 %v469_v16, %v540_v1  ;;  %v206_v23 = vmul.f32 %v470_v17, %v540_v1 }
  0x2e   :  { %339 = vst.msk [vmem:[%s1027_s3 + $0x1b0] sm:$0xff] %vm284_vm0, %v274_v14  ;;  %340 = vst.msk [vmem:[%s1027_s3 + $0x1b8] sm:$0xff] %vm284_vm0, %v275_v15  ;;  %v481_v24 = vunpack.c.l.bf16 %v513_v13  ;;  %v482_v25 = vunpack.c.h.bf16 %v513_v13  ;;  %v207_v26 = vmul.f32 %v473_v18, %v540_v1  ;;  %v208_v27 = vmul.f32 %v474_v19, %v540_v1 }
  0x2f   :  { %v209_v28 = vmul.f32 %v477_v20, %v540_v1  ;;  %v210_v29 = vmul.f32 %v478_v21, %v540_v1  ;;  %v276_v30 = vadd.f32 %v554_v7, %v205_v22  ;;  %v277_v31 = vadd.f32 %v554_v7, %v206_v23 }
  0x30   :  { %v211_v32 = vmul.f32 %v481_v24, %v540_v1  ;;  %v212_v33 = vmul.f32 %v482_v25, %v540_v1  ;;  %v278_v34 = vadd.f32 %v554_v7, %v207_v26  ;;  %v279_v35 = vadd.f32 %v554_v7, %v208_v27 }
  0x31   :  { %v280_v36 = vadd.f32 %v554_v7, %v209_v28  ;;  %v281_v37 = vadd.f32 %v554_v7, %v210_v29  ;;  %341 = vst.msk [vmem:[%s1027_s3 + $0x1c0] sm:$0xff] %vm284_vm0, %v276_v30  ;;  %342 = vst.msk [vmem:[%s1027_s3 + $0x1c8] sm:$0xff] %vm284_vm0, %v277_v31 }
  0x32   :  { %v282_v1 = vadd.f32 %v554_v7, %v211_v32  ;;  %v283_v38 = vadd.f32 %v554_v7, %v212_v33  ;;  %343 = vst.msk [vmem:[%s1027_s3 + $0x1d0] sm:$0xff] %vm284_vm0, %v278_v34  ;;  %344 = vst.msk [vmem:[%s1027_s3 + $0x1d8] sm:$0xff] %vm284_vm0, %v279_v35 }
  0x33   :  { %345 = vst.msk [vmem:[%s1027_s3 + $0x1e0] sm:$0xff] %vm284_vm0, %v280_v36  ;;  %346 = vst.msk [vmem:[%s1027_s3 + $0x1e8] sm:$0xff] %vm284_vm0, %v281_v37 }
  0x34   :  { %347 = vst.msk [vmem:[%s1027_s3 + $0x1f0] sm:$0xff] %vm284_vm0, %v282_v1  ;;  %348 = vst.msk [vmem:[%s1027_s3 + $0x1f8] sm:$0xff] %vm284_vm0, %v283_v38 }

// kernel: encoding_block_forward.3
= control target key start
LH: loop header
LB: loop body
LE: loop exit
PB: predicated region body
PF: predicated region fallthrough
CT: control target
= control target key end

     0   :  { %s2643_s21 = smov 0   ;;  %s3710_s0 = inlined_call_operand.vmem [shape: bf16[2,16,16,4], index: 0, kind: input, shape index: {}]   ;;  %s3711_s1 = inlined_call_operand.vmem [shape: bf16[36,8], index: 1, kind: input, shape index: {}]   ;;  %s3712_s2 = inlined_call_operand.vmem [shape: f32[1,8], index: 2, kind: input, shape index: {}]   ;;  %s3713_s3 = inlined_call_operand.vmem [shape: f32[1,8], index: 3, kind: input, shape index: {}]   ;;  %s3714_s4 = inlined_call_operand.vmem [shape: bf16[2,16,16,8], index: 4, kind: output, shape index: {0}]   ;;  %s3715_s5 = inlined_call_operand.vmem [shape: f32[2,1,8], index: 5, kind: output, shape index: {1}]   ;;  %s3716_s6 = inlined_call_operand.vmem [shape: f32[2,1,8], index: 6, kind: output, shape index: {2}]  }
   0x1 LB: > { %s2314_s22 = sadd.s32 4294967295, %s2598_s21   ;;  %p2318_p0 = scmp.ge.s32.totalorder %s2598_s21, 1  ;;  %s2598_s21 = sphi %s2643_s21, %s17_s21  }
   0x2   : > { %p217_p1 = scmp.lt.s32.totalorder %s2598_s21, 3 }
   0x4   : > { %p218_p2 = pnand %p2318_p0, %p217_p1 }
   0x5   : > { %p253_p3 = scmp.lt.s32.totalorder (!%p218_p2), %s2314_s22, 1  ;;  %s2600_s27 = smov (!%p218_p2), 12  }
   0x6   : > { %221 = sbr.rel (%p218_p2) target bundleno = 691 (0x2b3), region = 36  ;;  %s2601_s28 = smov (!%p218_p2), 24  }
   0x7   : > { %s2602_s29 = smov (!%p218_p2), 8   ;;  %s2603_s30 = smov (!%p218_p2), 20  }
   0x8   : > { %s2604_s7 = smov (!%p218_p2), 4   ;;  %s2605_s8 = smov (!%p218_p2), 16  }
   0x9   : > { %s2606_s9 = smov (!%p218_p2), 28   ;;  %s2607_s10 = smov (!%p218_p2), 32  }
   0xb   : > { %s3720_s22 = smov (!%p253_p3, %s2314_s22), 1  ;;  %vm702_vm0 = vcmask 1040384   ;;  %vm703_vm1 = vsmask.f32 256  ;;  %vm948_vm3 = vcmask 1046528   ;;  %vm1574_vm5 = vcmask 1041408  }
   0xc   : > { %s2426_s23 = sshll.u32 %s3720_s22, 7  ;;  %vm2667_vm2 = vmand %vm702_vm0, %vm703_vm1  ;;  %vm737_vm4 = vsmask.f32 7424  ;;  %vm1257_vm6 = vcmask 31744   ;;  %vm1288_vm7 = vcmask 64512   ;;  %vm1319_vm8 = vcmask 97280  }
   0xd   : > { %s2659_s26 = scalar_lea.vmem %s3710_s0, %s2426_s23  ;;  %vm1352_vm9 = vcmask 130048   ;;  %vm1385_vm10 = vcmask 162816   ;;  %vm1418_vm11 = vcmask 195584   ;;  %vm1450_vm12 = vcmask 228352  }
   0xe   : > { %v272_v0 = vld [vmem:[%s2659_s26 + $0x8] sm:$0xf]  ;;  %v273_v1 = vld [vmem:[%s2659_s26 + $0xc] sm:$0xf]  ;;  %v270_v2 = vld [vmem:[%s2659_s26] sm:$0xf] }
   0xf   : > { %v2323_v3 = vcombine.low %v272_v0, %v272_v0  ;;  %v2339_v4 = vcombine.low %v272_v0, %v273_v1  ;;  %v271_v5 = vld [vmem:[%s2659_s26 + $0x4] sm:$0xf]  ;;  %v2324_v6 = vcombine.low %v270_v2, %v270_v2  ;;  %v274_v7 = vld [vmem:[%s2659_s26 + $0x10] sm:$0xf]  ;;  %v275_v8 = vld [vmem:[%s2659_s26 + $0x14] sm:$0xf]  ;;  %v2355_v9 = vcombine.low %v273_v1, %v273_v1 }
  0x10   : > { %v2340_v10 = vcombine.low %v270_v2, %v271_v5  ;;  %v2325_v11 = vcombine.low %v274_v7, %v274_v7  ;;  %v2341_v12 = vcombine.low %v274_v7, %v275_v8  ;;  %v2356_v13 = vcombine.low %v271_v5, %v271_v5  ;;  %v276_v41 = vld [vmem:[%s2659_s26 + $0x18] sm:$0xf]  ;;  %v277_v46 = vld [vmem:[%s2659_s26 + $0x1c] sm:$0xf] }
  0x11   : > { %v463_v14 = vshrl.u32 %v2339_v4, 16  ;;  %v466_v15 = vshll.u32 %v2339_v4, 16  ;;  %v351_v16 = vshrl.u32 %v2323_v3, 16  ;;  %v623_v22 = vshll.u32 %v2355_v9, 16 }
  0x12   : > { %v470_v17 = vshrl.u32 %v2340_v10, 16  ;;  %v473_v18 = vshll.u32 %v2340_v10, 16  ;;  %v477_v19 = vshrl.u32 %v2341_v12, 16  ;;  %v480_v21 = vshll.u32 %v2341_v12, 16  ;;  %v279_v12 = vld [vmem:[%s2659_s26 + $0x24] sm:$0xf] }
  0x13   : > { %v465_v20 = vrot.slane %v463_v14, 7  ;;  %v627_v23 = vshll.u32 %v2356_v13, 16  ;;  %v354_v25 = vshrl.u32 %v2324_v6, 16  ;;  %v357_v27 = vshrl.u32 %v2325_v11, 16  ;;  %v278_v11 = vld [vmem:[%s2659_s26 + $0x20] sm:$0xf] }
  0x14   : > { %v472_v26 = vrot.slane %v470_v17, 7  ;;  %v479_v28 = vrot.slane %v477_v19, 7  ;;  %v625_v30 = vrot.slane %v623_v22, 3  ;;  %v2357_v34 = vcombine.low %v275_v8, %v275_v8 }
  0x15   : > { %v468_v29 = vor.u32 %v466_v15, %v465_v20  ;;  %v629_v31 = vrot.slane %v627_v23, 3  ;;  %v2342_v52 = vcombine.low %v276_v41, %v277_v46  ;;  %v2326_v6 = vcombine.low %v276_v41, %v276_v41 }
  0x16   : > { %v475_v32 = vor.u32 %v473_v18, %v472_v26  ;;  %v482_v33 = vor.u32 %v480_v21, %v479_v28  ;;  %v721_v36 = vsel %vm2667_vm2, %v465_v20, %v625_v30  ;;  %v631_v50 = vshll.u32 %v2357_v34, 16 }
  0x17   : > { %v2673_v35 = vsel %vm2667_vm2, %v351_v16, %v468_v29  ;;  %v722_v37 = vsel %vm2667_vm2, %v472_v26, %v629_v31  ;;  %v950_v42 = vrot.slane %v721_v36, 1  ;;  %v746_v48 = vshll.u32 %v721_v36, 16 }
  0x18   : > { %1073 = vrot.lane.b32.xlu1 %v2673_v35, %s2600_s27  ;;  %v2683_v38 = vsel %vm2667_vm2, %v354_v25, %v475_v32  ;;  %v2687_v39 = vsel %vm2667_vm2, %v357_v27, %v482_v33  ;;  %v949_v40 = vrot.slane %v2673_v35, 1  ;;  %v953_v44 = vrot.slane %v722_v37, 1 }
  0x19   : > { %1071 = vrot.lane.b32.xlu0 %v2683_v38, %s2600_s27  ;;  %v952_v43 = vrot.slane %v2683_v38, 1  ;;  %v741_v45 = vshll.u32 %v2673_v35, 16  ;;  %v739_v47 = vshrl.u32 %v2673_v35, 16  ;;  %v753_v49 = vshll.u32 %v2683_v38, 16 }
  0x1a   : > { %v951_v53 = vsel %vm948_vm3, %v949_v40, %v950_v42  ;;  %v751_v55 = vshrl.u32 %v2683_v38, 16  ;;  %v758_v56 = vshll.u32 %v722_v37, 16  ;;  %v748_v58 = vrot.slane %v746_v48, 1  ;;  %v2570_v48 = vld [vmem:[%s3711_s1 + $0x10] ss:$0 sps:$4 sm:$0x33]  }
  0x1b   : > { %v743_v51 = vrot.slane %v741_v45, 1  ;;  %v954_v54 = vsel %vm948_vm3, %v952_v43, %v953_v44  ;;  %v755_v59 = vrot.slane %v753_v49, 1  ;;  %v633_v60 = vrot.slane %v631_v50, 3  ;;  %2523 = vmatprep.subr.msk.bf16.mxu0 %vm1574_vm5, %v2570_v48  ;;  %2524 = vmatprep.subr.msk.bf16.mxu1 %vm1574_vm5, %v2570_v48 }
  0x1c   : > { %1169 = vrot.lane.b32.xlu1 %v2687_v39, %s2601_s28  ;;  %v765_v61 = vshll.u32 %v2687_v39, 16  ;;  %v484_v62 = vshrl.u32 %v2342_v52, 16  ;;  %v760_v1 = vrot.slane %v758_v56, 1  ;;  %v763_v3 = vshrl.u32 %v2687_v39, 16 }
  0x1d   : > { %1167 = vrot.lane.b32.xlu0 %v2673_v35, %s2601_s28  ;;  %v744_v57 = vor.u32 %v743_v51, %v739_v47  ;;  %v756_v0 = vor.u32 %v755_v59, %v751_v55  ;;  %v723_v2 = vsel %vm2667_vm2, %v479_v28, %v633_v60  ;;  %v487_v9 = vshll.u32 %v2342_v52, 16  ;;  %v281_v47 = vld [vmem:[%s2659_s26 + $0x2c] sm:$0xf] }
  0x1e   : > { %v767_v4 = vrot.slane %v765_v61, 1  ;;  %v770_v5 = vshll.u32 %v723_v2, 16  ;;  %v486_v8 = vrot.slane %v484_v62, 7  ;;  %v2358_v10 = vcombine.low %v277_v46, %v277_v46  ;;  %v280_v46 = vld [vmem:[%s2659_s26 + $0x28] sm:$0xf]  ;;  %v2573_v62 = vld [vmem:[%s3711_s1] sm:$0xff]  }
  0x1f   : > { %v749_v63 = vsel %vm737_vm4, %v744_v57, %v748_v58  ;;  %v761_v7 = vsel %vm737_vm4, %v756_v0, %v760_v1  ;;  %v360_v15 = vshrl.u32 %v2326_v6, 16  ;;  %v2343_v18 = vcombine.low %v278_v11, %v279_v12  ;;  %v2572_v55 = vld [vmem:[%s3711_s1 + $0x8] sm:$0xff]   ;;  %v283_v6 = vld [vmem:[%s2659_s26 + $0x34] sm:$0xf] }
  0x20   : > { %1041 = vrot.lane.b32.xlu1 %v951_v53, %s2602_s29  ;;  %v768_v13 = vor.u32 %v767_v4, %v763_v3  ;;  %v772_v14 = vrot.slane %v770_v5, 1  ;;  %v489_v16 = vor.u32 %v487_v9, %v486_v8  ;;  %v635_v17 = vshll.u32 %v2358_v10, 16  ;;  %v282_v5 = vld [vmem:[%s2659_s26 + $0x30] sm:$0xf] }
  0x21   : > { %1135 = vrot.lane.b32.xlu0 %v954_v54, %s2603_s30  ;;  %v955_v20 = vrot.slane %v2687_v39, 1  ;;  %v956_v21 = vrot.slane %v723_v2, 1  ;;  %v491_v25 = vshrl.u32 %v2343_v18, 16  ;;  %v2327_v28 = vcombine.low %v278_v11, %v278_v11 }
  0x22   : > { %v773_v19 = vsel %vm737_vm4, %v768_v13, %v772_v14  ;;  %v2725_v22 = vsel %vm2667_vm2, %v360_v15, %v489_v16  ;;  %v637_v23 = vrot.slane %v635_v17, 3  ;;  %v494_v31 = vshll.u32 %v2343_v18, 16 }
  0x23   : > { %v957_v26 = vsel %vm948_vm3, %v955_v20, %v956_v21  ;;  %v777_v27 = vshll.u32 %v2725_v22, 16  ;;  %v493_v30 = vrot.slane %v491_v25, 7  ;;  %v2359_v32 = vcombine.low %v279_v12, %v279_v12 }
  0x24   : > { %1043 = vrot.lane.b32.xlu1 %v954_v54, %s2602_s29  ;;  %v724_v29 = vsel %vm2667_vm2, %v486_v8, %v637_v23  ;;  %v775_v33 = vshrl.u32 %v2725_v22, 16  ;;  %v363_v37 = vshrl.u32 %v2327_v28, 16  ;;  %v958_v50 = vrot.slane %v2725_v22, 1 }
  0x25   : > { %1011 = vrot.lane.b32.xlu0 %v749_v63, %s2604_s7  ;;  %v779_v34 = vrot.slane %v777_v27, 1  ;;  %v782_v36 = vshll.u32 %v724_v29, 16  ;;  %v496_v40 = vor.u32 %v494_v31, %v493_v30  ;;  %v639_v41 = vshll.u32 %v2359_v32, 16 }
  0x26   : > { %v959_v51 = vrot.slane %v724_v29, 1  ;;  %v2344_v54 = vcombine.low %v280_v46, %v281_v47  ;;  %v1576_v61 = vsel %vm1574_vm5, %v2570_v48, 0  ;;  %v2328_v1 = vcombine.low %v280_v46, %v280_v46 }
  0x27   : > { %v780_v42 = vor.u32 %v779_v34, %v775_v33  ;;  %v784_v43 = vrot.slane %v782_v36, 1  ;;  %v2740_v44 = vsel %vm2667_vm2, %v363_v37, %v496_v40  ;;  %v641_v45 = vrot.slane %v639_v41, 3  ;;  %2480 = vmatpush3.bf16.msra.mxu0 %v1576_v61  ;;  %2520 = vmatpush3.bf16.msra.mxu1 %v1576_v61  ;;  %v284_v37 = vld [vmem:[%s2659_s26 + $0x38] sm:$0xf]  ;;  %v285_v40 = vld [vmem:[%s2659_s26 + $0x3c] sm:$0xf] }
  0x28   : > { %1137 = vrot.lane.b32.xlu1 %v951_v53, %s2603_s30  ;;  %v789_v52 = vshll.u32 %v2740_v44, 16  ;;  %v960_v56 = vsel %vm948_vm3, %v958_v50, %v959_v51  ;;  %v787_v57 = vshrl.u32 %v2740_v44, 16  ;;  %v498_v60 = vshrl.u32 %v2344_v54, 16  ;;  %2481 = vmatprep.subr.bf16.mxu0 %v2572_v55 }
  0x29   : > { %1013 = vrot.lane.b32.xlu0 %v761_v7, %s2604_s7  ;;  %v785_v49 = vsel %vm737_vm4, %v780_v42, %v784_v43  ;;  %2518 = vmatprep.subr.bf16.mxu1 %v2572_v55  ;;  %v501_v3 = vshll.u32 %v2344_v54, 16  ;;  %v2360_v4 = vcombine.low %v281_v47, %v281_v47  ;;  %v366_v8 = vshrl.u32 %v2328_v1, 16 }
  0x2a   : > { %v791_v58 = vrot.slane %v789_v52, 1  ;;  %v500_v2 = vrot.slane %v498_v60, 7  ;;  %v2345_v11 = vcombine.low %v282_v5, %v283_v6  ;;  %v961_v12 = vrot.slane %v2740_v44, 1  ;;  %v287_v60 = vld [vmem:[%s2659_s26 + $0x44] sm:$0xf] }
  0x2b   : > { %2482 = vmatpush3.bf16.msra.mxu0 %v2572_v55  ;;  %2521 = vmatpush3.bf16.msra.mxu1 %v2572_v55  ;;  %v643_v10 = vshll.u32 %v2360_v4, 16  ;;  %v2361_v25 = vcombine.low %v283_v6, %v283_v6  ;;  %v2346_v47 = vcombine.low %v284_v37, %v285_v40  ;;  %v2330_v55 = vcombine.low %v284_v37, %v284_v37 }
  0x2c   : > { %1105 = vrot.lane.b32.xlu1 %v749_v63, %s2605_s8  ;;  %2483 = vmatprep.subr.bf16.mxu0 %v2573_v62  ;;  %v503_v9 = vor.u32 %v501_v3, %v500_v2  ;;  %v505_v16 = vshrl.u32 %v2345_v11, 16  ;;  %v508_v23 = vshll.u32 %v2345_v11, 16  ;;  %vm1482_vm13 = vcmask 261120  }
  0x2d   : > { %1103 = vrot.lane.b32.xlu0 %v761_v7, %s2605_s8  ;;  %2519 = vmatprep.subr.bf16.mxu1 %v2573_v62  ;;  %v645_v15 = vrot.slane %v643_v10, 3  ;;  %v647_v31 = vshll.u32 %v2361_v25, 16  ;;  %v512_v52 = vshrl.u32 %v2346_v47, 16  ;;  %vm1541_vm14 = vcmask 293888  }
  0x2e   : > { %v2780_v14 = vsel %vm2667_vm2, %v366_v8, %v503_v9  ;;  %v507_v21 = vrot.slane %v505_v16, 7  ;;  %v2363_v9 = vcombine.low %v287_v60, %v287_v60  ;;  %vm1970_vm0 = vcmask 60416  }
  0x2f   : > { %2484 = vmatpush3.bf16.msra.mxu0 %v2573_v62  ;;  %2522 = vmatpush3.bf16.msra.mxu1 %v2573_v62  ;;  %v801_v18 = vshll.u32 %v2780_v14, 16  ;;  %v726_v20 = vsel %vm2667_vm2, %v500_v2, %v645_v15  ;;  %v649_v36 = vrot.slane %v647_v31, 3  ;;  %v964_v42 = vrot.slane %v2780_v14, 1 }
  0x30   : > { %1199 = vrot.lane.b32.xlu1 %v773_v19, %s2606_s9  ;;  %v806_v28 = vshll.u32 %v726_v20, 16  ;;  %v965_v43 = vrot.slane %v726_v20, 1  ;;  %v372_v62 = vshrl.u32 %v2330_v55, 16  ;;  %v655_v20 = vshll.u32 %v2363_v9, 16 }
  0x31   : > { %1197 = vrot.lane.b32.xlu0 %v749_v63, %s2606_s9  ;;  %v792_v63 = vor.u32 %v791_v58, %v787_v57  ;;  %v803_v27 = vrot.slane %v801_v18, 1  ;;  %v727_v46 = vsel %vm2667_vm2, %v507_v21, %v649_v36  ;;  %v515_v57 = vshll.u32 %v2346_v47, 16 }
  0x32   : > { %v808_v33 = vrot.slane %v806_v28, 1  ;;  %v966_v48 = vsel %vm948_vm3, %v964_v42, %v965_v43  ;;  %v818_v51 = vshll.u32 %v727_v46, 16  ;;  %v2362_v58 = vcombine.low %v285_v40, %v285_v40  ;;  %v289_v28 = vld [vmem:[%s2659_s26 + $0x4c] sm:$0xf] }
  0x33   : > { %v968_v2 = vrot.slane %v727_v46, 1 }
  0x34   : > { %1229 = vrot.lane.b32.xlu1 %v957_v26, %s2607_s10  ;;  %v820_v54 = vrot.slane %v818_v51, 1  ;;  %v290_v51 = vld [vmem:[%s2659_s26 + $0x50] sm:$0xf] }
  0x35   : > { %1227 = vrot.lane.b32.xlu0 %v951_v53, %s2607_s10  ;;  %v725_v53 = vsel %vm2667_vm2, %v493_v30, %v641_v45  ;;  %v510_v30 = vor.u32 %v508_v23, %v507_v21 }
  0x36   : > { %v794_v59 = vshll.u32 %v725_v53, 16  ;;  %v962_v13 = vrot.slane %v725_v53, 1 }
  0x38   : > { %1045 = vrot.lane.b32.xlu1 %v957_v26, %s2602_s29  ;;  %v796_v0 = vrot.slane %v794_v59, 1  ;;  %v963_v17 = vsel %vm948_vm3, %v961_v12, %v962_v13  ;;  %v286_v59 = vld [vmem:[%s2659_s26 + $0x40] sm:$0xf] }
  0x39   : > { %1015 = vrot.lane.b32.xlu0 %v773_v19, %s2604_s7  ;;  %v2347_v1 = vcombine.low %v286_v59, %v287_v60  ;;  %v2331_v8 = vcombine.low %v286_v59, %v286_v59 }
  0x3a   : > { %v797_v7 = vsel %vm737_vm4, %v792_v63, %v796_v0  ;;  %v651_v0 = vshll.u32 %v2362_v58, 16 }
  0x3b   : > { %v519_v6 = vshrl.u32 %v2347_v1, 16  ;;  %v522_v13 = vshll.u32 %v2347_v1, 16  ;;  %v375_v18 = vshrl.u32 %v2331_v8, 16 }
  0x3c   : > { %1077 = vrot.lane.b32.xlu1 %v2725_v22, %s2600_s27 }
  0x3d   : > { %1075 = vrot.lane.b32.xlu0 %v2687_v39, %s2600_s27  ;;  %v521_v12 = vrot.slane %v519_v6, 7  ;;  %v2333_v6 = vcombine.low %v290_v51, %v290_v51 }
  0x40   : > { %1109 = vrot.lane.b32.xlu1 %v785_v49, %s2605_s8 }
  0x41   : > { %1107 = vrot.lane.b32.xlu0 %v773_v19, %s2605_s8  ;;  %v2329_v19 = vcombine.low %v282_v5, %v282_v5  ;;  %v653_v5 = vrot.slane %v651_v0, 3 }
  0x43   : > { %v369_v29 = vshrl.u32 %v2329_v19, 16  ;;  %v524_v19 = vor.u32 %v522_v13, %v521_v12 }
  0x44   : > { %1141 = vrot.lane.b32.xlu1 %v960_v56, %s2603_s30 }
  0x45   : > { %1139 = vrot.lane.b32.xlu0 %v957_v26, %s2603_s30  ;;  %v799_v26 = vshrl.u32 %v2780_v14, 16  ;;  %v2795_v34 = vsel %vm2667_vm2, %v369_v29, %v510_v30  ;;  %v2841_v25 = vsel %vm2667_vm2, %v375_v18, %v524_v19  ;;  %v381_v18 = vshrl.u32 %v2333_v6, 16 }
  0x46   : > { %v813_v45 = vshll.u32 %v2795_v34, 16  ;;  %v967_v3 = vrot.slane %v2795_v34, 1  ;;  %v835_v40 = vshrl.u32 %v2841_v25, 16  ;;  %v973_v60 = vrot.slane %v2841_v25, 1 }
  0x47   : > { %v804_v32 = vor.u32 %v803_v27, %v799_v26  ;;  %v657_v26 = vrot.slane %v655_v20, 3  ;;  %v288_v27 = vld [vmem:[%s2659_s26 + $0x48] sm:$0xf] }
  0x48   : > { %1173 = vrot.lane.b32.xlu1 %v2740_v44, %s2601_s28  ;;  %v815_v50 = vrot.slane %v813_v45, 1  ;;  %v969_v10 = vsel %vm948_vm3, %v967_v3, %v968_v2  ;;  %v2348_v36 = vcombine.low %v288_v27, %v289_v28  ;;  %v2332_v47 = vcombine.low %v288_v27, %v288_v27 }
  0x49   : > { %1171 = vrot.lane.b32.xlu0 %v2725_v22, %s2601_s28  ;;  %v809_v41 = vsel %vm737_vm4, %v804_v32, %v808_v33  ;;  %v837_v32 = vshll.u32 %v2841_v25, 16  ;;  %v729_v33 = vsel %vm2667_vm2, %v521_v12, %v657_v26 }
  0x4a   : > { %v842_v42 = vshll.u32 %v729_v33, 16  ;;  %v526_v43 = vshrl.u32 %v2348_v36, 16  ;;  %v378_v55 = vshrl.u32 %v2332_v47, 16 }
  0x4c   : > { %1203 = vrot.lane.b32.xlu1 %v797_v7, %s2606_s9  ;;  %v844_v46 = vrot.slane %v842_v42, 1 }
  0x4d   : > { %1201 = vrot.lane.b32.xlu0 %v785_v49, %s2606_s9 }
  0x50   : > { %1017 = vrot.lane.b32.xlu1 %v785_v49, %s2604_s7  ;;  %v811_v49 = vshrl.u32 %v2795_v34, 16 }
  0x51   : > { %1231 = vrot.lane.b32.xlu0 %v960_v56, %s2607_s10 }
  0x52   : > { %v816_v53 = vor.u32 %v815_v50, %v811_v49  ;;  %v529_v49 = vshll.u32 %v2348_v36, 16  ;;  %v2364_v50 = vcombine.low %v289_v28, %v289_v28 }
  0x54   : > { %1019 = vrot.lane.b32.xlu1 %v797_v7, %s2604_s7  ;;  %v821_v61 = vsel %vm737_vm4, %v816_v53, %v820_v54 }
  0x55   : > { %1233 = vrot.lane.b32.xlu0 %v963_v17, %s2607_s10 }
  0x58   : > { %1049 = vrot.lane.b32.xlu1 %v963_v17, %s2602_s29 }
  0x59   : > { %1047 = vrot.lane.b32.xlu0 %v960_v56, %s2602_s29  ;;  %v514_v56 = vrot.slane %v512_v52, 7  ;;  %v291_v52 = vld [vmem:[%s2659_s26 + $0x54] sm:$0xf] }
  0x5a   : > { %v2349_v58 = vcombine.low %v290_v51, %v291_v52 }
  0x5b   : > { %v517_v63 = vor.u32 %v515_v57, %v514_v56  ;;  %v728_v11 = vsel %vm2667_vm2, %v514_v56, %v653_v5  ;;  %v659_v57 = vshll.u32 %v2364_v50, 16 }
  0x5c   : > { %1081 = vrot.lane.b32.xlu1 %v2780_v14, %s2600_s27  ;;  %v971_v31 = vrot.slane %v728_v11, 1  ;;  %v533_v1 = vshrl.u32 %v2349_v58, 16 }
  0x5d   : > { %1079 = vrot.lane.b32.xlu0 %v2740_v44, %s2600_s27  ;;  %v2826_v4 = vsel %vm2667_vm2, %v372_v62, %v517_v63  ;;  %v661_v0 = vrot.slane %v659_v57, 3 }
  0x5e   : > { %v823_v15 = vshrl.u32 %v2826_v4, 16  ;;  %v970_v30 = vrot.slane %v2826_v4, 1  ;;  %v535_v9 = vrot.slane %v533_v1, 7 }
  0x60   : > { %1113 = vrot.lane.b32.xlu1 %v809_v41, %s2605_s8  ;;  %v972_v37 = vsel %vm948_vm3, %v970_v30, %v971_v31 }
  0x61   : > { %1111 = vrot.lane.b32.xlu0 %v797_v7, %s2605_s8  ;;  %v825_v7 = vshll.u32 %v2826_v4, 16 }
  0x63   : > { %v827_v16 = vrot.slane %v825_v7, 1 }
  0x64   : > { %1145 = vrot.lane.b32.xlu1 %v966_v48, %s2603_s30 }
  0x65   : > { %1143 = vrot.lane.b32.xlu0 %v963_v17, %s2603_s30  ;;  %v830_v17 = vshll.u32 %v728_v11, 16  ;;  %v828_v21 = vor.u32 %v827_v16, %v823_v15  ;;  %v2365_v11 = vcombine.low %v291_v52, %v291_v52 }
  0x67   : > { %v832_v23 = vrot.slane %v830_v17, 1  ;;  %v663_v20 = vshll.u32 %v2365_v11, 16 }
  0x68   : > { %1177 = vrot.lane.b32.xlu1 %v2795_v34, %s2601_s28 }
  0x69   : > { %1175 = vrot.lane.b32.xlu0 %v2780_v14, %s2601_s28  ;;  %v833_v29 = vsel %vm737_vm4, %v828_v21, %v832_v23  ;;  %v665_v30 = vrot.slane %v663_v20, 3 }
  0x6c   : > { %1207 = vrot.lane.b32.xlu1 %v821_v61, %s2606_s9 }
  0x6d   : > { %1205 = vrot.lane.b32.xlu0 %v809_v41, %s2606_s9 }
  0x70   : > { %1021 = vrot.lane.b32.xlu1 %v809_v41, %s2604_s7  ;;  %v839_v41 = vrot.slane %v837_v32, 1  ;;  %v292_v32 = vld [vmem:[%s2659_s26 + $0x58] sm:$0xf] }
  0x71   : > { %1235 = vrot.lane.b32.xlu0 %v966_v48, %s2607_s10  ;;  %v2334_v6 = vcombine.low %v292_v32, %v292_v32 }
  0x72   : > { %v840_v45 = vor.u32 %v839_v41, %v835_v40 }
  0x74   : > { %1023 = vrot.lane.b32.xlu1 %v821_v61, %s2604_s7  ;;  %v2867_v53 = vsel %vm737_vm4, %v840_v45, %v844_v46  ;;  %v2924_v46 = vsel %vm2667_vm2, %v535_v9, %v665_v30 }
  0x75   : > { %1237 = vrot.lane.b32.xlu0 %v969_v10, %s2607_s10 }
  0x78   : > { %1053 = vrot.lane.b32.xlu1 %v969_v10, %s2602_s29 }
  0x79   : > { %1051 = vrot.lane.b32.xlu0 %v966_v48, %s2602_s29  ;;  %v528_v48 = vrot.slane %v526_v43, 7 }
  0x7b   : > { %v531_v56 = vor.u32 %v529_v49, %v528_v48  ;;  %v730_v8 = vsel %vm2667_vm2, %v528_v48, %v661_v0 }
  0x7c   : > { %1085 = vrot.lane.b32.xlu1 %v2826_v4, %s2600_s27  ;;  %v854_v16 = vshll.u32 %v730_v8, 16  ;;  %v977_v40 = vrot.slane %v730_v8, 1 }
  0x7d   : > { %1083 = vrot.lane.b32.xlu0 %v2795_v34, %s2600_s27  ;;  %v2879_v63 = vsel %vm2667_vm2, %v378_v55, %v531_v56 }
  0x7e   : > { %v849_v5 = vshll.u32 %v2879_v63, 16  ;;  %v847_v13 = vshrl.u32 %v2879_v63, 16  ;;  %v856_v27 = vrot.slane %v854_v16, 1 }
  0x80   : > { %1117 = vrot.lane.b32.xlu1 %v833_v29, %s2605_s8  ;;  %v851_v15 = vrot.slane %v849_v5, 1 }
  0x81   : > { %1115 = vrot.lane.b32.xlu0 %v821_v61, %s2605_s8  ;;  %v974_v61 = vrot.slane %v729_v33, 1  ;;  %v293_v33 = vld [vmem:[%s2659_s26 + $0x5c] sm:$0xf] }
  0x82   : > { %v852_v26 = vor.u32 %v851_v15, %v847_v13  ;;  %v2350_v47 = vcombine.low %v292_v32, %v293_v33  ;;  %v294_v13 = vld [vmem:[%s2659_s26 + $0x60] sm:$0xf]  ;;  %v295_v15 = vld [vmem:[%s2659_s26 + $0x64] sm:$0xf] }
  0x83   : > { %v2886_v3 = vsel %vm948_vm3, %v973_v60, %v974_v61 }
  0x84   : > { %1149 = vrot.lane.b32.xlu1 %v972_v37, %s2603_s30  ;;  %v857_v42 = vsel %vm737_vm4, %v852_v26, %v856_v27  ;;  %v540_v60 = vshrl.u32 %v2350_v47, 16 }
  0x85   : > { %1147 = vrot.lane.b32.xlu0 %v969_v10, %s2603_s30  ;;  %v536_v10 = vshll.u32 %v2349_v58, 16  ;;  %v866_v58 = vshll.u32 %v2924_v46, 16 }
  0x86   : > { %v542_v8 = vrot.slane %v540_v60, 7 }
  0x87   : > { %v538_v19 = vor.u32 %v536_v10, %v535_v9  ;;  %v868_v5 = vrot.slane %v866_v58, 1  ;;  %v543_v9 = vshll.u32 %v2350_v47, 16  ;;  %v2366_v10 = vcombine.low %v293_v33, %v293_v33 }
  0x88   : > { %1181 = vrot.lane.b32.xlu1 %v2841_v25, %s2601_s28 }
  0x89   : > { %1179 = vrot.lane.b32.xlu0 %v2826_v4, %s2601_s28  ;;  %v667_v20 = vshll.u32 %v2366_v10, 16 }
  0x8a   : > { %v2869_v54 = vpop.permute.xlu1 %1073 }
  0x8b   : > { %v1072_v59 = vpop.permute.xlu0 %1071 }
  0x8c   : > { %1211 = vrot.lane.b32.xlu1 %v2867_v53, %s2606_s9 }
  0x8d   : > { %1209 = vrot.lane.b32.xlu0 %v833_v29, %s2606_s9 }
  0x8e   : > { %v2875_v62 = vpop.permute.xlu1 %1169 }
  0x8f   : > { %v2881_v2 = vpop.permute.xlu0 %1167 }
  0x90   : > { %1025 = vrot.lane.b32.xlu1 %v833_v29, %s2604_s7  ;;  %v2903_v29 = vsel %vm2667_vm2, %v381_v18, %v538_v19  ;;  %v384_v18 = vshrl.u32 %v2334_v6, 16  ;;  %v545_v19 = vor.u32 %v543_v9, %v542_v8 }
  0x91   : > { %1239 = vrot.lane.b32.xlu0 %v972_v37, %s2607_s10  ;;  %v861_v43 = vshll.u32 %v2903_v29, 16  ;;  %v859_v56 = vshrl.u32 %v2903_v29, 16  ;;  %v979_v26 = vrot.slane %v2903_v29, 1 }
  0x92   : > { %v1042_v7 = vpop.permute.xlu1 %1041  ;;  %v2972_v30 = vsel %vm2667_vm2, %v384_v18, %v545_v19 }
  0x93   : > { %v1136_v12 = vpop.permute.xlu0 %1135  ;;  %v863_v57 = vrot.slane %v861_v43, 1 }
  0x94   : > { %1027 = vrot.lane.b32.xlu1 %v2867_v53, %s2604_s7 }
  0x95   : > { %1241 = vrot.lane.b32.xlu0 %v2886_v3, %s2607_s10 }
  0x96   : > { %v1044_v17 = vpop.permute.xlu1 %1043 }
  0x97   : > { %v1012_v21 = vpop.permute.xlu0 %1011 }
  0x98   : > { %1057 = vrot.lane.b32.xlu1 %v2886_v3, %s2602_s29  ;;  %v1259_v23 = vsel %vm1257_vm6, %v2673_v35, %v1012_v21  ;;  %v2351_v21 = vcombine.low %v294_v13, %v295_v15 }
  0x99   : > { %1055 = vrot.lane.b32.xlu0 %v972_v37, %s2602_s29  ;;  %v2908_v36 = vsel %vm1288_vm7, %v1259_v23, %v1042_v7  ;;  %v976_v37 = vrot.slane %v2879_v63, 1 }
  0x9a   : > { %v1138_v28 = vpop.permute.xlu1 %1137  ;;  %v1321_v49 = vsel %vm1319_vm8, %v2908_v36, %v1072_v59  ;;  %v547_v32 = vshrl.u32 %v2351_v21, 16 }
  0x9b   : > { %v1014_v31 = vpop.permute.xlu0 %1013 }
  0x9c   : > { %v1261_v35 = vsel %vm1257_vm6, %v2683_v38, %v1014_v31  ;;  %1089 = vrot.lane.b32.xlu1 %v2879_v63, %s2600_s27  ;;  %v669_v31 = vrot.slane %v667_v20, 3 }
  0x9d   : > { %v1292_v41 = vsel %vm1288_vm7, %v1261_v35, %v1044_v17  ;;  %1087 = vrot.lane.b32.xlu0 %v2841_v25, %s2600_s27  ;;  %v873_v35 = vshll.u32 %v2972_v30, 16 }
  0x9e   : > { %v1106_v45 = vpop.permute.xlu1 %1105  ;;  %v1323_v38 = vsel %vm1319_vm8, %v1292_v41, %v2869_v54  ;;  %v2933_v54 = vsel %vm948_vm3, %v976_v37, %v977_v40  ;;  %v2335_v37 = vcombine.low %v294_v13, %v294_v13  ;;  %v550_v40 = vshll.u32 %v2351_v21, 16 }
  0x9f   : > { %v1356_v48 = vsel %vm1352_vm9, %v1323_v38, %v1106_v45  ;;  %v1104_v50 = vpop.permute.xlu0 %1103  ;;  %v732_v45 = vsel %vm2667_vm2, %v542_v8, %v669_v31  ;;  %v549_v38 = vrot.slane %v547_v32, 7 }
  0xa0   : > { %v1389_v51 = vsel %vm1385_vm10, %v1356_v48, %v1138_v28  ;;  %v1354_v52 = vsel %vm1352_vm9, %v1321_v49, %v1104_v50  ;;  %1121 = vrot.lane.b32.xlu1 %v857_v42, %s2605_s8  ;;  %v980_v28 = vrot.slane %v2924_v46, 1  ;;  %v2367_v46 = vcombine.low %v295_v15, %v295_v15 }
  0xa1   : > { %v1387_v55 = vsel %vm1385_vm10, %v1354_v52, %v1136_v12  ;;  %1119 = vrot.lane.b32.xlu0 %v2867_v53, %s2605_s8  ;;  %v1422_v61 = vsel %vm1418_vm11, %v1389_v51, %v2875_v62  ;;  %v864_v53 = vor.u32 %v863_v57, %v859_v56  ;;  %v875_v48 = vrot.slane %v873_v35, 1 }
  0xa2   : > { %v1200_v59 = vpop.permute.xlu1 %1199  ;;  %v1420_v1 = vsel %vm1418_vm11, %v1387_v55, %v2881_v2  ;;  %v981_v43 = vsel %vm948_vm3, %v979_v26, %v980_v28  ;;  %v878_v49 = vshll.u32 %v732_v45, 16  ;;  %v387_v51 = vshrl.u32 %v2335_v37, 16 }
  0xa3   : > { %v1198_v0 = vpop.permute.xlu0 %1197  ;;  %v1454_v7 = vsel %vm1450_vm12, %v1422_v61, %v1200_v59  ;;  %v2960_v16 = vsel %vm737_vm4, %v864_v53, %v868_v5  ;;  %v552_v52 = vor.u32 %v550_v40, %v549_v38  ;;  %v671_v55 = vshll.u32 %v2367_v46, 16  ;;  %v297_v53 = vld [vmem:[%s2659_s26 + $0x6c] sm:$0xf] }
  0xa4   : > { %1153 = vrot.lane.b32.xlu1 %v2933_v54, %s2603_s30  ;;  %v1452_v2 = vsel %vm1450_vm12, %v1420_v1, %v1198_v0  ;;  %v880_v58 = vrot.slane %v878_v49, 1  ;;  %v296_v1 = vld [vmem:[%s2659_s26 + $0x68] sm:$0xf]  ;;  %v982_v5 = vrot.slane %v2972_v30, 1  ;;  %v983_v6 = vrot.slane %v732_v45, 1 }
  0xa5   : > { %1151 = vrot.lane.b32.xlu0 %v2886_v3, %s2603_s30  ;;  %v2990_v60 = vsel %vm2667_vm2, %v387_v51, %v552_v52  ;;  %v673_v61 = vrot.slane %v671_v55, 3  ;;  %v2352_v9 = vcombine.low %v296_v1, %v297_v53  ;;  %v2336_v40 = vcombine.low %v296_v1, %v296_v1 }
  0xa6   : > { %v1230_v62 = vpop.permute.xlu1 %1229  ;;  %v3010_v13 = vsel %vm948_vm3, %v982_v5, %v983_v6 }
  0xa7   : > { %v1486_v11 = vsel %vm1482_vm13, %v1454_v7, %v1230_v62  ;;  %v1228_v12 = vpop.permute.xlu0 %1227  ;;  %v885_v7 = vshll.u32 %v2990_v60, 16  ;;  %v733_v8 = vsel %vm2667_vm2, %v549_v38, %v673_v61  ;;  %v554_v21 = vshrl.u32 %v2352_v9, 16 }
  0xa8   : > { %1185 = vrot.lane.b32.xlu1 %v2903_v29, %s2601_s28  ;;  %v1484_v3 = vsel %vm1482_vm13, %v1452_v2, %v1228_v12  ;;  %v557_v45 = vshll.u32 %v2352_v9, 16  ;;  %v390_v51 = vshrl.u32 %v2336_v40, 16 }
  0xa9   : > { %1183 = vrot.lane.b32.xlu0 %v2879_v63, %s2601_s28  ;;  %2485 = vmatprep.mubr.msk.bf16.mxu0 %vm1541_vm14, %v1484_v3  ;;  %v883_v3 = vshrl.u32 %v2990_v60, 16  ;;  %v887_v18 = vrot.slane %v885_v7, 1 }
  0xaa   : > { %2486 = vmatmul.mubr.msk.bf16.vlgmr.msra.gmra.mxu0 %vm1541_vm14, %v1486_v11  ;;  %v2963_v17 = vpop.permute.xlu1 %1045 }
  0xab   : > { %v1016_v23 = vpop.permute.xlu0 %1015  ;;  %v888_v32 = vor.u32 %v887_v18, %v883_v3 }
  0xac   : > { %1215 = vrot.lane.b32.xlu1 %v2960_v16, %s2606_s9  ;;  %v1263_v10 = vsel %vm1257_vm6, %v2687_v39, %v1016_v23  ;;  %v890_v39 = vshll.u32 %v733_v8, 16 }
  0xad   : > { %1213 = vrot.lane.b32.xlu0 %v857_v42, %s2606_s9 }
  0xae   : > { %v1078_v27 = vpop.permute.xlu1 %1077 }
  0xaf   : > { %v1076_v33 = vpop.permute.xlu0 %1075 }
  0xb0   : > { %1029 = vrot.lane.b32.xlu1 %v857_v42, %s2604_s7  ;;  %v871_v42 = vshrl.u32 %v2972_v30, 16  ;;  %v1325_v2 = vsel %vm1319_vm8, %v2908_v36, %v1076_v33  ;;  %v1294_v36 = vsel %vm1288_vm7, %v1263_v10, %v2963_v17  ;;  %v2368_v33 = vcombine.low %v297_v53, %v297_v53 }
  0xb1   : > { %1243 = vrot.lane.b32.xlu0 %v2933_v54, %s2607_s10  ;;  %v1327_v23 = vsel %vm1319_vm8, %v1294_v36, %v1078_v27  ;;  %v892_v27 = vrot.slane %v890_v39, 1 }
  0xb2   : > { %v1110_v41 = vpop.permute.xlu1 %1109  ;;  %v876_v57 = vor.u32 %v875_v48, %v871_v42  ;;  %v299_v42 = vld [vmem:[%s2659_s26 + $0x74] sm:$0xf]  ;;  %v675_v49 = vshll.u32 %v2368_v33, 16 }
  0xb3   : > { %v1108_v47 = vpop.permute.xlu0 %1107  ;;  %v1360_v31 = vsel %vm1352_vm9, %v1327_v23, %v1110_v41  ;;  %v556_v41 = vrot.slane %v554_v21, 7 }
  0xb4   : > { %1031 = vrot.lane.b32.xlu1 %v2960_v16, %s2604_s7  ;;  %v1358_v12 = vsel %vm1352_vm9, %v1325_v2, %v1108_v47  ;;  %v298_v47 = vld [vmem:[%s2659_s26 + $0x70] sm:$0xf]  ;;  %v2369_v2 = vcombine.low %v299_v42, %v299_v42 }
  0xb5   : > { %1245 = vrot.lane.b32.xlu0 %v981_v43, %s2607_s10  ;;  %v559_v52 = vor.u32 %v557_v45, %v556_v41  ;;  %v2353_v55 = vcombine.low %v298_v47, %v299_v42 }
  0xb6   : > { %v1142_v50 = vpop.permute.xlu1 %1141  ;;  %v679_v36 = vshll.u32 %v2369_v2, 16 }
  0xb7   : > { %v1140_v56 = vpop.permute.xlu0 %1139  ;;  %v1393_v17 = vsel %vm1385_vm10, %v1360_v31, %v1142_v50  ;;  %v561_v1 = vshrl.u32 %v2353_v55, 16  ;;  %v564_v10 = vshll.u32 %v2353_v55, 16 }
  0xb8   : > { %1061 = vrot.lane.b32.xlu1 %v981_v43, %s2602_s29  ;;  %v1391_v15 = vsel %vm1385_vm10, %v1358_v12, %v1140_v56  ;;  %v681_v31 = vrot.slane %v679_v36, 3 }
  0xb9   : > { %1059 = vrot.lane.b32.xlu0 %v2933_v54, %s2602_s29  ;;  %v881_v54 = vsel %vm737_vm4, %v876_v57, %v880_v58  ;;  %v985_v57 = vrot.slane %v2990_v60, 1  ;;  %v986_v58 = vrot.slane %v733_v8, 1  ;;  %v2337_v8 = vcombine.low %v298_v47, %v298_v47 }
  0xba   : > { %v1174_v59 = vpop.permute.xlu1 %1173  ;;  %v563_v9 = vrot.slane %v561_v1, 7 }
  0xbb   : > { %v1172_v0 = vpop.permute.xlu0 %1171  ;;  %v1426_v35 = vsel %vm1418_vm11, %v1393_v17, %v1174_v59  ;;  %v677_v59 = vrot.slane %v675_v49, 3  ;;  %v3059_v5 = vsel %vm948_vm3, %v985_v57, %v986_v58  ;;  %v393_v18 = vshrl.u32 %v2337_v8, 16  ;;  %v300_v17 = vld [vmem:[%s2659_s26 + $0x78] sm:$0xf] }
  0xbc   : > { %1093 = vrot.lane.b32.xlu1 %v2972_v30, %s2600_s27  ;;  %v1424_v19 = vsel %vm1418_vm11, %v1391_v15, %v1172_v0  ;;  %v3053_v0 = vsel %vm2667_vm2, %v390_v51, %v559_v52  ;;  %v566_v39 = vor.u32 %v564_v10, %v563_v9  ;;  %v2338_v8 = vcombine.low %v300_v17, %v300_v17 }
  0xbd   : > { %1091 = vrot.lane.b32.xlu0 %v2903_v29, %s2600_s27  ;;  %v734_v6 = vsel %vm2667_vm2, %v556_v41, %v677_v59  ;;  %v897_v7 = vshll.u32 %v3053_v0, 16 }
  0xbe   : > { %v1204_v62 = vpop.permute.xlu1 %1203  ;;  %v902_v15 = vshll.u32 %v734_v6, 16  ;;  %v989_v33 = vrot.slane %v734_v6, 1 }
  0xbf   : > { %v1202_v11 = vpop.permute.xlu0 %1201  ;;  %v1458_v38 = vsel %vm1450_vm12, %v1426_v35, %v1204_v62  ;;  %v899_v12 = vrot.slane %v897_v7, 1 }
  0xc0   : > { %1125 = vrot.lane.b32.xlu1 %v881_v54, %s2605_s8  ;;  %v1456_v26 = vsel %vm1450_vm12, %v1424_v19, %v1202_v11  ;;  %v904_v23 = vrot.slane %v902_v15, 1 }
  0xc1   : > { %1123 = vrot.lane.b32.xlu0 %v2960_v16, %s2605_s8 }
  0xc2   : > { %v3019_v20 = vpop.permute.xlu1 %1017 }
  0xc3   : > { %v1232_v28 = vpop.permute.xlu0 %1231 }
  0xc4   : > { %v1488_v16 = vsel %vm1482_vm13, %v1456_v26, %v1232_v28  ;;  %1157 = vrot.lane.b32.xlu1 %v3010_v13, %s2603_s30  ;;  %v3075_v28 = vsel %vm2667_vm2, %v393_v18, %v566_v39 }
  0xc5   : > { %1155 = vrot.lane.b32.xlu0 %v981_v43, %s2603_s30  ;;  %2489 = vmatprep.mubr.msk.bf16.mxu0 %vm1541_vm14, %v1488_v16  ;;  %v3043_v43 = vsel %vm737_vm4, %v888_v32, %v892_v27  ;;  %v301_v32 = vld [vmem:[%s2659_s26 + $0x7c] sm:$0xf]  ;;  %v988_v27 = vrot.slane %v3053_v0, 1  ;;  %v909_v40 = vshll.u32 %v3075_v28, 16  ;;  %v907_v51 = vshrl.u32 %v3075_v28, 16  ;;  %s3257_s26 = scalar_lea.vmem %s3714_s4, %s2426_s23 }
  0xc6   : > { %v3031_v37 = vpop.permute.xlu1 %1019 }
  0xc7   : > { %v1234_v46 = vpop.permute.xlu0 %1233  ;;  %v1267_v47 = vsel %vm1257_vm6, %v2740_v44, %v3031_v37  ;;  %v911_v52 = vrot.slane %v909_v40, 1 }
  0xc8   : > { %v1490_v48 = vsel %vm1482_vm13, %v1458_v38, %v1234_v46  ;;  %1189 = vrot.lane.b32.xlu1 %v2990_v60, %s2601_s28  ;;  %v735_v38 = vsel %vm2667_vm2, %v563_v9, %v681_v31  ;;  %v2354_v46 = vcombine.low %v300_v17, %v301_v32 }
  0xc9   : > { %1187 = vrot.lane.b32.xlu0 %v2972_v30, %s2601_s28  ;;  %2490 = vmatmul.mubr.msk.bf16.gmra.mxu0 %vm1541_vm14, %v1490_v48  ;;  %v990_v48 = vsel %vm948_vm3, %v988_v27, %v989_v33  ;;  %v914_v55 = vshll.u32 %v735_v38, 16 }
  0xca   : > { %v3045_v50 = vpop.permute.xlu1 %1049  ;;  %v568_v57 = vshrl.u32 %v2354_v46, 16  ;;  %v571_v2 = vshll.u32 %v2354_v46, 16 }
  0xcb   : > { %v1048_v56 = vpop.permute.xlu0 %1047  ;;  %v1298_v44 = vsel %vm1288_vm7, %v1267_v47, %v3045_v50  ;;  %v912_v50 = vor.u32 %v911_v52, %v907_v51  ;;  %v916_v7 = vrot.slane %v914_v55, 1 }
  0xcc   : > { %1219 = vrot.lane.b32.xlu1 %v3043_v43, %s2606_s9  ;;  %v570_v10 = vrot.slane %v568_v57, 7 }
  0xcd   : > { %1217 = vrot.lane.b32.xlu0 %v881_v54, %s2606_s9 }
  0xce   : > { %v1082_v61 = vpop.permute.xlu1 %1081  ;;  %v573_v18 = vor.u32 %v571_v2, %v570_v10 }
  0xcf   : > { %v1080_v53 = vpop.permute.xlu0 %1079  ;;  %v1331_v58 = vsel %vm1319_vm8, %v1298_v44, %v1082_v61 }
  0xd0   : > { %1033 = vrot.lane.b32.xlu1 %v881_v54, %s2604_s7  ;;  %v895_v54 = vshrl.u32 %v3053_v0, 16 }
  0xd1   : > { %1247 = vrot.lane.b32.xlu0 %v3010_v13, %s2607_s10 }
  0xd2   : > { %v1114_v62 = vpop.permute.xlu1 %1113  ;;  %v900_v21 = vor.u32 %v899_v12, %v895_v54 }
  0xd3   : > { %v1112_v11 = vpop.permute.xlu0 %1111 }
  0xd4   : > { %1035 = vrot.lane.b32.xlu1 %v3043_v43, %s2604_s7  ;;  %v905_v35 = vsel %vm737_vm4, %v900_v21, %v904_v23  ;;  %v991_v21 = vrot.slane %v3075_v28, 1  ;;  %v992_v23 = vrot.slane %v735_v38, 1 }
  0xd5   : > { %1249 = vrot.lane.b32.xlu0 %v3059_v5, %s2607_s10 }
  0xd6   : > { %v1146_v3 = vpop.permute.xlu1 %1145  ;;  %v993_v27 = vsel %vm948_vm3, %v991_v21, %v992_v23 }
  0xd7   : > { %v1144_v19 = vpop.permute.xlu0 %1143 }
  0xd8   : > { %1065 = vrot.lane.b32.xlu1 %v3059_v5, %s2602_s29 }
  0xd9   : > { %1063 = vrot.lane.b32.xlu0 %v3010_v13, %s2602_s29  ;;  %v1265_v13 = vsel %vm1257_vm6, %v2725_v22, %v3019_v20 }
  0xda   : > { %v1178_v26 = vpop.permute.xlu1 %1177  ;;  %v1296_v41 = vsel %vm1288_vm7, %v1265_v13, %v1048_v56 }
  0xdb   : > { %v1176_v16 = vpop.permute.xlu0 %1175  ;;  %v1329_v22 = vsel %vm1319_vm8, %v1296_v41, %v1080_v53  ;;  %v1364_v53 = vsel %vm1352_vm9, %v1331_v58, %v1114_v62  ;;  %v2370_v62 = vcombine.low %v301_v32, %v301_v32 }
  0xdc   : > { %1097 = vrot.lane.b32.xlu1 %v3053_v0, %s2600_s27  ;;  %v1362_v42 = vsel %vm1352_vm9, %v1329_v22, %v1112_v11  ;;  %v1397_v6 = vsel %vm1385_vm10, %v1364_v53, %v1146_v3  ;;  %v396_v3 = vshrl.u32 %v2338_v8, 16 }
  0xdd   : > { %1095 = vrot.lane.b32.xlu0 %v2990_v60, %s2600_s27  ;;  %v1395_v49 = vsel %vm1385_vm10, %v1362_v42, %v1144_v19  ;;  %v1430_v61 = vsel %vm1418_vm11, %v1397_v6, %v1178_v26  ;;  %v683_v39 = vshll.u32 %v2370_v62, 16 }
  0xde   : > { %v1208_v45 = vpop.permute.xlu1 %1207  ;;  %v1428_v37 = vsel %vm1418_vm11, %v1395_v49, %v1176_v16  ;;  %v720_v26 = vsel %vm2667_vm2, %v396_v3, %v573_v18 }
  0xdf   : > { %v1206_v20 = vpop.permute.xlu0 %1205  ;;  %v1462_v11 = vsel %vm1450_vm12, %v1430_v61, %v1208_v45  ;;  %v685_v31 = vrot.slane %v683_v39, 3  ;;  %v997_v17 = vshll.u32 %v720_v26, 16  ;;  %v995_v40 = vshrl.u32 %v720_v26, 16 }
  0xe0   : > { %1129 = vrot.lane.b32.xlu1 %v905_v35, %s2605_s8  ;;  %v1460_v59 = vsel %vm1450_vm12, %v1428_v37, %v1206_v20  ;;  %v1008_v49 = vrot.slane %v720_v26, 1 }
  0xe1   : > { %1127 = vrot.lane.b32.xlu0 %v3043_v43, %s2605_s8  ;;  %v736_v33 = vsel %vm2667_vm2, %v570_v10, %v685_v31  ;;  %v999_v41 = vrot.slane %v997_v17, 1 }
  0xe2   : > { %v1022_v56 = vpop.permute.xlu1 %1021  ;;  %v1002_v45 = vshll.u32 %v736_v33, 16  ;;  %v1009_v51 = vrot.slane %v736_v33, 1 }
  0xe3   : > { %v1236_v1 = vpop.permute.xlu0 %1235  ;;  %v1269_v24 = vsel %vm1257_vm6, %v2780_v14, %v1022_v56 }
  0xe4   : > { %v1492_v43 = vsel %vm1482_vm13, %v1460_v59, %v1236_v1  ;;  %1161 = vrot.lane.b32.xlu1 %v990_v48, %s2603_s30  ;;  %v1004_v47 = vrot.slane %v1002_v45, 1  ;;  %v1010_v56 = vsel %vm948_vm3, %v1008_v49, %v1009_v51 }
  0xe5   : > { %1159 = vrot.lane.b32.xlu0 %v3059_v5, %s2603_s30  ;;  %2493 = vmatprep.mubr.msk.bf16.mxu0 %vm1541_vm14, %v1492_v43  ;;  %v917_v5 = vsel %vm737_vm4, %v912_v50, %v916_v7 }
  0xe6   : > { %v1024_v9 = vpop.permute.xlu1 %1023 }
  0xe7   : > { %v1238_v54 = vpop.permute.xlu0 %1237 }
  0xe8   : > { %v1494_v12 = vsel %vm1482_vm13, %v1462_v11, %v1238_v54  ;;  %1193 = vrot.lane.b32.xlu1 %v3075_v28, %s2601_s28 }
  0xe9   : > { %1191 = vrot.lane.b32.xlu0 %v3053_v0, %s2601_s28  ;;  %2494 = vmatmul.mubr.msk.bf16.gmra.mxu0 %vm1541_vm14, %v1494_v12 }
  0xea   : > { %v1054_v15 = vpop.permute.xlu1 %1053 }
  0xeb   : > { %v1052_v36 = vpop.permute.xlu0 %1051 }
  0xec   : > { %1223 = vrot.lane.b32.xlu1 %v917_v5, %s2606_s9  ;;  %v1300_v52 = vsel %vm1288_vm7, %v1269_v24, %v1052_v36 }
  0xed   : > { %1221 = vrot.lane.b32.xlu0 %v905_v35, %s2606_s9 }
  0xee   : > { %v1086_v19 = vpop.permute.xlu1 %1085 }
  0xef   : > { %v1084_v16 = vpop.permute.xlu0 %1083 }
  0xf0   : > { %1037 = vrot.lane.b32.xlu1 %v905_v35, %s2604_s7  ;;  %v1000_v35 = vor.u32 %v999_v41, %v995_v40  ;;  %v1333_v44 = vsel %vm1319_vm8, %v1300_v52, %v1084_v16 }
  0xf1   : > { %1251 = vrot.lane.b32.xlu0 %v990_v48, %s2607_s10 }
  0xf2   : > { %v1118_v32 = vpop.permute.xlu1 %1117  ;;  %v1005_v42 = vsel %vm737_vm4, %v1000_v35, %v1004_v47 }
  0xf3   : > { %v1116_v13 = vpop.permute.xlu0 %1115 }
  0xf4   : > { %1039 = vrot.lane.b32.xlu1 %v917_v5, %s2604_s7  ;;  %v1366_v57 = vsel %vm1352_vm9, %v1333_v44, %v1116_v13  ;;  %s268_s7 = scalar_lea.vmem %s3716_s6, %s3720_s22 }
  0xf5   : > { %1253 = vrot.lane.b32.xlu0 %v993_v27, %s2607_s10 }
  0xf6   : > { %v1150_v38 = vpop.permute.xlu1 %1149 }
  0xf7   : > { %v1148_v46 = vpop.permute.xlu0 %1147 }
  0xf8   : > { %1069 = vrot.lane.b32.xlu1 %v993_v27, %s2602_s29  ;;  %v1399_v14 = vsel %vm1385_vm10, %v1366_v57, %v1148_v46 }
  0xf9   : > { %1067 = vrot.lane.b32.xlu0 %v990_v48, %s2602_s29  ;;  %v1271_v48 = vsel %vm1257_vm6, %v2795_v34, %v1024_v9 }
  0xfa   : > { %v1182_v22 = vpop.permute.xlu1 %1181  ;;  %v1302_v58 = vsel %vm1288_vm7, %v1271_v48, %v1054_v15 }
  0xfb   : > { %v1180_v20 = vpop.permute.xlu0 %1179  ;;  %v1335_v34 = vsel %vm1319_vm8, %v1302_v58, %v1086_v19 }
  0xfc   : > { %1101 = vrot.lane.b32.xlu1 %v720_v26, %s2600_s27  ;;  %v1432_v59 = vsel %vm1418_vm11, %v1399_v14, %v1180_v20  ;;  %v1368_v6 = vsel %vm1352_vm9, %v1335_v34, %v1118_v32 }
  0xfd   : > { %1099 = vrot.lane.b32.xlu0 %v3075_v28, %s2600_s27  ;;  %v1401_v7 = vsel %vm1385_vm10, %v1368_v6, %v1150_v38 }
  0xfe   : > { %v1212_v55 = vpop.permute.xlu1 %1211  ;;  %v1434_v8 = vsel %vm1418_vm11, %v1401_v7, %v1182_v22 }
  0xff   : > { %v1210_v37 = vpop.permute.xlu0 %1209  ;;  %v1466_v9 = vsel %vm1450_vm12, %v1434_v8, %v1212_v55 }
 0x100   : > { %1133 = vrot.lane.b32.xlu1 %v1005_v42, %s2605_s8  ;;  %v1464_v53 = vsel %vm1450_vm12, %v1432_v59, %v1210_v37 }
 0x101   : > { %1131 = vrot.lane.b32.xlu0 %v917_v5, %s2605_s8 }
 0x102   : > { %v1026_v1 = vpop.permute.xlu1 %1025 }
 0x103   : > { %v1240_v43 = vpop.permute.xlu0 %1239  ;;  %v1273_v19 = vsel %vm1257_vm6, %v2826_v4, %v1026_v1 }
 0x104   : > { %v1496_v50 = vsel %vm1482_vm13, %v1464_v53, %v1240_v43  ;;  %1165 = vrot.lane.b32.xlu1 %v1010_v56, %s2603_s30 }
 0x105   : > { %1163 = vrot.lane.b32.xlu0 %v993_v27, %s2603_s30  ;;  %2497 = vmatprep.mubr.msk.bf16.mxu0 %vm1541_vm14, %v1496_v50 }
 0x106   : > { %v1028_v61 = vpop.permute.xlu1 %1027 }
 0x107   : > { %v1242_v10 = vpop.permute.xlu0 %1241 }
 0x108   : > { %v1498_v2 = vsel %vm1482_vm13, %v1466_v9, %v1242_v10  ;;  %1225 = vrot.lane.b32.xlu1 %v1005_v42, %s2606_s9 }
 0x109   : > { %1195 = vrot.lane.b32.xlu0 %v720_v26, %s2601_s28  ;;  %2498 = vmatmul.mubr.msk.bf16.gmra.mxu0 %vm1541_vm14, %v1498_v2  ;;  %v1275_v26 = vsel %vm1257_vm6, %v2841_v25, %v1028_v61  ;;  %s265_s28 = scalar_lea.vmem %s3715_s5, %s3720_s22 }
 0x10a   : > { %v1058_v62 = vpop.permute.xlu1 %1057 }
 0x10b   : > { %v1056_v11 = vpop.permute.xlu0 %1055  ;;  %v1306_v27 = vsel %vm1288_vm7, %v1275_v26, %v1058_v62 }
 0x10c   : > { %v1304_v21 = vsel %vm1288_vm7, %v1273_v19, %v1056_v11 }
 0x10d   : > { %1255 = vrot.lane.b32.xlu0 %v1010_v56, %s2607_s10 }
 0x10e   : > { %v1090_v54 = vpop.permute.xlu1 %1089 }
 0x10f   : > { %v1088_v12 = vpop.permute.xlu0 %1087  ;;  %v1339_v4 = vsel %vm1319_vm8, %v1306_v27, %v1090_v54 }
 0x110   : > { %v1337_v31 = vsel %vm1319_vm8, %v1304_v21, %v1088_v12 }
 0x112   : > { %v1122_v5 = vpop.permute.xlu1 %1121 }
 0x113   : > { %v1120_v15 = vpop.permute.xlu0 %1119  ;;  %v1372_v45 = vsel %vm1352_vm9, %v1339_v4, %v1122_v5 }
 0x114   : > { %v1370_v17 = vsel %vm1352_vm9, %v1337_v31, %v1120_v15 }
 0x116   : > { %v1154_v3 = vpop.permute.xlu1 %1153 }
 0x117   : > { %v1152_v18 = vpop.permute.xlu0 %1151  ;;  %v1405_v38 = vsel %vm1385_vm10, %v1372_v45, %v1154_v3 }
 0x118   : > { %v1403_v32 = vsel %vm1385_vm10, %v1370_v17, %v1152_v18 }
 0x11a   : > { %v1186_v39 = vpop.permute.xlu1 %1185 }
 0x11b   : > { %v1184_v36 = vpop.permute.xlu0 %1183  ;;  %v1438_v46 = vsel %vm1418_vm11, %v1405_v38, %v1186_v39 }
 0x11c   : > { %v1436_v33 = vsel %vm1418_vm11, %v1403_v32, %v1184_v36 }
 0x11e   : > { %v1216_v23 = vpop.permute.xlu1 %1215 }
 0x11f   : > { %v1214_v16 = vpop.permute.xlu0 %1213  ;;  %v1470_v47 = vsel %vm1450_vm12, %v1438_v46, %v1216_v23 }
 0x120   : > { %v1468_v40 = vsel %vm1450_vm12, %v1436_v33, %v1214_v16 }
 0x122   : > { %v1030_v13 = vpop.permute.xlu1 %1029 }
 0x123   : > { %v1244_v41 = vpop.permute.xlu0 %1243  ;;  %v1277_v14 = vsel %vm1257_vm6, %v2879_v63, %v1030_v13 }
 0x124   : > { %v1500_v25 = vsel %vm1482_vm13, %v1468_v40, %v1244_v41 }
 0x125   : > { %2501 = vmatprep.mubr.msk.bf16.mxu1 %vm1541_vm14, %v1500_v25 }
 0x126   : > { %v1032_v35 = vpop.permute.xlu1 %1031 }
 0x127   : > { %v1246_v22 = vpop.permute.xlu0 %1245  ;;  %v1279_v59 = vsel %vm1257_vm6, %v2903_v29, %v1032_v35 }
 0x128   : > { %v1502_v20 = vsel %vm1482_vm13, %v1470_v47, %v1246_v22 }
 0x129   : > { %2502 = vmatmul.mubr.msk.bf16.vlgmr.msra.gmra.mxu1 %vm1541_vm14, %v1502_v20 }
 0x12a   : > { %v1062_v24 = vpop.permute.xlu1 %1061 }
 0x12b   : > { %v1060_v42 = vpop.permute.xlu0 %1059  ;;  %v1310_v6 = vsel %vm1288_vm7, %v1279_v59, %v1062_v24 }
 0x12c   : > { %v1308_v56 = vsel %vm1288_vm7, %v1277_v14, %v1060_v42 }
 0x12e   : > { %v1094_v49 = vpop.permute.xlu1 %1093 }
 0x12f   : > { %v1092_v51 = vpop.permute.xlu0 %1091  ;;  %v1343_v63 = vsel %vm1319_vm8, %v1310_v6, %v1094_v49  ;;  %v3241_v49 = vld [vmem:[%s3712_s2] ss:$0 sm:$0xff] }
 0x130   : > { %v1341_v1 = vsel %vm1319_vm8, %v1308_v56, %v1092_v51 }
 0x132   : > { %v1126_v52 = vpop.permute.xlu1 %1125 }
 0x133   : > { %v1124_v55 = vpop.permute.xlu0 %1123  ;;  %v1376_v9 = vsel %vm1352_vm9, %v1343_v63, %v1126_v52  ;;  %v3247_v52 = vld [vmem:[%s3713_s3] ss:$0 sm:$0xff] }
 0x134   : > { %v1374_v53 = vsel %vm1352_vm9, %v1341_v1, %v1124_v55 }
 0x136   : > { %v1158_v48 = vpop.permute.xlu1 %1157 }
 0x137   : > { %v1156_v44 = vpop.permute.xlu0 %1155  ;;  %v1409_v10 = vsel %vm1385_vm10, %v1376_v9, %v1158_v48 }
 0x138   : > { %v1407_v43 = vsel %vm1385_vm10, %v1374_v53, %v1156_v44 }
 0x13a   : > { %v1190_v37 = vpop.permute.xlu1 %1189 }
 0x13b   : > { %v1188_v57 = vpop.permute.xlu0 %1187  ;;  %v1442_v2 = vsel %vm1418_vm11, %v1409_v10, %v1190_v37 }
 0x13c   : > { %v1440_v50 = vsel %vm1418_vm11, %v1407_v43, %v1188_v57 }
 0x13e   : > { %v1220_v58 = vpop.permute.xlu1 %1219 }
 0x13f   : > { %v1218_v34 = vpop.permute.xlu0 %1217  ;;  %v1474_v11 = vsel %vm1450_vm12, %v1442_v2, %v1220_v58 }
 0x140   : > { %v1472_v8 = vsel %vm1450_vm12, %v1440_v50, %v1218_v34 }
 0x142   : > { %v1034_v7 = vpop.permute.xlu1 %1033 }
 0x143   : > { %v1248_v61 = vpop.permute.xlu0 %1247  ;;  %v1281_v31 = vsel %vm1257_vm6, %v2972_v30, %v1034_v7 }
 0x144   : > { %v1504_v29 = vsel %vm1482_vm13, %v1472_v8, %v1248_v61 }
 0x145   : > { %2505 = vmatprep.mubr.msk.bf16.mxu1 %vm1541_vm14, %v1504_v29 }
 0x146   : > { %v1036_v62 = vpop.permute.xlu1 %1035 }
 0x147   : > { %v1250_v54 = vpop.permute.xlu0 %1249  ;;  %v1283_v32 = vsel %vm1257_vm6, %v2990_v60, %v1036_v62 }
 0x148   : > { %v1506_v12 = vsel %vm1482_vm13, %v1474_v11, %v1250_v54 }
 0x149   : > { %2506 = vmatmul.mubr.msk.bf16.gmra.mxu1 %vm1541_vm14, %v1506_v12 }
 0x14a   : > { %v1066_v5 = vpop.permute.xlu1 %1065 }
 0x14b   : > { %v1064_v15 = vpop.permute.xlu0 %1063  ;;  %v1314_v40 = vsel %vm1288_vm7, %v1283_v32, %v1066_v5 }
 0x14c   : > { %v1312_v16 = vsel %vm1288_vm7, %v1281_v31, %v1064_v15 }
 0x14e   : > { %v1098_v3 = vpop.permute.xlu1 %1097 }
 0x14f   : > { %v1096_v18 = vpop.permute.xlu0 %1095  ;;  %v1347_v30 = vsel %vm1319_vm8, %v1314_v40, %v1098_v3 }
 0x150   : > { %v1345_v27 = vsel %vm1319_vm8, %v1312_v16, %v1096_v18 }
 0x152   : > { %v1130_v39 = vpop.permute.xlu1 %1129 }
 0x153   : > { %v1128_v36 = vpop.permute.xlu0 %1127  ;;  %v1380_v46 = vsel %vm1352_vm9, %v1347_v30, %v1130_v39 }
 0x154   : > { %v1378_v13 = vsel %vm1352_vm9, %v1345_v27, %v1128_v36 }
 0x156   : > { %v1162_v19 = vpop.permute.xlu1 %1161 }
 0x157   : > { %v1160_v21 = vpop.permute.xlu0 %1159  ;;  %v1413_v35 = vsel %vm1385_vm10, %v1380_v46, %v1162_v19 }
 0x158   : > { %v1411_v4 = vsel %vm1385_vm10, %v1378_v13, %v1160_v21 }
 0x15a   : > { %v3210_v23 = vpop.permute.xlu1 %1193 }
 0x15b   : > { %v1192_v26 = vpop.permute.xlu0 %1191  ;;  %v1446_v47 = vsel %vm1418_vm11, %v1413_v35, %v3210_v23 }
 0x15c   : > { %v1444_v41 = vsel %vm1418_vm11, %v1411_v4, %v1192_v26 }
 0x15e   : > { %v3215_v17 = vpop.permute.xlu1 %1223 }
 0x15f   : > { %v1222_v33 = vpop.permute.xlu0 %1221  ;;  %v1478_v20 = vsel %vm1450_vm12, %v1446_v47, %v3215_v17 }
 0x160   : > { %v1476_v25 = vsel %vm1450_vm12, %v1444_v41, %v1222_v33 }
 0x162   : > { %v1038_v45 = vpop.permute.xlu1 %1037 }
 0x163   : > { %v1252_v38 = vpop.permute.xlu0 %1251  ;;  %v1285_v15 = vsel %vm1257_vm6, %v3053_v0, %v1038_v45 }
 0x164   : > { %v1508_v60 = vsel %vm1482_vm13, %v1476_v25, %v1252_v38 }
 0x165   : > { %2509 = vmatprep.mubr.msk.bf16.mxu1 %vm1541_vm14, %v1508_v60 }
 0x166   : > { %v1040_v22 = vpop.permute.xlu1 %1039 }
 0x167   : > { %v3234_v24 = vpop.permute.xlu0 %1253  ;;  %v1287_v8 = vsel %vm1257_vm6, %v3075_v28, %v1040_v22 }
 0x168   : > { %v1510_v42 = vsel %vm1482_vm13, %v1478_v20, %v3234_v24 }
 0x169   : > { %2510 = vmatmul.mubr.msk.bf16.gmra.mxu1 %vm1541_vm14, %v1510_v42 }
 0x16a   : > { %v2487_v51 = vpop.f32.mrf.mxu0  ;;  %v1070_v55 = vpop.permute.xlu1 %1069 }
 0x16b   : > { %v1621_v48 = vadd.f32 %v2487_v51, %v3241_v49  ;;  %v1068_v44 = vpop.permute.xlu0 %1067  ;;  %v1318_v28 = vsel %vm1288_vm7, %v1287_v8, %v1070_v55 }
 0x16c   : > { %v1612_v37 = vpop.f32.mrf.mxu0  ;;  %v1316_v39 = vsel %vm1288_vm7, %v1285_v15, %v1068_v44 }
 0x16d   : > { %vm1742_vm15 = vcmp.gt.f32.partialorder %v1621_v48, 0.0  ;;  %v1780_v57 = vmul.f32 %v3247_v52, %v1621_v48  ;;  %v1613_v14 = vadd.f32 %v3241_v49, %v1612_v37 }
 0x16e   : > { %v2488_v56 = vpop.f32.mrf.mxu0  ;;  %v1102_v58 = vpop.permute.xlu1 %1101 }
 0x16f   : > { %v3259_v59 = vsel %vm1742_vm15, %v1621_v48, %v1780_v57  ;;  %vm1740_vm1 = vcmp.gt.f32.partialorder %v1613_v14, 0.0  ;;  %v1778_v1 = vmul.f32 %v3247_v52, %v1613_v14  ;;  %v1624_v34 = vadd.f32 %v2488_v56, %v3241_v49  ;;  %v1100_v53 = vpop.permute.xlu0 %1099 }
 0x170   : > { %v2430_v43 = vpack.c.bf16 %v3259_v59, %v3259_v59  ;;  %v1615_v6 = vpop.f32.mrf.mxu0  ;;  %v1351_v54 = vsel %vm1319_vm8, %v1318_v28, %v1102_v58  ;;  %v1349_v19 = vsel %vm1319_vm8, %v1316_v39, %v1100_v53 }
 0x171   : > { %v3265_v50 = vsel %vm1740_vm1, %v1613_v14, %v1778_v1  ;;  %vm1743_vm2 = vcmp.gt.f32.partialorder %v1624_v34, 0.0  ;;  %v1781_v7 = vmul.f32 %v3247_v52, %v1624_v34  ;;  %v1616_v63 = vadd.f32 %v3241_v49, %v1615_v6 }
 0x172   : > { %1973 = vst.msk [vmem:[%s3257_s26 + $0x8] sm:$0xf] %vm1970_vm0, %v2430_v43  ;;  %v2428_v61 = vpack.c.bf16 %v3265_v50, %v3265_v50  ;;  %v1134_v9 = vpop.permute.xlu1 %1133 }
 0x173   : > { %v3275_v29 = vsel %vm1743_vm2, %v1624_v34, %v1781_v7  ;;  %vm1741_vm3 = vcmp.gt.f32.partialorder %v1616_v63, 0.0  ;;  %v1779_v10 = vmul.f32 %v3247_v52, %v1616_v63  ;;  %v1132_v2 = vpop.permute.xlu0 %1131  ;;  %v1384_v3 = vsel %vm1352_vm9, %v1351_v54, %v1134_v9 }
 0x174   : > { %1971 = vst.msk [vmem:[%s3257_s26] sm:$0xf] %vm1970_vm0, %v2428_v61  ;;  %v2431_v62 = vpack.c.bf16 %v3275_v29, %v3275_v29  ;;  %v1382_v21 = vsel %vm1352_vm9, %v1349_v19, %v1132_v2 }
 0x175   : > { %v3283_v11 = vsel %vm1741_vm3, %v1616_v63, %v1779_v10 }
 0x176   : > { %1974 = vst.msk [vmem:[%s3257_s26 + $0xc] sm:$0xf] %vm1970_vm0, %v2431_v62  ;;  %v2429_v12 = vpack.c.bf16 %v3283_v11, %v3283_v11  ;;  %v1166_v5 = vpop.permute.xlu1 %1165 }
 0x177   : > { %v1164_v18 = vpop.permute.xlu0 %1163  ;;  %v1417_v36 = vsel %vm1385_vm10, %v1384_v3, %v1166_v5 }
 0x178   : > { %1972 = vst.msk [vmem:[%s3257_s26 + $0x4] sm:$0xf] %vm1970_vm0, %v2429_v12  ;;  %v1449_v26 = vsel %vm1418_vm11, %v1417_v36, %v3210_v23  ;;  %v1415_v31 = vsel %vm1385_vm10, %v1382_v21, %v1164_v18 }
 0x179   : > { %v1481_v27 = vsel %vm1450_vm12, %v1449_v26, %v3215_v17 }
 0x17a   : > { %v1226_v32 = vpop.permute.xlu1 %1225  ;;  %v1513_v40 = vsel %vm1482_vm13, %v1481_v27, %v3234_v24 }
 0x17b   : > { %v1196_v16 = vpop.permute.xlu0 %1195 }
 0x17c   : > { %v1448_v0 = vsel %vm1418_vm11, %v1415_v31, %v1196_v16 }
 0x17d   : > { %v1480_v33 = vsel %vm1450_vm12, %v1448_v0, %v1226_v32 }
 0x17f   : > { %v1256_v13 = vpop.permute.xlu0 %1255 }
 0x180   : > { %v1512_v4 = vsel %vm1482_vm13, %v1480_v33, %v1256_v13 }
 0x181   : > { %2513 = vmatprep.mubr.msk.bf16.mxu1 %vm1541_vm14, %v1512_v4 }
 0x182   : > { %2514 = vmatmul.mubr.msk.bf16.gmra.mxu1 %vm1541_vm14, %v1513_v40 }
 0x189   : > { %v2491_v23 = vpop.f32.mrf.mxu0 }
 0x18a   : > { %v1637_v41 = vadd.f32 %v2491_v23, %v3241_v49 }
 0x18b   : > { %v1628_v45 = vpop.f32.mrf.mxu0 }
 0x18c   : > { %vm1746_vm4 = vcmp.gt.f32.partialorder %v1637_v41, 0.0  ;;  %v1784_v17 = vmul.f32 %v3247_v52, %v1637_v41  ;;  %v1629_v30 = vadd.f32 %v3241_v49, %v1628_v45 }
 0x18d   : > { %v2492_v25 = vpop.f32.mrf.mxu0 }
 0x18e   : > { %v3314_v38 = vsel %vm1746_vm4, %v1637_v41, %v1784_v17  ;;  %vm1744_vm5 = vcmp.gt.f32.partialorder %v1629_v30, 0.0  ;;  %v1782_v46 = vmul.f32 %v3247_v52, %v1629_v30  ;;  %v1640_v60 = vadd.f32 %v2492_v25, %v3241_v49 }
 0x18f   : > { %v2434_v35 = vpack.c.bf16 %v3314_v38, %v3314_v38  ;;  %v1631_v47 = vpop.f32.mrf.mxu0 }
 0x190   : > { %v3320_v22 = vsel %vm1744_vm5, %v1629_v30, %v1782_v46  ;;  %vm1747_vm6 = vcmp.gt.f32.partialorder %v1640_v60, 0.0  ;;  %v1785_v20 = vmul.f32 %v3247_v52, %v1640_v60  ;;  %v1632_v24 = vadd.f32 %v3241_v49, %v1631_v47 }
 0x191   : > { %1977 = vst.msk [vmem:[%s3257_s26 + $0x18] sm:$0xf] %vm1970_vm0, %v2434_v35  ;;  %v2432_v42 = vpack.c.bf16 %v3320_v22, %v3320_v22 }
 0x192   : > { %v3328_v51 = vsel %vm1747_vm6, %v1640_v60, %v1785_v20  ;;  %vm1745_vm8 = vcmp.gt.f32.partialorder %v1632_v24, 0.0  ;;  %v1783_v55 = vmul.f32 %v3247_v52, %v1632_v24 }
 0x193   : > { %1975 = vst.msk [vmem:[%s3257_s26 + $0x10] sm:$0xf] %vm1970_vm0, %v2432_v42  ;;  %v2435_v48 = vpack.c.bf16 %v3328_v51, %v3328_v51 }
 0x194   : > { %v3335_v44 = vsel %vm1745_vm8, %v1632_v24, %v1783_v55 }
 0x195   : > { %1978 = vst.msk [vmem:[%s3257_s26 + $0x1c] sm:$0xf] %vm1970_vm0, %v2435_v48  ;;  %v2433_v37 = vpack.c.bf16 %v3335_v44, %v3335_v44 }
 0x197   : > { %1976 = vst.msk [vmem:[%s3257_s26 + $0x14] sm:$0xf] %vm1970_vm0, %v2433_v37 }
 0x1a9   : > { %v2495_v57 = vpop.f32.mrf.mxu0 }
 0x1aa   : > { %v1653_v14 = vadd.f32 %v2495_v57, %v3241_v49 }
 0x1ab   : > { %v1644_v56 = vpop.f32.mrf.mxu0 }
 0x1ac   : > { %vm1750_vm9 = vcmp.gt.f32.partialorder %v1653_v14, 0.0  ;;  %v1788_v58 = vmul.f32 %v3247_v52, %v1653_v14  ;;  %v1645_v1 = vadd.f32 %v3241_v49, %v1644_v56 }
 0x1ad   : > { %v2496_v34 = vpop.f32.mrf.mxu0 }
 0x1ae   : > { %v3346_v53 = vsel %vm1750_vm9, %v1653_v14, %v1788_v58  ;;  %vm1748_vm10 = vcmp.gt.f32.partialorder %v1645_v1, 0.0  ;;  %v1786_v43 = vmul.f32 %v3247_v52, %v1645_v1  ;;  %v1656_v6 = vadd.f32 %v2496_v34, %v3241_v49 }
 0x1af   : > { %v2438_v7 = vpack.c.bf16 %v3346_v53, %v3346_v53  ;;  %v1647_v63 = vpop.f32.mrf.mxu0 }
 0x1b0   : > { %v3352_v8 = vsel %vm1748_vm10, %v1645_v1, %v1786_v43  ;;  %vm1751_vm11 = vcmp.gt.f32.partialorder %v1656_v6, 0.0  ;;  %v1789_v61 = vmul.f32 %v3247_v52, %v1656_v6  ;;  %v1648_v9 = vadd.f32 %v3241_v49, %v1647_v63 }
 0x1b1   : > { %1981 = vst.msk [vmem:[%s3257_s26 + $0x28] sm:$0xf] %vm1970_vm0, %v2438_v7  ;;  %v2436_v10 = vpack.c.bf16 %v3352_v8, %v3352_v8  ;;  %v2004_v43 = vsel %vm1288_vm7, %v3283_v11, 0.0  ;;  %v2006_v63 = vsel %vm1288_vm7, %v3259_v59, 0.0 }
 0x1b2   : > { %v3360_v2 = vsel %vm1751_vm11, %v1656_v6, %v1789_v61  ;;  %vm1749_vm12 = vcmp.gt.f32.partialorder %v1648_v9, 0.0  ;;  %v1787_v62 = vmul.f32 %v3247_v52, %v1648_v9  ;;  %v2003_v6 = vsel %vm1288_vm7, %v3265_v50, 0.0 }
 0x1b3   : > { %1979 = vst.msk [vmem:[%s3257_s26 + $0x20] sm:$0xf] %vm1970_vm0, %v2436_v10  ;;  %v2439_v28 = vpack.c.bf16 %v3360_v2, %v3360_v2  ;;  %v2005_v7 = vadd.f32 %v2004_v43, %v2003_v6  ;;  %v2010_v10 = vsel %vm1288_vm7, %v3320_v22, 0.0 }
 0x1b4   : > { %v3367_v54 = vsel %vm1749_vm12, %v1648_v9, %v1787_v62  ;;  %v2008_v9 = vsel %vm1288_vm7, %v3275_v29, 0.0 }
 0x1b5   : > { %1982 = vst.msk [vmem:[%s3257_s26 + $0x2c] sm:$0xf] %vm1970_vm0, %v2439_v28  ;;  %v2437_v12 = vpack.c.bf16 %v3367_v54, %v3367_v54  ;;  %v2007_v61 = vadd.f32 %v2006_v63, %v2005_v7  ;;  %v2012_v28 = vsel %vm1288_vm7, %v3335_v44, 0.0 }
 0x1b7   : > { %1980 = vst.msk [vmem:[%s3257_s26 + $0x24] sm:$0xf] %vm1970_vm0, %v2437_v12  ;;  %v2009_v62 = vadd.f32 %v2008_v9, %v2007_v61 }
 0x1b9   : > { %v2011_v12 = vadd.f32 %v2010_v10, %v2009_v62 }
 0x1c9   : > { %v2499_v5 = vpop.f32.mrf.mxu0 }
 0x1ca   : > { %v1669_v15 = vadd.f32 %v2499_v5, %v3241_v49  ;;  %v2013_v5 = vadd.f32 %v2012_v28, %v2011_v12 }
 0x1cb   : > { %v1660_v3 = vpop.f32.mrf.mxu0 }
 0x1cc   : > { %vm1754_vm13 = vcmp.gt.f32.partialorder %v1669_v15, 0.0  ;;  %v1792_v18 = vmul.f32 %v3247_v52, %v1669_v15  ;;  %v1661_v39 = vadd.f32 %v3241_v49, %v1660_v3 }
 0x1cd   : > { %v2500_v36 = vpop.f32.mrf.mxu0 }
 0x1ce   : > { %v3378_v19 = vsel %vm1754_vm13, %v1669_v15, %v1792_v18  ;;  %vm1752_vm14 = vcmp.gt.f32.partialorder %v1661_v39, 0.0  ;;  %v1790_v21 = vmul.f32 %v3247_v52, %v1661_v39  ;;  %v1672_v26 = vadd.f32 %v2500_v36, %v3241_v49 }
 0x1cf   : > { %v2442_v31 = vpack.c.bf16 %v3378_v19, %v3378_v19  ;;  %v1663_v16 = vpop.f32.mrf.mxu0  ;;  %v2014_v15 = vsel %vm1288_vm7, %v3314_v38, 0.0  ;;  %v2016_v36 = vsel %vm1288_vm7, %v3328_v51, 0.0  ;;  %v2030_v9 = vsel %vm1288_vm7, %v3378_v19, 0.0 }
 0x1d0   : > { %v3384_v0 = vsel %vm1752_vm14, %v1661_v39, %v1790_v21  ;;  %vm1755_vm15 = vcmp.gt.f32.partialorder %v1672_v26, 0.0  ;;  %v1793_v32 = vmul.f32 %v3247_v52, %v1672_v26  ;;  %v1664_v27 = vadd.f32 %v3241_v49, %v1663_v16 }
 0x1d1   : > { %1985 = vst.msk [vmem:[%s3257_s26 + $0x38] sm:$0xf] %vm1970_vm0, %v2442_v31  ;;  %v2440_v33 = vpack.c.bf16 %v3384_v0, %v3384_v0  ;;  %v2015_v3 = vadd.f32 %v2014_v15, %v2013_v5  ;;  %v2026_v43 = vsel %vm1288_vm7, %v3384_v0, 0.0 }
 0x1d2   : > { %v3392_v13 = vsel %vm1755_vm15, %v1672_v26, %v1793_v32  ;;  %vm1753_vm1 = vcmp.gt.f32.partialorder %v1664_v27, 0.0  ;;  %v1791_v4 = vmul.f32 %v3247_v52, %v1664_v27  ;;  %v2018_v26 = vsel %vm1288_vm7, %v3352_v8, 0.0 }
 0x1d3   : > { %1983 = vst.msk [vmem:[%s3257_s26 + $0x30] sm:$0xf] %vm1970_vm0, %v2440_v33  ;;  %v2443_v40 = vpack.c.bf16 %v3392_v13, %v3392_v13  ;;  %v2017_v32 = vadd.f32 %v2016_v36, %v2015_v3  ;;  %v2032_v62 = vsel %vm1288_vm7, %v3392_v13, 0.0 }
 0x1d4   : > { %v3399_v23 = vsel %vm1753_vm1, %v1664_v27, %v1791_v4  ;;  %v2020_v27 = vsel %vm1288_vm7, %v3367_v54, 0.0 }
 0x1d5   : > { %1986 = vst.msk [vmem:[%s3257_s26 + $0x3c] sm:$0xf] %vm1970_vm0, %v2443_v40  ;;  %v2441_v41 = vpack.c.bf16 %v3399_v23, %v3399_v23  ;;  %v2028_v7 = vsel %vm1288_vm7, %v3399_v23, 0.0 }
 0x1d7   : > { %1984 = vst.msk [vmem:[%s3257_s26 + $0x34] sm:$0xf] %vm1970_vm0, %v2441_v41 }
 0x1e9   : > { %v2503_v45 = vpop.f32.mrf.mxu1 }
 0x1ea   : > { %v1685_v17 = vadd.f32 %v2503_v45, %v3241_v49  ;;  %v2019_v45 = vadd.f32 %v2018_v26, %v2017_v32 }
 0x1eb   : > { %v1676_v30 = vpop.f32.mrf.mxu1 }
 0x1ec   : > { %vm1758_vm2 = vcmp.gt.f32.partialorder %v1685_v17, 0.0  ;;  %v1796_v25 = vmul.f32 %v3247_v52, %v1685_v17  ;;  %v1677_v46 = vadd.f32 %v3241_v49, %v1676_v30 }
 0x1ed   : > { %v2504_v60 = vpop.f32.mrf.mxu1 }
 0x1ee   : > { %v3410_v35 = vsel %vm1758_vm2, %v1685_v17, %v1796_v25  ;;  %vm1756_vm3 = vcmp.gt.f32.partialorder %v1677_v46, 0.0  ;;  %v1794_v47 = vmul.f32 %v3247_v52, %v1677_v46  ;;  %v1688_v20 = vadd.f32 %v2504_v60, %v3241_v49 }
 0x1ef   : > { %v2446_v24 = vpack.c.bf16 %v3410_v35, %v3410_v35  ;;  %v1679_v42 = vpop.f32.mrf.mxu1 }
 0x1f0   : > { %v3416_v55 = vsel %vm1756_vm3, %v1677_v46, %v1794_v47  ;;  %vm1759_vm4 = vcmp.gt.f32.partialorder %v1688_v20, 0.0  ;;  %v1797_v48 = vmul.f32 %v3247_v52, %v1688_v20  ;;  %v1680_v37 = vadd.f32 %v3241_v49, %v1679_v42 }
 0x1f1   : > { %1989 = vst.msk [vmem:[%s3257_s26 + $0x48] sm:$0xf] %vm1970_vm0, %v2446_v24  ;;  %v2444_v57 = vpack.c.bf16 %v3416_v55, %v3416_v55  ;;  %v2021_v47 = vadd.f32 %v2020_v27, %v2019_v45  ;;  %v2034_v28 = vsel %vm1288_vm7, %v3416_v55, 0.0 }
 0x1f2   : > { %v3424_v14 = vsel %vm1759_vm4, %v1688_v20, %v1797_v48  ;;  %vm1757_vm5 = vcmp.gt.f32.partialorder %v1680_v37, 0.0  ;;  %v1795_v56 = vmul.f32 %v3247_v52, %v1680_v37  ;;  %vm2105_vm4 = vcmask 57344  }
 0x1f3   : > { %1987 = vst.msk [vmem:[%s3257_s26 + $0x40] sm:$0xf] %vm1970_vm0, %v2444_v57  ;;  %v2447_v58 = vpack.c.bf16 %v3424_v14, %v3424_v14 }
 0x1f4   : > { %v3431_v1 = vsel %vm1757_vm5, %v1680_v37, %v1795_v56  ;;  %v2022_v37 = vsel %vm1288_vm7, %v3346_v53, 0.0 }
 0x1f5   : > { %1990 = vst.msk [vmem:[%s3257_s26 + $0x4c] sm:$0xf] %vm1970_vm0, %v2447_v58  ;;  %v2445_v34 = vpack.c.bf16 %v3431_v1, %v3431_v1  ;;  %v2023_v56 = vadd.f32 %v2022_v37, %v2021_v47  ;;  %v2036_v5 = vsel %vm1288_vm7, %v3431_v1, 0.0 }
 0x1f7   : > { %1988 = vst.msk [vmem:[%s3257_s26 + $0x44] sm:$0xf] %vm1970_vm0, %v2445_v34  ;;  %v2024_v34 = vsel %vm1288_vm7, %v3360_v2, 0.0 }
 0x1f8   : > { %v2025_v6 = vadd.f32 %v2024_v34, %v2023_v56 }
 0x1fa   : > { %v2027_v63 = vadd.f32 %v2026_v43, %v2025_v6 }
 0x1fc   : > { %v2029_v61 = vadd.f32 %v2028_v7, %v2027_v63 }
 0x1fe   : > { %v2031_v10 = vadd.f32 %v2030_v9, %v2029_v61 }
 0x200   : > { %v2033_v12 = vadd.f32 %v2032_v62, %v2031_v10 }
 0x202   : > { %v2035_v15 = vadd.f32 %v2034_v28, %v2033_v12 }
 0x204   : > { %v2037_v3 = vadd.f32 %v2036_v5, %v2035_v15 }
 0x209   : > { %v2507_v18 = vpop.f32.mrf.mxu1 }
 0x20a   : > { %v1701_v39 = vadd.f32 %v2507_v18, %v3241_v49 }
 0x20b   : > { %v1692_v21 = vpop.f32.mrf.mxu1 }
 0x20c   : > { %vm1762_vm6 = vcmp.gt.f32.partialorder %v1701_v39, 0.0  ;;  %v1800_v31 = vmul.f32 %v3247_v52, %v1701_v39  ;;  %v1693_v16 = vadd.f32 %v3241_v49, %v1692_v21  ;;  %v2038_v21 = vsel %vm1288_vm7, %v3410_v35, 0.0 }
 0x20d   : > { %v2508_v33 = vpop.f32.mrf.mxu1 }
 0x20e   : > { %v3462_v4 = vsel %vm1762_vm6, %v1701_v39, %v1800_v31  ;;  %vm1760_vm8 = vcmp.gt.f32.partialorder %v1693_v16, 0.0  ;;  %v1798_v40 = vmul.f32 %v3247_v52, %v1693_v16  ;;  %v1704_v41 = vadd.f32 %v2508_v33, %v3241_v49 }
 0x20f   : > { %v2450_v17 = vpack.c.bf16 %v3462_v4, %v3462_v4  ;;  %v1695_v30 = vpop.f32.mrf.mxu1  ;;  %v2046_v63 = vsel %vm1288_vm7, %v3462_v4, 0.0 }
 0x210   : > { %v3468_v25 = vsel %vm1760_vm8, %v1693_v16, %v1798_v40  ;;  %vm1763_vm9 = vcmp.gt.f32.partialorder %v1704_v41, 0.0  ;;  %v1801_v46 = vmul.f32 %v3247_v52, %v1704_v41  ;;  %v1696_v60 = vadd.f32 %v3241_v49, %v1695_v30 }
 0x211   : > { %1993 = vst.msk [vmem:[%s3257_s26 + $0x58] sm:$0xf] %vm1970_vm0, %v2450_v17  ;;  %v2448_v20 = vpack.c.bf16 %v3468_v25, %v3468_v25  ;;  %v2039_v16 = vadd.f32 %v2038_v21, %v2037_v3  ;;  %v2042_v47 = vsel %vm1288_vm7, %v3468_v25, 0.0 }
 0x212   : > { %v3476_v24 = vsel %vm1763_vm9, %v1704_v41, %v1801_v46  ;;  %vm1761_vm10 = vcmp.gt.f32.partialorder %v1696_v60, 0.0  ;;  %v1799_v42 = vmul.f32 %v3247_v52, %v1696_v60 }
 0x213   : > { %1991 = vst.msk [vmem:[%s3257_s26 + $0x50] sm:$0xf] %vm1970_vm0, %v2448_v20  ;;  %v2451_v48 = vpack.c.bf16 %v3476_v24, %v3476_v24  ;;  %v2048_v9 = vsel %vm1288_vm7, %v3476_v24, 0.0 }
 0x214   : > { %v3485_v57 = vsel %vm1761_vm10, %v1696_v60, %v1799_v42  ;;  %v2040_v60 = vsel %vm1288_vm7, %v3424_v14, 0.0 }
 0x215   : > { %1994 = vst.msk [vmem:[%s3257_s26 + $0x5c] sm:$0xf] %vm1970_vm0, %v2451_v48  ;;  %v2449_v58 = vpack.c.bf16 %v3485_v57, %v3485_v57  ;;  %v2041_v42 = vadd.f32 %v2040_v60, %v2039_v16  ;;  %v2044_v56 = vsel %vm1288_vm7, %v3485_v57, 0.0 }
 0x217   : > { %1992 = vst.msk [vmem:[%s3257_s26 + $0x54] sm:$0xf] %vm1970_vm0, %v2449_v58  ;;  %v2043_v34 = vadd.f32 %v2042_v47, %v2041_v42 }
 0x219   : > { %v2045_v7 = vadd.f32 %v2044_v56, %v2043_v34 }
 0x21b   : > { %v2047_v61 = vadd.f32 %v2046_v63, %v2045_v7 }
 0x21d   : > { %v2049_v62 = vadd.f32 %v2048_v9, %v2047_v61 }
 0x229   : > { %v2511_v18 = vpop.f32.mrf.mxu1 }
 0x22a   : > { %v1717_v39 = vadd.f32 %v2511_v18, %v3241_v49 }
 0x22b   : > { %v1708_v36 = vpop.f32.mrf.mxu1 }
 0x22c   : > { %vm1766_vm11 = vcmp.gt.f32.partialorder %v1717_v39, 0.0  ;;  %v1804_v26 = vmul.f32 %v3247_v52, %v1717_v39  ;;  %v1709_v31 = vadd.f32 %v3241_v49, %v1708_v36 }
 0x22d   : > { %v2512_v32 = vpop.f32.mrf.mxu1 }
 0x22e   : > { %v3512_v27 = vsel %vm1766_vm11, %v1717_v39, %v1804_v26  ;;  %vm1764_vm12 = vcmp.gt.f32.partialorder %v1709_v31, 0.0  ;;  %v1802_v33 = vmul.f32 %v3247_v52, %v1709_v31  ;;  %v1720_v40 = vadd.f32 %v2512_v32, %v3241_v49 }
 0x22f   : > { %v2454_v41 = vpack.c.bf16 %v3512_v27, %v3512_v27  ;;  %v1711_v45 = vpop.f32.mrf.mxu1  ;;  %v2054_v39 = vsel %vm1288_vm7, %v3512_v27, 0.0 }
 0x230   : > { %v3518_v17 = vsel %vm1764_vm12, %v1709_v31, %v1802_v33  ;;  %vm1767_vm13 = vcmp.gt.f32.partialorder %v1720_v40, 0.0  ;;  %v1805_v30 = vmul.f32 %v3247_v52, %v1720_v40  ;;  %v1712_v46 = vadd.f32 %v3241_v49, %v1711_v45 }
 0x231   : > { %1997 = vst.msk [vmem:[%s3257_s26 + $0x68] sm:$0xf] %vm1970_vm0, %v2454_v41  ;;  %v2452_v20 = vpack.c.bf16 %v3518_v17, %v3518_v17  ;;  %v2050_v10 = vsel %vm1288_vm7, %v3518_v17, 0.0 }
 0x232   : > { %v3530_v48 = vsel %vm1767_vm13, %v1720_v40, %v1805_v30  ;;  %vm1765_vm14 = vcmp.gt.f32.partialorder %v1712_v46, 0.0  ;;  %v1803_v37 = vmul.f32 %v3247_v52, %v1712_v46  ;;  %v2051_v12 = vadd.f32 %v2050_v10, %v2049_v62 }
 0x233   : > { %1995 = vst.msk [vmem:[%s3257_s26 + $0x60] sm:$0xf] %vm1970_vm0, %v2452_v20  ;;  %v2455_v58 = vpack.c.bf16 %v3530_v48, %v3530_v48  ;;  %v2056_v60 = vsel %vm1288_vm7, %v3530_v48, 0.0 }
 0x234   : > { %v3539_v43 = vsel %vm1765_vm14, %v1712_v46, %v1803_v37 }
 0x235   : > { %1998 = vst.msk [vmem:[%s3257_s26 + $0x6c] sm:$0xf] %vm1970_vm0, %v2455_v58  ;;  %v2453_v6 = vpack.c.bf16 %v3539_v43, %v3539_v43  ;;  %v2052_v28 = vsel %vm1288_vm7, %v3539_v43, 0.0 }
 0x236   : > { %v2053_v5 = vadd.f32 %v2052_v28, %v2051_v12 }
 0x237   : > { %1996 = vst.msk [vmem:[%s3257_s26 + $0x64] sm:$0xf] %vm1970_vm0, %v2453_v6 }
 0x238   : > { %v2055_v26 = vadd.f32 %v2054_v39, %v2053_v5 }
 0x23a   : > { %v2057_v42 = vadd.f32 %v2056_v60, %v2055_v26 }
 0x242   : > { %v2515_v15 = vpop.f32.mrf.mxu1 }
 0x243   : > { %v1733_v3 = vadd.f32 %v2515_v15, %v3241_v49 }
 0x244   : > { %v1724_v18 = vpop.f32.mrf.mxu1 }
 0x245   : > { %vm1770_vm15 = vcmp.gt.f32.partialorder %v1733_v3, 0.0  ;;  %v1808_v36 = vmul.f32 %v3247_v52, %v1733_v3  ;;  %v1725_v21 = vadd.f32 %v3241_v49, %v1724_v18 }
 0x246   : > { %v2516_v31 = vpop.f32.mrf.mxu1 }
 0x247   : > { %v3560_v16 = vsel %vm1770_vm15, %v1733_v3, %v1808_v36  ;;  %vm1768_vm1 = vcmp.gt.f32.partialorder %v1725_v21, 0.0  ;;  %v1806_v32 = vmul.f32 %v3247_v52, %v1725_v21  ;;  %v1736_v33 = vadd.f32 %v2516_v31, %v3241_v49 }
 0x248   : > { %v2458_v40 = vpack.c.bf16 %v3560_v16, %v3560_v16  ;;  %v1727_v41 = vpop.f32.mrf.mxu1 }
 0x249   : > { %v3566_v45 = vsel %vm1768_vm1, %v1725_v21, %v1806_v32  ;;  %vm1771_vm2 = vcmp.gt.f32.partialorder %v1736_v33, 0.0  ;;  %v1809_v30 = vmul.f32 %v3247_v52, %v1736_v33  ;;  %v1728_v46 = vadd.f32 %v3241_v49, %v1727_v41 }
 0x24a   : > { %2001 = vst.msk [vmem:[%s3257_s26 + $0x78] sm:$0xf] %vm1970_vm0, %v2458_v40  ;;  %v2456_v47 = vpack.c.bf16 %v3566_v45, %v3566_v45  ;;  %v2058_v20 = vsel %vm1288_vm7, %v3566_v45, 0.0 }
 0x24b   : > { %v3578_v37 = vsel %vm1771_vm2, %v1736_v33, %v1809_v30  ;;  %vm1769_vm3 = vcmp.gt.f32.partialorder %v1728_v46, 0.0  ;;  %v1807_v56 = vmul.f32 %v3247_v52, %v1728_v46  ;;  %v2059_v58 = vadd.f32 %v2058_v20, %v2057_v42 }
 0x24c   : > { %1999 = vst.msk [vmem:[%s3257_s26 + $0x70] sm:$0xf] %vm1970_vm0, %v2456_v47  ;;  %v2459_v49 = vpack.c.bf16 %v3578_v37, %v3578_v37  ;;  %v2062_v52 = vsel %vm1288_vm7, %v3560_v16, 0.0  ;;  %v2064_v9 = vsel %vm1288_vm7, %v3578_v37, 0.0 }
 0x24d   : > { %v3585_v34 = vsel %vm1769_vm3, %v1728_v46, %v1807_v56 }
 0x24e   : > { %2002 = vst.msk [vmem:[%s3257_s26 + $0x7c] sm:$0xf] %vm1970_vm0, %v2459_v49  ;;  %v2457_v6 = vpack.c.bf16 %v3585_v34, %v3585_v34  ;;  %v2060_v7 = vsel %vm1288_vm7, %v3585_v34, 0.0 }
 0x24f   : > { %v2061_v63 = vadd.f32 %v2060_v7, %v2059_v58 }
 0x250   : > { %2000 = vst.msk [vmem:[%s3257_s26 + $0x74] sm:$0xf] %vm1970_vm0, %v2457_v6 }
 0x251   : > { %v2063_v61 = vadd.f32 %v2062_v52, %v2061_v63 }
 0x253   : > { %v2065_v10 = vadd.f32 %v2064_v9, %v2063_v61 }
 0x255   : > { %v2066_v62 = vrot.slane %v2065_v10, 4 }
 0x257   : > { %v2067_v28 = vadd.f32 %v2066_v62, %v2065_v10 }
 0x259   : > { %v2068_v12 = vrot.slane %v2067_v28, 2 }
 0x25b   : > { %v2069_v5 = vadd.f32 %v2068_v12, %v2067_v28 }
 0x25d   : > { %v2070_v15 = vrot.slane %v2069_v5, 1 }
 0x25f   : > { %v2071_v3 = vadd.f32 %v2070_v15, %v2069_v5 }
 0x261   : > { %2106 = vst.msk [vmem:[%s265_s28] sm:$0x1] %vm2105_vm4, %v2071_v3  ;;  %v3604_v18 = vmul.f32 0.00390625, %v2071_v3 }
 0x263   : > { %v2073_v39 = vsub.f32 %v3265_v50, %v3604_v18  ;;  %v2074_v36 = vsub.f32 %v3283_v11, %v3604_v18  ;;  %v2075_v21 = vsub.f32 %v3259_v59, %v3604_v18  ;;  %v2076_v26 = vsub.f32 %v3275_v29, %v3604_v18 }
 0x264   : > { %v2077_v33 = vsub.f32 %v3320_v22, %v3604_v18  ;;  %v2078_v41 = vsub.f32 %v3335_v44, %v3604_v18  ;;  %v2079_v59 = vsub.f32 %v3314_v38, %v3604_v18  ;;  %v2080_v22 = vsub.f32 %v3328_v51, %v3604_v18 }
 0x265   : > { %v2107_v31 = vmul.f32 %v2073_v39, %v2073_v39  ;;  %v2108_v32 = vmul.f32 %v2074_v36, %v2074_v36  ;;  %v2109_v40 = vmul.f32 %v2075_v21, %v2075_v21  ;;  %v2110_v30 = vmul.f32 %v2076_v26, %v2076_v26 }
 0x266   : > { %v2111_v60 = vmul.f32 %v2077_v33, %v2077_v33  ;;  %v2112_v20 = vmul.f32 %v2078_v41, %v2078_v41  ;;  %v2081_v56 = vsub.f32 %v3352_v8, %v3604_v18  ;;  %v2113_v49 = vmul.f32 %v2079_v59, %v2079_v59 }
 0x267   : > { %v2139_v50 = vsel %vm1288_vm7, %v2107_v31, 0.0  ;;  %v2140_v11 = vsel %vm1288_vm7, %v2108_v32, 0.0  ;;  %v2142_v29 = vsel %vm1288_vm7, %v2109_v40, 0.0  ;;  %v2144_v42 = vsel %vm1288_vm7, %v2110_v30, 0.0 }
 0x268   : > { %v2141_v46 = vadd.f32 %v2140_v11, %v2139_v50  ;;  %v2146_v58 = vsel %vm1288_vm7, %v2111_v60, 0.0  ;;  %v2082_v38 = vsub.f32 %v3367_v54, %v3604_v18  ;;  %v2114_v7 = vmul.f32 %v2080_v22, %v2080_v22 }
 0x269   : > { %v2148_v63 = vsel %vm1288_vm7, %v2112_v20, 0.0  ;;  %v2083_v51 = vsub.f32 %v3346_v53, %v3604_v18  ;;  %v2115_v61 = vmul.f32 %v2081_v56, %v2081_v56  ;;  %v2150_v9 = vsel %vm1288_vm7, %v2113_v49, 0.0 }
 0x26a   : > { %v2143_v47 = vadd.f32 %v2142_v29, %v2141_v46  ;;  %v2084_v8 = vsub.f32 %v3360_v2, %v3604_v18  ;;  %v2116_v62 = vmul.f32 %v2082_v38, %v2082_v38  ;;  %v2152_v28 = vsel %vm1288_vm7, %v2114_v7, 0.0 }
 0x26b   : > { %v2085_v54 = vsub.f32 %v3384_v0, %v3604_v18  ;;  %v2117_v5 = vmul.f32 %v2083_v51, %v2083_v51  ;;  %v2154_v15 = vsel %vm1288_vm7, %v2115_v61, 0.0  ;;  %v2086_v53 = vsub.f32 %v3399_v23, %v3604_v18 }
 0x26c   : > { %v2145_v44 = vadd.f32 %v2144_v42, %v2143_v47  ;;  %v2118_v39 = vmul.f32 %v2084_v8, %v2084_v8  ;;  %v2156_v36 = vsel %vm1288_vm7, %v2116_v62, 0.0  ;;  %v2087_v2 = vsub.f32 %v3378_v19, %v3604_v18 }
 0x26d   : > { %v2119_v26 = vmul.f32 %v2085_v54, %v2085_v54  ;;  %v2158_v31 = vsel %vm1288_vm7, %v2117_v5, 0.0  ;;  %v2088_v0 = vsub.f32 %v3392_v13, %v3604_v18  ;;  %v2120_v33 = vmul.f32 %v2086_v53, %v2086_v53 }
 0x26e   : > { %v2147_v6 = vadd.f32 %v2146_v58, %v2145_v44  ;;  %v2160_v40 = vsel %vm1288_vm7, %v2118_v39, 0.0  ;;  %v2089_v23 = vsub.f32 %v3416_v55, %v3604_v18  ;;  %v2121_v30 = vmul.f32 %v2087_v2, %v2087_v2 }
 0x26f   : > { %v2162_v50 = vsel %vm1288_vm7, %v2119_v26, 0.0  ;;  %v2090_v19 = vsub.f32 %v3431_v1, %v3604_v18  ;;  %v2122_v46 = vmul.f32 %v2088_v0, %v2088_v0  ;;  %v2164_v59 = vsel %vm1288_vm7, %v2120_v33, 0.0 }
 0x270   : > { %v2149_v52 = vadd.f32 %v2148_v63, %v2147_v6  ;;  %v2091_v13 = vsub.f32 %v3410_v35, %v3604_v18  ;;  %v2123_v29 = vmul.f32 %v2089_v23, %v2089_v23  ;;  %v2166_v47 = vsel %vm1288_vm7, %v2121_v30, 0.0 }
 0x271   : > { %v2092_v55 = vsub.f32 %v3424_v14, %v3604_v18  ;;  %v2124_v20 = vmul.f32 %v2090_v19, %v2090_v19  ;;  %v2168_v42 = vsel %vm1288_vm7, %v2122_v46, 0.0  ;;  %v2093_v1 = vsub.f32 %v3468_v25, %v3604_v18 }
 0x272   : > { %v2151_v10 = vadd.f32 %v2150_v9, %v2149_v52  ;;  %v2125_v56 = vmul.f32 %v2091_v13, %v2091_v13  ;;  %v2170_v49 = vsel %vm1288_vm7, %v2123_v29, 0.0  ;;  %v2094_v35 = vsub.f32 %v3485_v57, %v3604_v18 }
 0x273   : > { %v2126_v6 = vmul.f32 %v2092_v55, %v2092_v55  ;;  %v2172_v38 = vsel %vm1288_vm7, %v2124_v20, 0.0  ;;  %v2095_v14 = vsub.f32 %v3462_v4, %v3604_v18  ;;  %v2127_v63 = vmul.f32 %v2093_v1, %v2093_v1 }
 0x274   : > { %v2153_v12 = vadd.f32 %v2152_v28, %v2151_v10  ;;  %v2174_v52 = vsel %vm1288_vm7, %v2125_v56, 0.0  ;;  %v2096_v25 = vsub.f32 %v3476_v24, %v3604_v18  ;;  %v2128_v61 = vmul.f32 %v2094_v35, %v2094_v35 }
 0x275   : > { %v2176_v9 = vsel %vm1288_vm7, %v2126_v6, 0.0  ;;  %v2097_v57 = vsub.f32 %v3518_v17, %v3604_v18  ;;  %v2129_v8 = vmul.f32 %v2095_v14, %v2095_v14  ;;  %v2178_v62 = vsel %vm1288_vm7, %v2127_v63, 0.0 }
 0x276   : > { %v2155_v3 = vadd.f32 %v2154_v15, %v2153_v12  ;;  %v2098_v4 = vsub.f32 %v3539_v43, %v3604_v18  ;;  %v2130_v12 = vmul.f32 %v2096_v25, %v2096_v25  ;;  %v2180_v54 = vsel %vm1288_vm7, %v2128_v61, 0.0 }
 0x277   : > { %v2099_v24 = vsub.f32 %v3512_v27, %v3604_v18  ;;  %v2131_v15 = vmul.f32 %v2097_v57, %v2097_v57  ;;  %v2100_v17 = vsub.f32 %v3530_v48, %v3604_v18  ;;  %v2101_v43 = vsub.f32 %v3566_v45, %v3604_v18 }
 0x278   : > { %v2157_v21 = vadd.f32 %v2156_v36, %v2155_v3  ;;  %v2182_v3 = vsel %vm1288_vm7, %v2129_v8, 0.0  ;;  %v2132_v39 = vmul.f32 %v2098_v4, %v2098_v4  ;;  %v2184_v36 = vsel %vm1288_vm7, %v2130_v12, 0.0 }
 0x279   : > { %v2133_v2 = vmul.f32 %v2099_v24, %v2099_v24  ;;  %v2186_v26 = vsel %vm1288_vm7, %v2131_v15, 0.0  ;;  %v2102_v27 = vsub.f32 %v3585_v34, %v3604_v18  ;;  %v2103_v48 = vsub.f32 %v3560_v16, %v3604_v18 }
 0x27a   : > { %v2159_v32 = vadd.f32 %v2158_v31, %v2157_v21  ;;  %v2188_v0 = vsel %vm1288_vm7, %v2132_v39, 0.0  ;;  %v2104_v45 = vsub.f32 %v3578_v37, %v3604_v18 }
 0x27b   : > { %v2136_v30 = vmul.f32 %v2102_v27, %v2102_v27  ;;  %v2137_v34 = vmul.f32 %v2103_v48, %v2103_v48 }
 0x27c   : > { %v2161_v41 = vadd.f32 %v2160_v40, %v2159_v32  ;;  %v2134_v32 = vmul.f32 %v2100_v17, %v2100_v17  ;;  %v2135_v40 = vmul.f32 %v2101_v43, %v2101_v43 }
 0x27d   : > { %v2198_v13 = vsel %vm1288_vm7, %v2137_v34, 0.0 }
 0x27e   : > { %v2163_v11 = vadd.f32 %v2162_v50, %v2161_v41  ;;  %v2190_v41 = vsel %vm1288_vm7, %v2133_v2, 0.0  ;;  %v2192_v50 = vsel %vm1288_vm7, %v2134_v32, 0.0  ;;  %v2194_v19 = vsel %vm1288_vm7, %v2135_v40, 0.0 }
 0x280   : > { %v2165_v60 = vadd.f32 %v2164_v59, %v2163_v11  ;;  %v2138_v59 = vmul.f32 %v2104_v45, %v2104_v45 }
 0x282   : > { %v2167_v22 = vadd.f32 %v2166_v47, %v2165_v60  ;;  %v2196_v60 = vsel %vm1288_vm7, %v2136_v30, 0.0  ;;  %v2200_v47 = vsel %vm1288_vm7, %v2138_v59, 0.0 }
 0x284   : > { %v2169_v44 = vadd.f32 %v2168_v42, %v2167_v22 }
 0x286   : > { %v2171_v58 = vadd.f32 %v2170_v49, %v2169_v44 }
 0x288   : > { %v2173_v7 = vadd.f32 %v2172_v38, %v2171_v58 }
 0x28a   : > { %v2175_v51 = vadd.f32 %v2174_v52, %v2173_v7 }
 0x28c   : > { %v2177_v10 = vadd.f32 %v2176_v9, %v2175_v51 }
 0x28e   : > { %v2179_v28 = vadd.f32 %v2178_v62, %v2177_v10 }
 0x290   : > { %v2181_v5 = vadd.f32 %v2180_v54, %v2179_v28 }
 0x292   : > { %v2183_v53 = vadd.f32 %v2182_v3, %v2181_v5 }
 0x294   : > { %v2185_v21 = vadd.f32 %v2184_v36, %v2183_v53 }
 0x296   : > { %v2187_v31 = vadd.f32 %v2186_v26, %v2185_v21 }
 0x298   : > { %v2189_v33 = vadd.f32 %v2188_v0, %v2187_v31 }
 0x29a   : > { %v2191_v23 = vadd.f32 %v2190_v41, %v2189_v33 }
 0x29c   : > { %v2193_v11 = vadd.f32 %v2192_v50, %v2191_v23 }
 0x29e   : > { %v2195_v46 = vadd.f32 %v2194_v19, %v2193_v11 }
 0x2a0   : > { %v2197_v16 = vadd.f32 %v2196_v60, %v2195_v46 }
 0x2a2   : > { %v2199_v29 = vadd.f32 %v2198_v13, %v2197_v16 }
 0x2a4   : > { %v2201_v22 = vadd.f32 %v2200_v47, %v2199_v29 }
 0x2a6   : > { %v2202_v37 = vrot.slane %v2201_v22, 4 }
 0x2a8   : > { %v2203_v18 = vadd.f32 %v2202_v37, %v2201_v22 }
 0x2aa   : > { %v2204_v55 = vrot.slane %v2203_v18, 2 }
 0x2ac   : > { %v2205_v20 = vadd.f32 %v2204_v55, %v2203_v18 }
 0x2ae   : > { %v2206_v42 = vrot.slane %v2205_v20, 1 }
 0x2b0   : > { %v2207_v44 = vadd.f32 %v2206_v42, %v2205_v20 }
 0x2b2   : > { %2208 = vst.msk [vmem:[%s268_s7] sm:$0x1] %vm2105_vm4, %v2207_v44 }
 0x2b3 PF: > { %s17_s21 = sadd.s32 1, %s2598_s21  }
 0x2b4   : > { %p14_p4 = scmp.ge.s32.totalorder %s17_s21, 4  }
 0x2b6   :  { %16 = sbr.rel (!%p14_p4) target bundleno = 1 (0x1), region = 90 }

// kernel: encoding_block_forward.4
= control target key start
LH: loop header
LB: loop body
LE: loop exit
PB: predicated region body
PF: predicated region fallthrough
CT: control target
= control target key end

     0   :  { %s2673_s21 = smov 0   ;;  %s3746_s0 = inlined_call_operand.vmem [shape: bf16[2,16,16,8], index: 0, kind: input, shape index: {}]   ;;  %s3747_s1 = inlined_call_operand.vmem [shape: bf16[72,8], index: 1, kind: input, shape index: {}]   ;;  %s3748_s2 = inlined_call_operand.vmem [shape: f32[1,8], index: 2, kind: input, shape index: {}]   ;;  %s3749_s3 = inlined_call_operand.vmem [shape: f32[1,8], index: 3, kind: input, shape index: {}]   ;;  %s3750_s4 = inlined_call_operand.vmem [shape: bf16[2,16,16,8], index: 4, kind: output, shape index: {0}]   ;;  %s3751_s5 = inlined_call_operand.vmem [shape: f32[2,1,8], index: 5, kind: output, shape index: {1}]   ;;  %s3752_s6 = inlined_call_operand.vmem [shape: f32[2,1,8], index: 6, kind: output, shape index: {2}]  }
   0x1 LB: > { %s2330_s22 = sadd.s32 4294967295, %s2628_s21   ;;  %p2334_p0 = scmp.ge.s32.totalorder %s2628_s21, 1  ;;  %s2628_s21 = sphi %s2673_s21, %s17_s21  }
   0x2   : > { %p217_p1 = scmp.lt.s32.totalorder %s2628_s21, 3 }
   0x4   : > { %p218_p2 = pnand %p2334_p0, %p217_p1 }
   0x5   : > { %p253_p3 = scmp.lt.s32.totalorder (!%p218_p2), %s2330_s22, 1  ;;  %s2630_s27 = smov (!%p218_p2), 24  }
   0x6   : > { %221 = sbr.rel (%p218_p2) target bundleno = 691 (0x2b3), region = 36  ;;  %s2631_s28 = smov (!%p218_p2), 48  }
   0x7   : > { %s2632_s29 = smov (!%p218_p2), 16   ;;  %s2633_s30 = smov (!%p218_p2), 40  }
   0x8   : > { %s2634_s7 = smov (!%p218_p2), 8   ;;  %s2635_s8 = smov (!%p218_p2), 32  }
   0x9   : > { %s2636_s9 = smov (!%p218_p2), 56   ;;  %s2637_s10 = smov (!%p218_p2), 64  }
   0xb   : > { %s3756_s22 = smov (!%p253_p3, %s2330_s22), 1  ;;  %vm702_vm0 = vcmask 1040384   ;;  %vm703_vm1 = vsmask.f32 256  ;;  %vm948_vm3 = vcmask 1046528   ;;  %vm1590_vm5 = vcmask 1043456  }
   0xc   : > { %s2444_s23 = sshll.u32 %s3756_s22, 7  ;;  %vm2697_vm2 = vmand %vm702_vm0, %vm703_vm1  ;;  %vm737_vm4 = vsmask.f32 7424  ;;  %vm1257_vm6 = vcmask 64512   ;;  %vm1288_vm7 = vcmask 130048   ;;  %vm1319_vm8 = vcmask 195584   ;;  %s268_s11 = scalar_lea.vmem %s3752_s6, %s3756_s22 }
   0xd   : > { %s2689_s26 = scalar_lea.vmem %s3746_s0, %s2444_s23  ;;  %vm1352_vm9 = vcmask 261120   ;;  %vm1385_vm10 = vcmask 326656   ;;  %vm1418_vm11 = vcmask 392192   ;;  %vm1450_vm12 = vcmask 457728  }
   0xe   : > { %v272_v0 = vld [vmem:[%s2689_s26 + $0x8] sm:$0xf]  ;;  %v273_v1 = vld [vmem:[%s2689_s26 + $0xc] sm:$0xf]  ;;  %v270_v2 = vld [vmem:[%s2689_s26] sm:$0xf] }
   0xf   : > { %v2339_v3 = vcombine.low %v272_v0, %v272_v0  ;;  %v2355_v4 = vcombine.low %v272_v0, %v273_v1  ;;  %v271_v5 = vld [vmem:[%s2689_s26 + $0x4] sm:$0xf]  ;;  %v2340_v6 = vcombine.low %v270_v2, %v270_v2  ;;  %v274_v7 = vld [vmem:[%s2689_s26 + $0x10] sm:$0xf]  ;;  %v275_v8 = vld [vmem:[%s2689_s26 + $0x14] sm:$0xf]  ;;  %v2371_v9 = vcombine.low %v273_v1, %v273_v1 }
  0x10   : > { %v2356_v10 = vcombine.low %v270_v2, %v271_v5  ;;  %v2341_v11 = vcombine.low %v274_v7, %v274_v7  ;;  %v2357_v12 = vcombine.low %v274_v7, %v275_v8  ;;  %v2372_v13 = vcombine.low %v271_v5, %v271_v5  ;;  %v276_v41 = vld [vmem:[%s2689_s26 + $0x18] sm:$0xf]  ;;  %v277_v46 = vld [vmem:[%s2689_s26 + $0x1c] sm:$0xf] }
  0x11   : > { %v463_v14 = vshrl.u32 %v2355_v4, 16  ;;  %v466_v15 = vshll.u32 %v2355_v4, 16  ;;  %v351_v16 = vshrl.u32 %v2339_v3, 16  ;;  %v623_v22 = vshll.u32 %v2371_v9, 16 }
  0x12   : > { %v470_v17 = vshrl.u32 %v2356_v10, 16  ;;  %v473_v18 = vshll.u32 %v2356_v10, 16  ;;  %v477_v19 = vshrl.u32 %v2357_v12, 16  ;;  %v480_v21 = vshll.u32 %v2357_v12, 16  ;;  %v279_v12 = vld [vmem:[%s2689_s26 + $0x24] sm:$0xf] }
  0x13   : > { %v465_v20 = vrot.slane %v463_v14, 7  ;;  %v627_v23 = vshll.u32 %v2372_v13, 16  ;;  %v354_v25 = vshrl.u32 %v2340_v6, 16  ;;  %v357_v27 = vshrl.u32 %v2341_v11, 16  ;;  %v278_v11 = vld [vmem:[%s2689_s26 + $0x20] sm:$0xf] }
  0x14   : > { %v472_v26 = vrot.slane %v470_v17, 7  ;;  %v479_v28 = vrot.slane %v477_v19, 7  ;;  %v625_v30 = vrot.slane %v623_v22, 3  ;;  %v2373_v34 = vcombine.low %v275_v8, %v275_v8 }
  0x15   : > { %v468_v29 = vor.u32 %v466_v15, %v465_v20  ;;  %v629_v31 = vrot.slane %v627_v23, 3  ;;  %v2358_v52 = vcombine.low %v276_v41, %v277_v46  ;;  %v2342_v6 = vcombine.low %v276_v41, %v276_v41 }
  0x16   : > { %v475_v32 = vor.u32 %v473_v18, %v472_v26  ;;  %v482_v33 = vor.u32 %v480_v21, %v479_v28  ;;  %v721_v36 = vsel %vm2697_vm2, %v465_v20, %v625_v30  ;;  %v631_v50 = vshll.u32 %v2373_v34, 16 }
  0x17   : > { %v2703_v35 = vsel %vm2697_vm2, %v351_v16, %v468_v29  ;;  %v722_v37 = vsel %vm2697_vm2, %v472_v26, %v629_v31  ;;  %v950_v42 = vrot.slane %v721_v36, 1  ;;  %v746_v48 = vshll.u32 %v721_v36, 16 }
  0x18   : > { %1073 = vrot.lane.b32.xlu1 %v2703_v35, %s2630_s27  ;;  %v2713_v38 = vsel %vm2697_vm2, %v354_v25, %v475_v32  ;;  %v2717_v39 = vsel %vm2697_vm2, %v357_v27, %v482_v33  ;;  %v949_v40 = vrot.slane %v2703_v35, 1  ;;  %v953_v44 = vrot.slane %v722_v37, 1 }
  0x19   : > { %1071 = vrot.lane.b32.xlu0 %v2713_v38, %s2630_s27  ;;  %v952_v43 = vrot.slane %v2713_v38, 1  ;;  %v741_v45 = vshll.u32 %v2703_v35, 16  ;;  %v739_v47 = vshrl.u32 %v2703_v35, 16  ;;  %v753_v49 = vshll.u32 %v2713_v38, 16 }
  0x1a   : > { %v951_v53 = vsel %vm948_vm3, %v949_v40, %v950_v42  ;;  %v751_v55 = vshrl.u32 %v2713_v38, 16  ;;  %v758_v56 = vshll.u32 %v722_v37, 16  ;;  %v748_v58 = vrot.slane %v746_v48, 1  ;;  %v2596_v37 = vld [vmem:[%s3747_s1 + $0x20] ss:$0 sps:$4 sm:$0xff]  }
  0x1b   : > { %v743_v51 = vrot.slane %v741_v45, 1  ;;  %v954_v54 = vsel %vm948_vm3, %v952_v43, %v953_v44  ;;  %v755_v59 = vrot.slane %v753_v49, 1  ;;  %v633_v60 = vrot.slane %v631_v50, 3  ;;  %2551 = vmatprep.subr.msk.bf16.mxu0 %vm1590_vm5, %v2596_v37  ;;  %2552 = vmatprep.subr.msk.bf16.mxu1 %vm1590_vm5, %v2596_v37  ;;  %v280_v48 = vld [vmem:[%s2689_s26 + $0x28] sm:$0xf] }
  0x1c   : > { %1169 = vrot.lane.b32.xlu1 %v2717_v39, %s2631_s28  ;;  %v765_v61 = vshll.u32 %v2717_v39, 16  ;;  %v484_v62 = vshrl.u32 %v2358_v52, 16  ;;  %v760_v1 = vrot.slane %v758_v56, 1  ;;  %v763_v3 = vshrl.u32 %v2717_v39, 16  ;;  %v281_v49 = vld [vmem:[%s2689_s26 + $0x2c] sm:$0xf] }
  0x1d   : > { %1167 = vrot.lane.b32.xlu0 %v2703_v35, %s2631_s28  ;;  %v744_v57 = vor.u32 %v743_v51, %v739_v47  ;;  %v756_v0 = vor.u32 %v755_v59, %v751_v55  ;;  %v723_v2 = vsel %vm2697_vm2, %v479_v28, %v633_v60  ;;  %v487_v9 = vshll.u32 %v2358_v52, 16  ;;  %v2597_v47 = vld [vmem:[%s3747_s1 + $0x18] sm:$0xff]  }
  0x1e   : > { %v767_v4 = vrot.slane %v765_v61, 1  ;;  %v770_v5 = vshll.u32 %v723_v2, 16  ;;  %v486_v8 = vrot.slane %v484_v62, 7  ;;  %v2374_v10 = vcombine.low %v277_v46, %v277_v46 }
  0x1f   : > { %v749_v63 = vsel %vm737_vm4, %v744_v57, %v748_v58  ;;  %v761_v7 = vsel %vm737_vm4, %v756_v0, %v760_v1  ;;  %v360_v15 = vshrl.u32 %v2342_v6, 16  ;;  %v2359_v18 = vcombine.low %v278_v11, %v279_v12  ;;  %v2600_v57 = vld [vmem:[%s3747_s1 + $0x10] sm:$0xff]   ;;  %v2603_v6 = vld [vmem:[%s3747_s1] sm:$0xff]  }
  0x20   : > { %1041 = vrot.lane.b32.xlu1 %v951_v53, %s2632_s29  ;;  %v768_v13 = vor.u32 %v767_v4, %v763_v3  ;;  %v772_v14 = vrot.slane %v770_v5, 1  ;;  %v489_v16 = vor.u32 %v487_v9, %v486_v8  ;;  %v635_v17 = vshll.u32 %v2374_v10, 16 }
  0x21   : > { %1135 = vrot.lane.b32.xlu0 %v954_v54, %s2633_s30  ;;  %v955_v20 = vrot.slane %v2717_v39, 1  ;;  %v956_v21 = vrot.slane %v723_v2, 1  ;;  %v491_v25 = vshrl.u32 %v2359_v18, 16  ;;  %v2343_v28 = vcombine.low %v278_v11, %v278_v11 }
  0x22   : > { %v773_v19 = vsel %vm737_vm4, %v768_v13, %v772_v14  ;;  %v2755_v22 = vsel %vm2697_vm2, %v360_v15, %v489_v16  ;;  %v637_v23 = vrot.slane %v635_v17, 3  ;;  %v494_v31 = vshll.u32 %v2359_v18, 16 }
  0x23   : > { %v957_v26 = vsel %vm948_vm3, %v955_v20, %v956_v21  ;;  %v777_v27 = vshll.u32 %v2755_v22, 16  ;;  %v493_v30 = vrot.slane %v491_v25, 7  ;;  %v2375_v32 = vcombine.low %v279_v12, %v279_v12 }
  0x24   : > { %1043 = vrot.lane.b32.xlu1 %v954_v54, %s2632_s29  ;;  %v724_v29 = vsel %vm2697_vm2, %v486_v8, %v637_v23  ;;  %v775_v33 = vshrl.u32 %v2755_v22, 16  ;;  %v363_v40 = vshrl.u32 %v2343_v28, 16  ;;  %v1592_v50 = vsel %vm1590_vm5, %v2596_v37, 0  ;;  %v283_v8 = vld [vmem:[%s2689_s26 + $0x34] sm:$0xf] }
  0x25   : > { %1011 = vrot.lane.b32.xlu0 %v749_v63, %s2634_s7  ;;  %v779_v34 = vrot.slane %v777_v27, 1  ;;  %v782_v36 = vshll.u32 %v724_v29, 16  ;;  %v496_v41 = vor.u32 %v494_v31, %v493_v30  ;;  %v639_v42 = vshll.u32 %v2375_v32, 16  ;;  %2500 = vmatpush3.bf16.msra.mxu0 %v1592_v50 }
  0x26   : > { %v958_v52 = vrot.slane %v2755_v22, 1  ;;  %v2360_v56 = vcombine.low %v280_v48, %v281_v49  ;;  %2501 = vmatprep.subr.bf16.mxu0 %v2597_v47  ;;  %2546 = vmatpush3.bf16.msra.mxu1 %v1592_v50  ;;  %v2344_v2 = vcombine.low %v280_v48, %v280_v48  ;;  %v2376_v5 = vcombine.low %v281_v49, %v281_v49 }
  0x27   : > { %v780_v43 = vor.u32 %v779_v34, %v775_v33  ;;  %v784_v44 = vrot.slane %v782_v36, 1  ;;  %v2773_v45 = vsel %vm2697_vm2, %v363_v40, %v496_v41  ;;  %v641_v46 = vrot.slane %v639_v42, 3  ;;  %2542 = vmatprep.subr.bf16.mxu1 %v2597_v47  ;;  %v284_v41 = vld [vmem:[%s2689_s26 + $0x38] sm:$0xf]  ;;  %v285_v42 = vld [vmem:[%s2689_s26 + $0x3c] sm:$0xf] }
  0x28   : > { %1137 = vrot.lane.b32.xlu1 %v951_v53, %s2633_s30  ;;  %v789_v54 = vshll.u32 %v2773_v45, 16  ;;  %v787_v59 = vshrl.u32 %v2773_v45, 16  ;;  %v498_v62 = vshrl.u32 %v2360_v56, 16  ;;  %v501_v4 = vshll.u32 %v2360_v56, 16 }
  0x29   : > { %1013 = vrot.lane.b32.xlu0 %v761_v7, %s2634_s7  ;;  %v785_v51 = vsel %vm737_vm4, %v780_v43, %v784_v44  ;;  %v725_v55 = vsel %vm2697_vm2, %v493_v30, %v641_v46  ;;  %2502 = vmatpush3.bf16.msra.mxu0 %v2597_v47  ;;  %v366_v10 = vshrl.u32 %v2344_v2, 16  ;;  %v643_v12 = vshll.u32 %v2376_v5, 16 }
  0x2a   : > { %v791_v60 = vrot.slane %v789_v54, 1  ;;  %v794_v61 = vshll.u32 %v725_v55, 16  ;;  %2503 = vmatprep.subr.bf16.mxu0 %v2600_v57  ;;  %2547 = vmatpush3.bf16.msra.mxu1 %v2597_v47  ;;  %v500_v3 = vrot.slane %v498_v62, 7  ;;  %v961_v14 = vrot.slane %v2773_v45, 1  ;;  %v287_v62 = vld [vmem:[%s2689_s26 + $0x44] sm:$0xf] }
  0x2b   : > { %2543 = vmatprep.subr.bf16.mxu1 %v2600_v57  ;;  %v962_v15 = vrot.slane %v725_v55, 1  ;;  %v645_v17 = vrot.slane %v643_v12, 3  ;;  %v2377_v27 = vcombine.low %v283_v8, %v283_v8  ;;  %v2362_v49 = vcombine.low %v284_v41, %v285_v42 }
  0x2c   : > { %1105 = vrot.lane.b32.xlu1 %v749_v63, %s2635_s8  ;;  %v792_v0 = vor.u32 %v791_v60, %v787_v59  ;;  %v796_v1 = vrot.slane %v794_v61, 1  ;;  %v503_v11 = vor.u32 %v501_v4, %v500_v3  ;;  %v2378_v60 = vcombine.low %v285_v42, %v285_v42  ;;  %v286_v61 = vld [vmem:[%s2689_s26 + $0x40] sm:$0xf] }
  0x2d   : > { %1103 = vrot.lane.b32.xlu0 %v761_v7, %s2635_s8  ;;  %2504 = vmatpush3.bf16.msra.mxu0 %v2600_v57  ;;  %v282_v7 = vld [vmem:[%s2689_s26 + $0x30] sm:$0xf]  ;;  %v726_v23 = vsel %vm2697_vm2, %v500_v3, %v645_v17  ;;  %v647_v33 = vshll.u32 %v2377_v27, 16  ;;  %v512_v54 = vshrl.u32 %v2362_v49, 16  ;;  %v515_v59 = vshll.u32 %v2362_v49, 16 }
  0x2e   : > { %2548 = vmatpush3.bf16.msra.mxu1 %v2600_v57  ;;  %v797_v9 = vsel %vm737_vm4, %v792_v0, %v796_v1  ;;  %v2361_v13 = vcombine.low %v282_v7, %v283_v8  ;;  %v2816_v16 = vsel %vm2697_vm2, %v366_v10, %v503_v11  ;;  %v2345_v21 = vcombine.low %v282_v7, %v282_v7 }
  0x2f   : > { %v801_v20 = vshll.u32 %v2816_v16, 16  ;;  %v799_v28 = vshrl.u32 %v2816_v16, 16  ;;  %v806_v30 = vshll.u32 %v726_v23, 16  ;;  %v649_v40 = vrot.slane %v647_v33, 3 }
  0x30   : > { %1199 = vrot.lane.b32.xlu1 %v773_v19, %s2636_s9  ;;  %v505_v18 = vshrl.u32 %v2361_v13, 16  ;;  %v369_v31 = vshrl.u32 %v2345_v21, 16  ;;  %v964_v44 = vrot.slane %v2816_v16, 1  ;;  %v965_v46 = vrot.slane %v726_v23, 1 }
  0x31   : > { %1197 = vrot.lane.b32.xlu0 %v749_v63, %s2636_s9  ;;  %v2602_v63 = vld [vmem:[%s3747_s1 + $0x8] sm:$0xff]   ;;  %v808_v36 = vrot.slane %v806_v30, 1  ;;  %v2346_v57 = vcombine.low %v284_v41, %v284_v41  ;;  %v651_v2 = vshll.u32 %v2378_v60, 16  ;;  %v2363_v3 = vcombine.low %v286_v61, %v287_v62 }
  0x32   : > { %2505 = vmatprep.subr.bf16.mxu0 %v2602_v63  ;;  %2544 = vmatprep.subr.bf16.mxu1 %v2602_v63  ;;  %v507_v25 = vrot.slane %v505_v18, 7  ;;  %v966_v50 = vsel %vm948_vm3, %v964_v44, %v965_v46  ;;  %v2347_v10 = vcombine.low %v286_v61, %v286_v61  ;;  %v2379_v11 = vcombine.low %v287_v62, %v287_v62  ;;  %v289_v30 = vld [vmem:[%s2689_s26 + $0x4c] sm:$0xf] }
  0x33   : > { %2506 = vmatpush3.bf16.msra.mxu0 %v2602_v63  ;;  %2549 = vmatpush3.bf16.msra.mxu1 %v2602_v63  ;;  %v372_v0 = vshrl.u32 %v2346_v57, 16  ;;  %v653_v7 = vrot.slane %v651_v2, 3  ;;  %v519_v8 = vshrl.u32 %v2363_v3, 16  ;;  %vm1482_vm13 = vcmask 523264  }
  0x34   : > { %1229 = vrot.lane.b32.xlu1 %v957_v26, %s2637_s10  ;;  %2507 = vmatprep.subr.bf16.mxu0 %v2603_v6  ;;  %v727_v48 = vsel %vm2697_vm2, %v507_v25, %v649_v40  ;;  %v655_v23 = vshll.u32 %v2379_v11, 16  ;;  %vm1557_vm14 = vcmask 588800   ;;  %vm1986_vm0 = vcmask 60416  }
  0x35   : > { %1227 = vrot.lane.b32.xlu0 %v951_v53, %s2637_s10  ;;  %v959_v53 = vrot.slane %v724_v29, 1  ;;  %2545 = vmatprep.subr.bf16.mxu1 %v2603_v6  ;;  %v803_v29 = vrot.slane %v801_v20, 1  ;;  %v968_v4 = vrot.slane %v727_v48, 1  ;;  %v375_v20 = vshrl.u32 %v2347_v10, 16 }
  0x37   : > { %v960_v58 = vsel %vm948_vm3, %v958_v52, %v959_v53  ;;  %2508 = vmatpush3.bf16.msra.mxu0 %v2603_v6  ;;  %2550 = vmatpush3.bf16.msra.mxu1 %v2603_v6  ;;  %v804_v34 = vor.u32 %v803_v29, %v799_v28  ;;  %v818_v53 = vshll.u32 %v727_v48, 16  ;;  %v657_v28 = vrot.slane %v655_v23, 3  ;;  %v288_v29 = vld [vmem:[%s2689_s26 + $0x48] sm:$0xf] }
  0x38   : > { %1045 = vrot.lane.b32.xlu1 %v957_v26, %s2632_s29  ;;  %v2364_v40 = vcombine.low %v288_v29, %v289_v30  ;;  %v2348_v49 = vcombine.low %v288_v29, %v288_v29 }
  0x39   : > { %1015 = vrot.lane.b32.xlu0 %v773_v19, %s2634_s7  ;;  %v809_v43 = vsel %vm737_vm4, %v804_v34, %v808_v36  ;;  %v820_v56 = vrot.slane %v818_v53, 1  ;;  %v290_v53 = vld [vmem:[%s2689_s26 + $0x50] sm:$0xf] }
  0x3a   : > { %v526_v46 = vshrl.u32 %v2364_v40, 16  ;;  %v378_v57 = vshrl.u32 %v2348_v49, 16 }
  0x3c   : > { %1077 = vrot.lane.b32.xlu1 %v2755_v22, %s2630_s27 }
  0x3d   : > { %1075 = vrot.lane.b32.xlu0 %v2717_v39, %s2630_s27 }
  0x40   : > { %1109 = vrot.lane.b32.xlu1 %v785_v51, %s2635_s8 }
  0x41   : > { %1107 = vrot.lane.b32.xlu0 %v773_v19, %s2635_s8  ;;  %v963_v19 = vsel %vm948_vm3, %v961_v14, %v962_v15  ;;  %v521_v14 = vrot.slane %v519_v8, 7  ;;  %v522_v15 = vshll.u32 %v2363_v3, 16  ;;  %v2349_v8 = vcombine.low %v290_v53, %v290_v53 }
  0x43   : > { %v524_v21 = vor.u32 %v522_v15, %v521_v14  ;;  %v729_v36 = vsel %vm2697_vm2, %v521_v14, %v657_v28 }
  0x44   : > { %1141 = vrot.lane.b32.xlu1 %v960_v58, %s2633_s30  ;;  %v842_v44 = vshll.u32 %v729_v36, 16 }
  0x45   : > { %1139 = vrot.lane.b32.xlu0 %v957_v26, %s2633_s30  ;;  %v508_v26 = vshll.u32 %v2361_v13, 16  ;;  %v2877_v27 = vsel %vm2697_vm2, %v375_v20, %v524_v21  ;;  %v381_v20 = vshrl.u32 %v2349_v8, 16 }
  0x46   : > { %v837_v34 = vshll.u32 %v2877_v27, 16  ;;  %v835_v42 = vshrl.u32 %v2877_v27, 16  ;;  %v844_v48 = vrot.slane %v842_v44, 1  ;;  %v973_v62 = vrot.slane %v2877_v27, 1 }
  0x47   : > { %v510_v32 = vor.u32 %v508_v26, %v507_v25 }
  0x48   : > { %1173 = vrot.lane.b32.xlu1 %v2773_v45, %s2631_s28 }
  0x49   : > { %1171 = vrot.lane.b32.xlu0 %v2755_v22, %s2631_s28  ;;  %v2831_v37 = vsel %vm2697_vm2, %v369_v31, %v510_v32 }
  0x4a   : > { %v813_v47 = vshll.u32 %v2831_v37, 16  ;;  %v967_v5 = vrot.slane %v2831_v37, 1 }
  0x4c   : > { %1203 = vrot.lane.b32.xlu1 %v797_v9, %s2636_s9  ;;  %v815_v52 = vrot.slane %v813_v47, 1  ;;  %v969_v12 = vsel %vm948_vm3, %v967_v5, %v968_v4 }
  0x4d   : > { %1201 = vrot.lane.b32.xlu0 %v785_v51, %s2636_s9 }
  0x50   : > { %1017 = vrot.lane.b32.xlu1 %v785_v51, %s2634_s7  ;;  %v811_v51 = vshrl.u32 %v2831_v37, 16 }
  0x51   : > { %1231 = vrot.lane.b32.xlu0 %v960_v58, %s2637_s10 }
  0x52   : > { %v816_v55 = vor.u32 %v815_v52, %v811_v51  ;;  %v529_v51 = vshll.u32 %v2364_v40, 16  ;;  %v2380_v52 = vcombine.low %v289_v30, %v289_v30 }
  0x54   : > { %1019 = vrot.lane.b32.xlu1 %v797_v9, %s2634_s7  ;;  %v821_v63 = vsel %vm737_vm4, %v816_v55, %v820_v56 }
  0x55   : > { %1233 = vrot.lane.b32.xlu0 %v963_v19, %s2637_s10 }
  0x58   : > { %1049 = vrot.lane.b32.xlu1 %v963_v19, %s2632_s29 }
  0x59   : > { %1047 = vrot.lane.b32.xlu0 %v960_v58, %s2632_s29  ;;  %v514_v58 = vrot.slane %v512_v54, 7  ;;  %v291_v54 = vld [vmem:[%s2689_s26 + $0x54] sm:$0xf] }
  0x5a   : > { %v2365_v60 = vcombine.low %v290_v53, %v291_v54 }
  0x5b   : > { %v517_v1 = vor.u32 %v515_v59, %v514_v58  ;;  %v728_v13 = vsel %vm2697_vm2, %v514_v58, %v653_v7  ;;  %v659_v59 = vshll.u32 %v2380_v52, 16 }
  0x5c   : > { %1081 = vrot.lane.b32.xlu1 %v2816_v16, %s2630_s27  ;;  %v971_v33 = vrot.slane %v728_v13, 1  ;;  %v533_v3 = vshrl.u32 %v2365_v60, 16 }
  0x5d   : > { %1079 = vrot.lane.b32.xlu0 %v2773_v45, %s2630_s27  ;;  %v2862_v6 = vsel %vm2697_vm2, %v372_v0, %v517_v1  ;;  %v661_v2 = vrot.slane %v659_v59, 3 }
  0x5e   : > { %v823_v17 = vshrl.u32 %v2862_v6, 16  ;;  %v970_v32 = vrot.slane %v2862_v6, 1  ;;  %v535_v11 = vrot.slane %v533_v3, 7 }
  0x60   : > { %1113 = vrot.lane.b32.xlu1 %v809_v43, %s2635_s8  ;;  %v972_v41 = vsel %vm948_vm3, %v970_v32, %v971_v33 }
  0x61   : > { %1111 = vrot.lane.b32.xlu0 %v797_v9, %s2635_s8  ;;  %v825_v9 = vshll.u32 %v2862_v6, 16 }
  0x63   : > { %v827_v18 = vrot.slane %v825_v9, 1 }
  0x64   : > { %1145 = vrot.lane.b32.xlu1 %v966_v50, %s2633_s30 }
  0x65   : > { %1143 = vrot.lane.b32.xlu0 %v963_v19, %s2633_s30  ;;  %v830_v19 = vshll.u32 %v728_v13, 16  ;;  %v828_v25 = vor.u32 %v827_v18, %v823_v17  ;;  %v2381_v13 = vcombine.low %v291_v54, %v291_v54 }
  0x67   : > { %v832_v26 = vrot.slane %v830_v19, 1  ;;  %v663_v23 = vshll.u32 %v2381_v13, 16 }
  0x68   : > { %1177 = vrot.lane.b32.xlu1 %v2831_v37, %s2631_s28 }
  0x69   : > { %1175 = vrot.lane.b32.xlu0 %v2816_v16, %s2631_s28  ;;  %v833_v31 = vsel %vm737_vm4, %v828_v25, %v832_v26  ;;  %v665_v32 = vrot.slane %v663_v23, 3 }
  0x6c   : > { %1207 = vrot.lane.b32.xlu1 %v821_v63, %s2636_s9 }
  0x6d   : > { %1205 = vrot.lane.b32.xlu0 %v809_v43, %s2636_s9 }
  0x70   : > { %1021 = vrot.lane.b32.xlu1 %v809_v43, %s2634_s7  ;;  %v839_v43 = vrot.slane %v837_v34, 1  ;;  %v292_v34 = vld [vmem:[%s2689_s26 + $0x58] sm:$0xf] }
  0x71   : > { %1235 = vrot.lane.b32.xlu0 %v966_v50, %s2637_s10  ;;  %v2350_v8 = vcombine.low %v292_v34, %v292_v34 }
  0x72   : > { %v840_v47 = vor.u32 %v839_v43, %v835_v42 }
  0x74   : > { %1023 = vrot.lane.b32.xlu1 %v821_v63, %s2634_s7  ;;  %v2903_v55 = vsel %vm737_vm4, %v840_v47, %v844_v48  ;;  %v2960_v48 = vsel %vm2697_vm2, %v535_v11, %v665_v32 }
  0x75   : > { %1237 = vrot.lane.b32.xlu0 %v969_v12, %s2637_s10 }
  0x78   : > { %1053 = vrot.lane.b32.xlu1 %v969_v12, %s2632_s29 }
  0x79   : > { %1051 = vrot.lane.b32.xlu0 %v966_v50, %s2632_s29  ;;  %v528_v50 = vrot.slane %v526_v46, 7 }
  0x7b   : > { %v531_v58 = vor.u32 %v529_v51, %v528_v50  ;;  %v730_v10 = vsel %vm2697_vm2, %v528_v50, %v661_v2 }
  0x7c   : > { %1085 = vrot.lane.b32.xlu1 %v2862_v6, %s2630_s27  ;;  %v854_v18 = vshll.u32 %v730_v10, 16  ;;  %v977_v42 = vrot.slane %v730_v10, 1 }
  0x7d   : > { %1083 = vrot.lane.b32.xlu0 %v2831_v37, %s2630_s27  ;;  %v2915_v1 = vsel %vm2697_vm2, %v378_v57, %v531_v58 }
  0x7e   : > { %v849_v7 = vshll.u32 %v2915_v1, 16  ;;  %v847_v15 = vshrl.u32 %v2915_v1, 16  ;;  %v856_v29 = vrot.slane %v854_v18, 1 }
  0x80   : > { %1117 = vrot.lane.b32.xlu1 %v833_v31, %s2635_s8  ;;  %v851_v17 = vrot.slane %v849_v7, 1 }
  0x81   : > { %1115 = vrot.lane.b32.xlu0 %v821_v63, %s2635_s8  ;;  %v974_v63 = vrot.slane %v729_v36, 1  ;;  %v293_v36 = vld [vmem:[%s2689_s26 + $0x5c] sm:$0xf] }
  0x82   : > { %v852_v28 = vor.u32 %v851_v17, %v847_v15  ;;  %v2366_v49 = vcombine.low %v292_v34, %v293_v36  ;;  %v294_v15 = vld [vmem:[%s2689_s26 + $0x60] sm:$0xf]  ;;  %v295_v17 = vld [vmem:[%s2689_s26 + $0x64] sm:$0xf] }
  0x83   : > { %v2922_v5 = vsel %vm948_vm3, %v973_v62, %v974_v63 }
  0x84   : > { %1149 = vrot.lane.b32.xlu1 %v972_v41, %s2633_s30  ;;  %v857_v44 = vsel %vm737_vm4, %v852_v28, %v856_v29  ;;  %v540_v62 = vshrl.u32 %v2366_v49, 16  ;;  %v980_v28 = vrot.slane %v2960_v48, 1 }
  0x85   : > { %1147 = vrot.lane.b32.xlu0 %v969_v12, %s2633_s30  ;;  %v536_v12 = vshll.u32 %v2365_v60, 16  ;;  %v866_v60 = vshll.u32 %v2960_v48, 16 }
  0x86   : > { %v542_v10 = vrot.slane %v540_v62, 7 }
  0x87   : > { %v538_v21 = vor.u32 %v536_v12, %v535_v11  ;;  %v868_v7 = vrot.slane %v866_v60, 1  ;;  %v543_v11 = vshll.u32 %v2366_v49, 16  ;;  %v2382_v12 = vcombine.low %v293_v36, %v293_v36 }
  0x88   : > { %1181 = vrot.lane.b32.xlu1 %v2877_v27, %s2631_s28 }
  0x89   : > { %1179 = vrot.lane.b32.xlu0 %v2862_v6, %s2631_s28  ;;  %v667_v23 = vshll.u32 %v2382_v12, 16 }
  0x8a   : > { %v2905_v56 = vpop.permute.xlu1 %1073 }
  0x8b   : > { %v1072_v61 = vpop.permute.xlu0 %1071 }
  0x8c   : > { %1211 = vrot.lane.b32.xlu1 %v2903_v55, %s2636_s9 }
  0x8d   : > { %1209 = vrot.lane.b32.xlu0 %v833_v31, %s2636_s9 }
  0x8e   : > { %v2911_v0 = vpop.permute.xlu1 %1169 }
  0x8f   : > { %v2917_v4 = vpop.permute.xlu0 %1167 }
  0x90   : > { %1025 = vrot.lane.b32.xlu1 %v833_v31, %s2634_s7  ;;  %v2939_v31 = vsel %vm2697_vm2, %v381_v20, %v538_v21  ;;  %v384_v20 = vshrl.u32 %v2350_v8, 16  ;;  %v545_v21 = vor.u32 %v543_v11, %v542_v10 }
  0x91   : > { %1239 = vrot.lane.b32.xlu0 %v972_v41, %s2637_s10  ;;  %v861_v46 = vshll.u32 %v2939_v31, 16  ;;  %v859_v58 = vshrl.u32 %v2939_v31, 16 }
  0x92   : > { %v1042_v9 = vpop.permute.xlu1 %1041  ;;  %v3008_v32 = vsel %vm2697_vm2, %v384_v20, %v545_v21 }
  0x93   : > { %v1136_v14 = vpop.permute.xlu0 %1135  ;;  %v863_v59 = vrot.slane %v861_v46, 1 }
  0x94   : > { %1027 = vrot.lane.b32.xlu1 %v2903_v55, %s2634_s7 }
  0x95   : > { %1241 = vrot.lane.b32.xlu0 %v2922_v5, %s2637_s10 }
  0x96   : > { %v1044_v19 = vpop.permute.xlu1 %1043 }
  0x97   : > { %v1012_v25 = vpop.permute.xlu0 %1011 }
  0x98   : > { %1057 = vrot.lane.b32.xlu1 %v2922_v5, %s2632_s29  ;;  %v1259_v26 = vsel %vm1257_vm6, %v2703_v35, %v1012_v25  ;;  %v2367_v25 = vcombine.low %v294_v15, %v295_v17 }
  0x99   : > { %1055 = vrot.lane.b32.xlu0 %v972_v41, %s2632_s29  ;;  %v2944_v40 = vsel %vm1288_vm7, %v1259_v26, %v1042_v9  ;;  %v976_v41 = vrot.slane %v2915_v1, 1 }
  0x9a   : > { %v1138_v30 = vpop.permute.xlu1 %1137  ;;  %v1321_v51 = vsel %vm1319_vm8, %v2944_v40, %v1072_v61  ;;  %v547_v34 = vshrl.u32 %v2367_v25, 16  ;;  %v550_v48 = vshll.u32 %v2367_v25, 16 }
  0x9b   : > { %v1014_v33 = vpop.permute.xlu0 %1013 }
  0x9c   : > { %v1261_v35 = vsel %vm1257_vm6, %v2713_v38, %v1014_v33  ;;  %1089 = vrot.lane.b32.xlu1 %v2915_v1, %s2630_s27  ;;  %v669_v33 = vrot.slane %v667_v23, 3 }
  0x9d   : > { %v1292_v43 = vsel %vm1288_vm7, %v1261_v35, %v1044_v19  ;;  %1087 = vrot.lane.b32.xlu0 %v2877_v27, %s2630_s27  ;;  %v873_v35 = vshll.u32 %v3008_v32, 16 }
  0x9e   : > { %v1106_v47 = vpop.permute.xlu1 %1105  ;;  %v1323_v38 = vsel %vm1319_vm8, %v1292_v43, %v2905_v56  ;;  %v2969_v56 = vsel %vm948_vm3, %v976_v41, %v977_v42  ;;  %v2351_v41 = vcombine.low %v294_v15, %v294_v15  ;;  %v2383_v42 = vcombine.low %v295_v17, %v295_v17 }
  0x9f   : > { %v1356_v50 = vsel %vm1352_vm9, %v1323_v38, %v1106_v47  ;;  %v1104_v52 = vpop.permute.xlu0 %1103  ;;  %v732_v47 = vsel %vm2697_vm2, %v542_v10, %v669_v33  ;;  %v549_v38 = vrot.slane %v547_v34, 7 }
  0xa0   : > { %v1389_v53 = vsel %vm1385_vm10, %v1356_v50, %v1138_v30  ;;  %v1354_v54 = vsel %vm1352_vm9, %v1321_v51, %v1104_v52  ;;  %1121 = vrot.lane.b32.xlu1 %v857_v44, %s2635_s8  ;;  %v979_v30 = vrot.slane %v2939_v31, 1  ;;  %v875_v50 = vrot.slane %v873_v35, 1 }
  0xa1   : > { %v1387_v57 = vsel %vm1385_vm10, %v1354_v54, %v1136_v14  ;;  %1119 = vrot.lane.b32.xlu0 %v2903_v55, %s2635_s8  ;;  %v1422_v63 = vsel %vm1418_vm11, %v1389_v53, %v2911_v0  ;;  %v864_v55 = vor.u32 %v863_v59, %v859_v58  ;;  %v878_v51 = vshll.u32 %v732_v47, 16 }
  0xa2   : > { %v1200_v61 = vpop.permute.xlu1 %1199  ;;  %v1420_v3 = vsel %vm1418_vm11, %v1387_v57, %v2917_v4  ;;  %v981_v46 = vsel %vm948_vm3, %v979_v30, %v980_v28  ;;  %v387_v53 = vshrl.u32 %v2351_v41, 16  ;;  %v552_v54 = vor.u32 %v550_v48, %v549_v38 }
  0xa3   : > { %v1198_v2 = vpop.permute.xlu0 %1197  ;;  %v1454_v9 = vsel %vm1450_vm12, %v1422_v63, %v1200_v61  ;;  %v2996_v18 = vsel %vm737_vm4, %v864_v55, %v868_v7  ;;  %v671_v57 = vshll.u32 %v2383_v42, 16  ;;  %v880_v60 = vrot.slane %v878_v51, 1  ;;  %v297_v55 = vld [vmem:[%s2689_s26 + $0x6c] sm:$0xf] }
  0xa4   : > { %1153 = vrot.lane.b32.xlu1 %v2969_v56, %s2633_s30  ;;  %v1452_v4 = vsel %vm1450_vm12, %v1420_v3, %v1198_v2  ;;  %v3026_v62 = vsel %vm2697_vm2, %v387_v53, %v552_v54  ;;  %v296_v3 = vld [vmem:[%s2689_s26 + $0x68] sm:$0xf]  ;;  %v982_v7 = vrot.slane %v3008_v32, 1  ;;  %v983_v8 = vrot.slane %v732_v47, 1 }
  0xa5   : > { %1151 = vrot.lane.b32.xlu0 %v2922_v5, %s2633_s30  ;;  %v673_v63 = vrot.slane %v671_v57, 3  ;;  %v2368_v11 = vcombine.low %v296_v3, %v297_v55  ;;  %v2352_v42 = vcombine.low %v296_v3, %v296_v3 }
  0xa6   : > { %v1230_v0 = vpop.permute.xlu1 %1229  ;;  %v3046_v15 = vsel %vm948_vm3, %v982_v7, %v983_v8 }
  0xa7   : > { %v1486_v13 = vsel %vm1482_vm13, %v1454_v9, %v1230_v0  ;;  %v1228_v14 = vpop.permute.xlu0 %1227  ;;  %v885_v9 = vshll.u32 %v3026_v62, 16  ;;  %v733_v10 = vsel %vm2697_vm2, %v549_v38, %v673_v63  ;;  %v554_v25 = vshrl.u32 %v2368_v11, 16 }
  0xa8   : > { %1185 = vrot.lane.b32.xlu1 %v2939_v31, %s2631_s28  ;;  %v1484_v5 = vsel %vm1482_vm13, %v1452_v4, %v1228_v14  ;;  %v557_v47 = vshll.u32 %v2368_v11, 16  ;;  %v390_v53 = vshrl.u32 %v2352_v42, 16 }
  0xa9   : > { %1183 = vrot.lane.b32.xlu0 %v2915_v1, %s2631_s28  ;;  %2509 = vmatprep.mubr.msk.bf16.mxu0 %vm1557_vm14, %v1484_v5  ;;  %v883_v5 = vshrl.u32 %v3026_v62, 16  ;;  %v887_v20 = vrot.slane %v885_v9, 1 }
  0xaa   : > { %2510 = vmatmul.mubr.msk.bf16.vlgmr.msra.gmra.mxu0 %vm1557_vm14, %v1486_v13  ;;  %v2999_v19 = vpop.permute.xlu1 %1045 }
  0xab   : > { %v1016_v26 = vpop.permute.xlu0 %1015  ;;  %v888_v34 = vor.u32 %v887_v20, %v883_v5 }
  0xac   : > { %1215 = vrot.lane.b32.xlu1 %v2996_v18, %s2636_s9  ;;  %v1263_v12 = vsel %vm1257_vm6, %v2717_v39, %v1016_v26  ;;  %v890_v39 = vshll.u32 %v733_v10, 16 }
  0xad   : > { %1213 = vrot.lane.b32.xlu0 %v857_v44, %s2636_s9 }
  0xae   : > { %v1078_v29 = vpop.permute.xlu1 %1077 }
  0xaf   : > { %v1076_v36 = vpop.permute.xlu0 %1075 }
  0xb0   : > { %1029 = vrot.lane.b32.xlu1 %v857_v44, %s2634_s7  ;;  %v871_v44 = vshrl.u32 %v3008_v32, 16  ;;  %v1325_v4 = vsel %vm1319_vm8, %v2944_v40, %v1076_v36  ;;  %v1294_v40 = vsel %vm1288_vm7, %v1263_v12, %v2999_v19  ;;  %v2384_v36 = vcombine.low %v297_v55, %v297_v55 }
  0xb1   : > { %1243 = vrot.lane.b32.xlu0 %v2969_v56, %s2637_s10  ;;  %v1327_v26 = vsel %vm1319_vm8, %v1294_v40, %v1078_v29  ;;  %v892_v29 = vrot.slane %v890_v39, 1 }
  0xb2   : > { %v1110_v43 = vpop.permute.xlu1 %1109  ;;  %v876_v59 = vor.u32 %v875_v50, %v871_v44  ;;  %v299_v44 = vld [vmem:[%s2689_s26 + $0x74] sm:$0xf]  ;;  %v675_v51 = vshll.u32 %v2384_v36, 16 }
  0xb3   : > { %v1108_v49 = vpop.permute.xlu0 %1107  ;;  %v1360_v33 = vsel %vm1352_vm9, %v1327_v26, %v1110_v43  ;;  %v556_v43 = vrot.slane %v554_v25, 7 }
  0xb4   : > { %1031 = vrot.lane.b32.xlu1 %v2996_v18, %s2634_s7  ;;  %v1358_v14 = vsel %vm1352_vm9, %v1325_v4, %v1108_v49  ;;  %v298_v49 = vld [vmem:[%s2689_s26 + $0x70] sm:$0xf]  ;;  %v2385_v4 = vcombine.low %v299_v44, %v299_v44 }
  0xb5   : > { %1245 = vrot.lane.b32.xlu0 %v981_v46, %s2637_s10  ;;  %v559_v54 = vor.u32 %v557_v47, %v556_v43  ;;  %v2369_v57 = vcombine.low %v298_v49, %v299_v44 }
  0xb6   : > { %v1142_v52 = vpop.permute.xlu1 %1141  ;;  %v679_v40 = vshll.u32 %v2385_v4, 16 }
  0xb7   : > { %v1140_v58 = vpop.permute.xlu0 %1139  ;;  %v1393_v19 = vsel %vm1385_vm10, %v1360_v33, %v1142_v52  ;;  %v561_v3 = vshrl.u32 %v2369_v57, 16  ;;  %v564_v12 = vshll.u32 %v2369_v57, 16 }
  0xb8   : > { %1061 = vrot.lane.b32.xlu1 %v981_v46, %s2632_s29  ;;  %v1391_v17 = vsel %vm1385_vm10, %v1358_v14, %v1140_v58  ;;  %v681_v33 = vrot.slane %v679_v40, 3 }
  0xb9   : > { %1059 = vrot.lane.b32.xlu0 %v2969_v56, %s2632_s29  ;;  %v881_v56 = vsel %vm737_vm4, %v876_v59, %v880_v60  ;;  %v985_v59 = vrot.slane %v3026_v62, 1  ;;  %v986_v60 = vrot.slane %v733_v10, 1  ;;  %v2353_v10 = vcombine.low %v298_v49, %v298_v49 }
  0xba   : > { %v1174_v61 = vpop.permute.xlu1 %1173  ;;  %v563_v11 = vrot.slane %v561_v3, 7 }
  0xbb   : > { %v1172_v2 = vpop.permute.xlu0 %1171  ;;  %v1426_v35 = vsel %vm1418_vm11, %v1393_v19, %v1174_v61  ;;  %v677_v61 = vrot.slane %v675_v51, 3  ;;  %v3095_v7 = vsel %vm948_vm3, %v985_v59, %v986_v60  ;;  %v393_v20 = vshrl.u32 %v2353_v10, 16  ;;  %v300_v19 = vld [vmem:[%s2689_s26 + $0x78] sm:$0xf] }
  0xbc   : > { %1093 = vrot.lane.b32.xlu1 %v3008_v32, %s2630_s27  ;;  %v1424_v21 = vsel %vm1418_vm11, %v1391_v17, %v1172_v2  ;;  %v3089_v2 = vsel %vm2697_vm2, %v390_v53, %v559_v54  ;;  %v566_v39 = vor.u32 %v564_v12, %v563_v11  ;;  %v2354_v10 = vcombine.low %v300_v19, %v300_v19 }
  0xbd   : > { %1091 = vrot.lane.b32.xlu0 %v2939_v31, %s2630_s27  ;;  %v734_v8 = vsel %vm2697_vm2, %v556_v43, %v677_v61  ;;  %v897_v9 = vshll.u32 %v3089_v2, 16 }
  0xbe   : > { %v1204_v0 = vpop.permute.xlu1 %1203  ;;  %v902_v17 = vshll.u32 %v734_v8, 16  ;;  %v989_v36 = vrot.slane %v734_v8, 1 }
  0xbf   : > { %v1202_v13 = vpop.permute.xlu0 %1201  ;;  %v1458_v38 = vsel %vm1450_vm12, %v1426_v35, %v1204_v0  ;;  %v899_v14 = vrot.slane %v897_v9, 1 }
  0xc0   : > { %1125 = vrot.lane.b32.xlu1 %v881_v56, %s2635_s8  ;;  %v1456_v28 = vsel %vm1450_vm12, %v1424_v21, %v1202_v13  ;;  %v904_v26 = vrot.slane %v902_v17, 1 }
  0xc1   : > { %1123 = vrot.lane.b32.xlu0 %v2996_v18, %s2635_s8 }
  0xc2   : > { %v3055_v23 = vpop.permute.xlu1 %1017 }
  0xc3   : > { %v1232_v30 = vpop.permute.xlu0 %1231 }
  0xc4   : > { %v1488_v18 = vsel %vm1482_vm13, %v1456_v28, %v1232_v30  ;;  %1157 = vrot.lane.b32.xlu1 %v3046_v15, %s2633_s30  ;;  %v3111_v30 = vsel %vm2697_vm2, %v393_v20, %v566_v39 }
  0xc5   : > { %1155 = vrot.lane.b32.xlu0 %v981_v46, %s2633_s30  ;;  %2513 = vmatprep.mubr.msk.bf16.mxu0 %vm1557_vm14, %v1488_v18  ;;  %v3079_v46 = vsel %vm737_vm4, %v888_v34, %v892_v29  ;;  %v301_v34 = vld [vmem:[%s2689_s26 + $0x7c] sm:$0xf]  ;;  %v988_v29 = vrot.slane %v3089_v2, 1  ;;  %v909_v42 = vshll.u32 %v3111_v30, 16  ;;  %v907_v53 = vshrl.u32 %v3111_v30, 16 }
  0xc6   : > { %v3067_v41 = vpop.permute.xlu1 %1019 }
  0xc7   : > { %v1234_v48 = vpop.permute.xlu0 %1233  ;;  %v1267_v49 = vsel %vm1257_vm6, %v2773_v45, %v3067_v41  ;;  %v911_v54 = vrot.slane %v909_v42, 1 }
  0xc8   : > { %v1490_v50 = vsel %vm1482_vm13, %v1458_v38, %v1234_v48  ;;  %1189 = vrot.lane.b32.xlu1 %v3026_v62, %s2631_s28  ;;  %v735_v38 = vsel %vm2697_vm2, %v563_v11, %v681_v33  ;;  %v2370_v48 = vcombine.low %v300_v19, %v301_v34 }
  0xc9   : > { %1187 = vrot.lane.b32.xlu0 %v3008_v32, %s2631_s28  ;;  %2514 = vmatmul.mubr.msk.bf16.gmra.mxu0 %vm1557_vm14, %v1490_v50  ;;  %v990_v50 = vsel %vm948_vm3, %v988_v29, %v989_v36  ;;  %v914_v57 = vshll.u32 %v735_v38, 16 }
  0xca   : > { %v3081_v52 = vpop.permute.xlu1 %1049  ;;  %v568_v59 = vshrl.u32 %v2370_v48, 16  ;;  %v571_v4 = vshll.u32 %v2370_v48, 16 }
  0xcb   : > { %v1048_v58 = vpop.permute.xlu0 %1047  ;;  %v1298_v45 = vsel %vm1288_vm7, %v1267_v49, %v3081_v52  ;;  %v912_v52 = vor.u32 %v911_v54, %v907_v53  ;;  %v916_v9 = vrot.slane %v914_v57, 1 }
  0xcc   : > { %1219 = vrot.lane.b32.xlu1 %v3079_v46, %s2636_s9  ;;  %v570_v12 = vrot.slane %v568_v59, 7 }
  0xcd   : > { %1217 = vrot.lane.b32.xlu0 %v881_v56, %s2636_s9 }
  0xce   : > { %v1082_v63 = vpop.permute.xlu1 %1081  ;;  %v573_v20 = vor.u32 %v571_v4, %v570_v12 }
  0xcf   : > { %v1080_v55 = vpop.permute.xlu0 %1079  ;;  %v1331_v60 = vsel %vm1319_vm8, %v1298_v45, %v1082_v63 }
  0xd0   : > { %1033 = vrot.lane.b32.xlu1 %v881_v56, %s2634_s7  ;;  %v895_v56 = vshrl.u32 %v3089_v2, 16 }
  0xd1   : > { %1247 = vrot.lane.b32.xlu0 %v3046_v15, %s2637_s10 }
  0xd2   : > { %v1114_v0 = vpop.permute.xlu1 %1113  ;;  %v900_v25 = vor.u32 %v899_v14, %v895_v56 }
  0xd3   : > { %v1112_v13 = vpop.permute.xlu0 %1111 }
  0xd4   : > { %1035 = vrot.lane.b32.xlu1 %v3079_v46, %s2634_s7  ;;  %v905_v35 = vsel %vm737_vm4, %v900_v25, %v904_v26  ;;  %v991_v25 = vrot.slane %v3111_v30, 1  ;;  %v992_v26 = vrot.slane %v735_v38, 1 }
  0xd5   : > { %1249 = vrot.lane.b32.xlu0 %v3095_v7, %s2637_s10 }
  0xd6   : > { %v1146_v5 = vpop.permute.xlu1 %1145  ;;  %v993_v29 = vsel %vm948_vm3, %v991_v25, %v992_v26 }
  0xd7   : > { %v1144_v21 = vpop.permute.xlu0 %1143 }
  0xd8   : > { %1065 = vrot.lane.b32.xlu1 %v3095_v7, %s2632_s29 }
  0xd9   : > { %1063 = vrot.lane.b32.xlu0 %v3046_v15, %s2632_s29  ;;  %v1265_v15 = vsel %vm1257_vm6, %v2755_v22, %v3055_v23 }
  0xda   : > { %v1178_v28 = vpop.permute.xlu1 %1177  ;;  %v1296_v43 = vsel %vm1288_vm7, %v1265_v15, %v1048_v58 }
  0xdb   : > { %v1176_v18 = vpop.permute.xlu0 %1175  ;;  %v1329_v22 = vsel %vm1319_vm8, %v1296_v43, %v1080_v55  ;;  %v1364_v55 = vsel %vm1352_vm9, %v1331_v60, %v1114_v0  ;;  %v2386_v0 = vcombine.low %v301_v34, %v301_v34 }
  0xdc   : > { %1097 = vrot.lane.b32.xlu1 %v3089_v2, %s2630_s27  ;;  %v1362_v44 = vsel %vm1352_vm9, %v1329_v22, %v1112_v13  ;;  %v1397_v8 = vsel %vm1385_vm10, %v1364_v55, %v1146_v5  ;;  %v396_v5 = vshrl.u32 %v2354_v10, 16 }
  0xdd   : > { %1095 = vrot.lane.b32.xlu0 %v3026_v62, %s2630_s27  ;;  %v1395_v51 = vsel %vm1385_vm10, %v1362_v44, %v1144_v21  ;;  %v1430_v63 = vsel %vm1418_vm11, %v1397_v8, %v1178_v28  ;;  %v683_v39 = vshll.u32 %v2386_v0, 16 }
  0xde   : > { %v1208_v47 = vpop.permute.xlu1 %1207  ;;  %v1428_v41 = vsel %vm1418_vm11, %v1395_v51, %v1176_v18  ;;  %v720_v28 = vsel %vm2697_vm2, %v396_v5, %v573_v20 }
  0xdf   : > { %v1206_v23 = vpop.permute.xlu0 %1205  ;;  %v1462_v13 = vsel %vm1450_vm12, %v1430_v63, %v1208_v47  ;;  %v685_v33 = vrot.slane %v683_v39, 3  ;;  %v997_v19 = vshll.u32 %v720_v28, 16  ;;  %v995_v42 = vshrl.u32 %v720_v28, 16 }
  0xe0   : > { %1129 = vrot.lane.b32.xlu1 %v905_v35, %s2635_s8  ;;  %v1460_v61 = vsel %vm1450_vm12, %v1428_v41, %v1206_v23  ;;  %v1008_v51 = vrot.slane %v720_v28, 1 }
  0xe1   : > { %1127 = vrot.lane.b32.xlu0 %v3079_v46, %s2635_s8  ;;  %v736_v36 = vsel %vm2697_vm2, %v570_v12, %v685_v33  ;;  %v999_v43 = vrot.slane %v997_v19, 1 }
  0xe2   : > { %v1022_v58 = vpop.permute.xlu1 %1021  ;;  %v1002_v47 = vshll.u32 %v736_v36, 16  ;;  %v1009_v53 = vrot.slane %v736_v36, 1 }
  0xe3   : > { %v1236_v3 = vpop.permute.xlu0 %1235  ;;  %v1269_v24 = vsel %vm1257_vm6, %v2816_v16, %v1022_v58 }
  0xe4   : > { %v1492_v46 = vsel %vm1482_vm13, %v1460_v61, %v1236_v3  ;;  %1161 = vrot.lane.b32.xlu1 %v990_v50, %s2633_s30  ;;  %v1004_v49 = vrot.slane %v1002_v47, 1  ;;  %v1010_v58 = vsel %vm948_vm3, %v1008_v51, %v1009_v53 }
  0xe5   : > { %1159 = vrot.lane.b32.xlu0 %v3095_v7, %s2633_s30  ;;  %2517 = vmatprep.mubr.msk.bf16.mxu0 %vm1557_vm14, %v1492_v46  ;;  %v917_v7 = vsel %vm737_vm4, %v912_v52, %v916_v9 }
  0xe6   : > { %v1024_v11 = vpop.permute.xlu1 %1023 }
  0xe7   : > { %v1238_v56 = vpop.permute.xlu0 %1237 }
  0xe8   : > { %v1494_v14 = vsel %vm1482_vm13, %v1462_v13, %v1238_v56  ;;  %1193 = vrot.lane.b32.xlu1 %v3111_v30, %s2631_s28 }
  0xe9   : > { %1191 = vrot.lane.b32.xlu0 %v3089_v2, %s2631_s28  ;;  %2518 = vmatmul.mubr.msk.bf16.gmra.mxu0 %vm1557_vm14, %v1494_v14 }
  0xea   : > { %v1054_v17 = vpop.permute.xlu1 %1053 }
  0xeb   : > { %v1052_v40 = vpop.permute.xlu0 %1051 }
  0xec   : > { %1223 = vrot.lane.b32.xlu1 %v917_v7, %s2636_s9  ;;  %v1300_v54 = vsel %vm1288_vm7, %v1269_v24, %v1052_v40 }
  0xed   : > { %1221 = vrot.lane.b32.xlu0 %v905_v35, %s2636_s9 }
  0xee   : > { %v1086_v21 = vpop.permute.xlu1 %1085 }
  0xef   : > { %v1084_v18 = vpop.permute.xlu0 %1083 }
  0xf0   : > { %1037 = vrot.lane.b32.xlu1 %v905_v35, %s2634_s7  ;;  %v1000_v35 = vor.u32 %v999_v43, %v995_v42  ;;  %v1333_v45 = vsel %vm1319_vm8, %v1300_v54, %v1084_v18 }
  0xf1   : > { %1251 = vrot.lane.b32.xlu0 %v990_v50, %s2637_s10 }
  0xf2   : > { %v1118_v34 = vpop.permute.xlu1 %1117  ;;  %v1005_v44 = vsel %vm737_vm4, %v1000_v35, %v1004_v49 }
  0xf3   : > { %v1116_v15 = vpop.permute.xlu0 %1115 }
  0xf4   : > { %1039 = vrot.lane.b32.xlu1 %v917_v7, %s2634_s7  ;;  %v1366_v59 = vsel %vm1352_vm9, %v1333_v45, %v1116_v15 }
  0xf5   : > { %1253 = vrot.lane.b32.xlu0 %v993_v29, %s2637_s10 }
  0xf6   : > { %v1150_v38 = vpop.permute.xlu1 %1149 }
  0xf7   : > { %v1148_v48 = vpop.permute.xlu0 %1147 }
  0xf8   : > { %1069 = vrot.lane.b32.xlu1 %v993_v29, %s2632_s29  ;;  %v1399_v16 = vsel %vm1385_vm10, %v1366_v59, %v1148_v48 }
  0xf9   : > { %1067 = vrot.lane.b32.xlu0 %v990_v50, %s2632_s29  ;;  %v1271_v50 = vsel %vm1257_vm6, %v2831_v37, %v1024_v11 }
  0xfa   : > { %v1182_v22 = vpop.permute.xlu1 %1181  ;;  %v1302_v60 = vsel %vm1288_vm7, %v1271_v50, %v1054_v17 }
  0xfb   : > { %v1180_v23 = vpop.permute.xlu0 %1179  ;;  %v1335_v37 = vsel %vm1319_vm8, %v1302_v60, %v1086_v21 }
  0xfc   : > { %1101 = vrot.lane.b32.xlu1 %v720_v28, %s2630_s27  ;;  %v1432_v61 = vsel %vm1418_vm11, %v1399_v16, %v1180_v23  ;;  %v1368_v8 = vsel %vm1352_vm9, %v1335_v37, %v1118_v34 }
  0xfd   : > { %1099 = vrot.lane.b32.xlu0 %v3111_v30, %s2630_s27  ;;  %v1401_v9 = vsel %vm1385_vm10, %v1368_v8, %v1150_v38 }
  0xfe   : > { %v1212_v57 = vpop.permute.xlu1 %1211  ;;  %v1434_v10 = vsel %vm1418_vm11, %v1401_v9, %v1182_v22 }
  0xff   : > { %v1210_v41 = vpop.permute.xlu0 %1209  ;;  %v1466_v11 = vsel %vm1450_vm12, %v1434_v10, %v1212_v57 }
 0x100   : > { %1133 = vrot.lane.b32.xlu1 %v1005_v44, %s2635_s8  ;;  %v1464_v55 = vsel %vm1450_vm12, %v1432_v61, %v1210_v41 }
 0x101   : > { %1131 = vrot.lane.b32.xlu0 %v917_v7, %s2635_s8  ;;  %s265_s8 = scalar_lea.vmem %s3751_s5, %s3756_s22 }
 0x102   : > { %v1026_v3 = vpop.permute.xlu1 %1025 }
 0x103   : > { %v1240_v46 = vpop.permute.xlu0 %1239  ;;  %v1273_v21 = vsel %vm1257_vm6, %v2862_v6, %v1026_v3 }
 0x104   : > { %v1496_v52 = vsel %vm1482_vm13, %v1464_v55, %v1240_v46  ;;  %1165 = vrot.lane.b32.xlu1 %v1010_v58, %s2633_s30 }
 0x105   : > { %1163 = vrot.lane.b32.xlu0 %v993_v29, %s2633_s30  ;;  %2521 = vmatprep.mubr.msk.bf16.mxu0 %vm1557_vm14, %v1496_v52  ;;  %s3293_s30 = scalar_lea.vmem %s3750_s4, %s2444_s23 }
 0x106   : > { %v1028_v63 = vpop.permute.xlu1 %1027 }
 0x107   : > { %v1242_v12 = vpop.permute.xlu0 %1241 }
 0x108   : > { %v1498_v4 = vsel %vm1482_vm13, %v1466_v11, %v1242_v12  ;;  %1225 = vrot.lane.b32.xlu1 %v1005_v44, %s2636_s9 }
 0x109   : > { %1195 = vrot.lane.b32.xlu0 %v720_v28, %s2631_s28  ;;  %2522 = vmatmul.mubr.msk.bf16.gmra.mxu0 %vm1557_vm14, %v1498_v4  ;;  %v1275_v28 = vsel %vm1257_vm6, %v2877_v27, %v1028_v63 }
 0x10a   : > { %v1058_v0 = vpop.permute.xlu1 %1057 }
 0x10b   : > { %v1056_v13 = vpop.permute.xlu0 %1055  ;;  %v1306_v29 = vsel %vm1288_vm7, %v1275_v28, %v1058_v0 }
 0x10c   : > { %v1304_v25 = vsel %vm1288_vm7, %v1273_v21, %v1056_v13 }
 0x10d   : > { %1255 = vrot.lane.b32.xlu0 %v1010_v58, %s2637_s10 }
 0x10e   : > { %v1090_v56 = vpop.permute.xlu1 %1089 }
 0x10f   : > { %v1088_v14 = vpop.permute.xlu0 %1087  ;;  %v1339_v6 = vsel %vm1319_vm8, %v1306_v29, %v1090_v56 }
 0x110   : > { %v1337_v33 = vsel %vm1319_vm8, %v1304_v25, %v1088_v14 }
 0x112   : > { %v1122_v7 = vpop.permute.xlu1 %1121 }
 0x113   : > { %v1120_v17 = vpop.permute.xlu0 %1119  ;;  %v1372_v47 = vsel %vm1352_vm9, %v1339_v6, %v1122_v7 }
 0x114   : > { %v1370_v19 = vsel %vm1352_vm9, %v1337_v33, %v1120_v17 }
 0x116   : > { %v1154_v5 = vpop.permute.xlu1 %1153 }
 0x117   : > { %v1152_v20 = vpop.permute.xlu0 %1151  ;;  %v1405_v38 = vsel %vm1385_vm10, %v1372_v47, %v1154_v5 }
 0x118   : > { %v1403_v34 = vsel %vm1385_vm10, %v1370_v19, %v1152_v20 }
 0x11a   : > { %v1186_v39 = vpop.permute.xlu1 %1185 }
 0x11b   : > { %v1184_v40 = vpop.permute.xlu0 %1183  ;;  %v1438_v48 = vsel %vm1418_vm11, %v1405_v38, %v1186_v39 }
 0x11c   : > { %v1436_v36 = vsel %vm1418_vm11, %v1403_v34, %v1184_v40 }
 0x11e   : > { %v1216_v26 = vpop.permute.xlu1 %1215 }
 0x11f   : > { %v1214_v18 = vpop.permute.xlu0 %1213  ;;  %v1470_v49 = vsel %vm1450_vm12, %v1438_v48, %v1216_v26 }
 0x120   : > { %v1468_v42 = vsel %vm1450_vm12, %v1436_v36, %v1214_v18 }
 0x122   : > { %v1030_v15 = vpop.permute.xlu1 %1029 }
 0x123   : > { %v1244_v43 = vpop.permute.xlu0 %1243  ;;  %v1277_v16 = vsel %vm1257_vm6, %v2915_v1, %v1030_v15 }
 0x124   : > { %v1500_v27 = vsel %vm1482_vm13, %v1468_v42, %v1244_v43 }
 0x125   : > { %2525 = vmatprep.mubr.msk.bf16.mxu1 %vm1557_vm14, %v1500_v27 }
 0x126   : > { %v1032_v35 = vpop.permute.xlu1 %1031 }
 0x127   : > { %v1246_v22 = vpop.permute.xlu0 %1245  ;;  %v1279_v61 = vsel %vm1257_vm6, %v2939_v31, %v1032_v35 }
 0x128   : > { %v1502_v23 = vsel %vm1482_vm13, %v1470_v49, %v1246_v22 }
 0x129   : > { %2526 = vmatmul.mubr.msk.bf16.vlgmr.msra.gmra.mxu1 %vm1557_vm14, %v1502_v23 }
 0x12a   : > { %v1062_v24 = vpop.permute.xlu1 %1061 }
 0x12b   : > { %v1060_v44 = vpop.permute.xlu0 %1059  ;;  %v1310_v8 = vsel %vm1288_vm7, %v1279_v61, %v1062_v24 }
 0x12c   : > { %v1308_v58 = vsel %vm1288_vm7, %v1277_v16, %v1060_v44 }
 0x12e   : > { %v1094_v51 = vpop.permute.xlu1 %1093 }
 0x12f   : > { %v1092_v53 = vpop.permute.xlu0 %1091  ;;  %v1343_v1 = vsel %vm1319_vm8, %v1310_v8, %v1094_v51  ;;  %v3277_v51 = vld [vmem:[%s3748_s2] ss:$0 sm:$0xff] }
 0x130   : > { %v1341_v3 = vsel %vm1319_vm8, %v1308_v58, %v1092_v53 }
 0x132   : > { %v1126_v54 = vpop.permute.xlu1 %1125 }
 0x133   : > { %v1124_v57 = vpop.permute.xlu0 %1123  ;;  %v1376_v11 = vsel %vm1352_vm9, %v1343_v1, %v1126_v54  ;;  %v3283_v54 = vld [vmem:[%s3749_s3] ss:$0 sm:$0xff] }
 0x134   : > { %v1374_v55 = vsel %vm1352_vm9, %v1341_v3, %v1124_v57 }
 0x136   : > { %v1158_v50 = vpop.permute.xlu1 %1157 }
 0x137   : > { %v1156_v45 = vpop.permute.xlu0 %1155  ;;  %v1409_v12 = vsel %vm1385_vm10, %v1376_v11, %v1158_v50 }
 0x138   : > { %v1407_v46 = vsel %vm1385_vm10, %v1374_v55, %v1156_v45 }
 0x13a   : > { %v1190_v41 = vpop.permute.xlu1 %1189 }
 0x13b   : > { %v1188_v59 = vpop.permute.xlu0 %1187  ;;  %v1442_v4 = vsel %vm1418_vm11, %v1409_v12, %v1190_v41 }
 0x13c   : > { %v1440_v52 = vsel %vm1418_vm11, %v1407_v46, %v1188_v59 }
 0x13e   : > { %v1220_v60 = vpop.permute.xlu1 %1219 }
 0x13f   : > { %v1218_v37 = vpop.permute.xlu0 %1217  ;;  %v1474_v13 = vsel %vm1450_vm12, %v1442_v4, %v1220_v60 }
 0x140   : > { %v1472_v10 = vsel %vm1450_vm12, %v1440_v52, %v1218_v37 }
 0x142   : > { %v1034_v9 = vpop.permute.xlu1 %1033 }
 0x143   : > { %v1248_v63 = vpop.permute.xlu0 %1247  ;;  %v1281_v33 = vsel %vm1257_vm6, %v3008_v32, %v1034_v9 }
 0x144   : > { %v1504_v31 = vsel %vm1482_vm13, %v1472_v10, %v1248_v63 }
 0x145   : > { %2529 = vmatprep.mubr.msk.bf16.mxu1 %vm1557_vm14, %v1504_v31 }
 0x146   : > { %v1036_v0 = vpop.permute.xlu1 %1035 }
 0x147   : > { %v1250_v56 = vpop.permute.xlu0 %1249  ;;  %v1283_v34 = vsel %vm1257_vm6, %v3026_v62, %v1036_v0 }
 0x148   : > { %v1506_v14 = vsel %vm1482_vm13, %v1474_v13, %v1250_v56 }
 0x149   : > { %2530 = vmatmul.mubr.msk.bf16.gmra.mxu1 %vm1557_vm14, %v1506_v14 }
 0x14a   : > { %v1066_v7 = vpop.permute.xlu1 %1065 }
 0x14b   : > { %v1064_v17 = vpop.permute.xlu0 %1063  ;;  %v1314_v42 = vsel %vm1288_vm7, %v1283_v34, %v1066_v7 }
 0x14c   : > { %v1312_v18 = vsel %vm1288_vm7, %v1281_v33, %v1064_v17 }
 0x14e   : > { %v1098_v5 = vpop.permute.xlu1 %1097 }
 0x14f   : > { %v1096_v20 = vpop.permute.xlu0 %1095  ;;  %v1347_v32 = vsel %vm1319_vm8, %v1314_v42, %v1098_v5 }
 0x150   : > { %v1345_v29 = vsel %vm1319_vm8, %v1312_v18, %v1096_v20 }
 0x152   : > { %v1130_v39 = vpop.permute.xlu1 %1129 }
 0x153   : > { %v1128_v40 = vpop.permute.xlu0 %1127  ;;  %v1380_v48 = vsel %vm1352_vm9, %v1347_v32, %v1130_v39 }
 0x154   : > { %v1378_v15 = vsel %vm1352_vm9, %v1345_v29, %v1128_v40 }
 0x156   : > { %v1162_v21 = vpop.permute.xlu1 %1161 }
 0x157   : > { %v1160_v25 = vpop.permute.xlu0 %1159  ;;  %v1413_v35 = vsel %vm1385_vm10, %v1380_v48, %v1162_v21 }
 0x158   : > { %v1411_v6 = vsel %vm1385_vm10, %v1378_v15, %v1160_v25 }
 0x15a   : > { %v3246_v26 = vpop.permute.xlu1 %1193 }
 0x15b   : > { %v1192_v28 = vpop.permute.xlu0 %1191  ;;  %v1446_v49 = vsel %vm1418_vm11, %v1413_v35, %v3246_v26 }
 0x15c   : > { %v1444_v43 = vsel %vm1418_vm11, %v1411_v6, %v1192_v28 }
 0x15e   : > { %v3251_v19 = vpop.permute.xlu1 %1223 }
 0x15f   : > { %v1222_v36 = vpop.permute.xlu0 %1221  ;;  %v1478_v23 = vsel %vm1450_vm12, %v1446_v49, %v3251_v19 }
 0x160   : > { %v1476_v27 = vsel %vm1450_vm12, %v1444_v43, %v1222_v36 }
 0x162   : > { %v1038_v47 = vpop.permute.xlu1 %1037 }
 0x163   : > { %v1252_v38 = vpop.permute.xlu0 %1251  ;;  %v1285_v17 = vsel %vm1257_vm6, %v3089_v2, %v1038_v47 }
 0x164   : > { %v1508_v62 = vsel %vm1482_vm13, %v1476_v27, %v1252_v38 }
 0x165   : > { %2533 = vmatprep.mubr.msk.bf16.mxu1 %vm1557_vm14, %v1508_v62 }
 0x166   : > { %v1040_v22 = vpop.permute.xlu1 %1039 }
 0x167   : > { %v3270_v24 = vpop.permute.xlu0 %1253  ;;  %v1287_v10 = vsel %vm1257_vm6, %v3111_v30, %v1040_v22 }
 0x168   : > { %v1510_v44 = vsel %vm1482_vm13, %v1478_v23, %v3270_v24 }
 0x169   : > { %2534 = vmatmul.mubr.msk.bf16.gmra.mxu1 %vm1557_vm14, %v1510_v44 }
 0x16a   : > { %v2511_v53 = vpop.f32.mrf.mxu0  ;;  %v1070_v57 = vpop.permute.xlu1 %1069 }
 0x16b   : > { %v1637_v50 = vadd.f32 %v2511_v53, %v3277_v51  ;;  %v1068_v45 = vpop.permute.xlu0 %1067  ;;  %v1318_v30 = vsel %vm1288_vm7, %v1287_v10, %v1070_v57 }
 0x16c   : > { %v1628_v41 = vpop.f32.mrf.mxu0  ;;  %v1316_v39 = vsel %vm1288_vm7, %v1285_v17, %v1068_v45 }
 0x16d   : > { %vm1758_vm15 = vcmp.gt.f32.partialorder %v1637_v50, 0.0  ;;  %v1796_v59 = vmul.f32 %v3283_v54, %v1637_v50  ;;  %v1629_v16 = vadd.f32 %v3277_v51, %v1628_v41 }
 0x16e   : > { %v2512_v58 = vpop.f32.mrf.mxu0  ;;  %v1102_v60 = vpop.permute.xlu1 %1101 }
 0x16f   : > { %v3295_v61 = vsel %vm1758_vm15, %v1637_v50, %v1796_v59  ;;  %vm1756_vm1 = vcmp.gt.f32.partialorder %v1629_v16, 0.0  ;;  %v1794_v3 = vmul.f32 %v3283_v54, %v1629_v16  ;;  %v1640_v37 = vadd.f32 %v2512_v58, %v3277_v51  ;;  %v1100_v55 = vpop.permute.xlu0 %1099 }
 0x170   : > { %v2448_v46 = vpack.c.bf16 %v3295_v61, %v3295_v61  ;;  %v1631_v8 = vpop.f32.mrf.mxu0  ;;  %v1351_v56 = vsel %vm1319_vm8, %v1318_v30, %v1102_v60  ;;  %v1349_v21 = vsel %vm1319_vm8, %v1316_v39, %v1100_v55 }
 0x171   : > { %v3301_v52 = vsel %vm1756_vm1, %v1629_v16, %v1794_v3  ;;  %vm1759_vm2 = vcmp.gt.f32.partialorder %v1640_v37, 0.0  ;;  %v1797_v9 = vmul.f32 %v3283_v54, %v1640_v37  ;;  %v1632_v1 = vadd.f32 %v3277_v51, %v1631_v8 }
 0x172   : > { %1989 = vst.msk [vmem:[%s3293_s30 + $0x8] sm:$0xf] %vm1986_vm0, %v2448_v46  ;;  %v2446_v63 = vpack.c.bf16 %v3301_v52, %v3301_v52  ;;  %v1134_v11 = vpop.permute.xlu1 %1133 }
 0x173   : > { %v3311_v31 = vsel %vm1759_vm2, %v1640_v37, %v1797_v9  ;;  %vm1757_vm3 = vcmp.gt.f32.partialorder %v1632_v1, 0.0  ;;  %v1795_v12 = vmul.f32 %v3283_v54, %v1632_v1  ;;  %v1132_v4 = vpop.permute.xlu0 %1131  ;;  %v1384_v5 = vsel %vm1352_vm9, %v1351_v56, %v1134_v11 }
 0x174   : > { %1987 = vst.msk [vmem:[%s3293_s30] sm:$0xf] %vm1986_vm0, %v2446_v63  ;;  %v2449_v0 = vpack.c.bf16 %v3311_v31, %v3311_v31  ;;  %v1382_v25 = vsel %vm1352_vm9, %v1349_v21, %v1132_v4 }
 0x175   : > { %v3319_v13 = vsel %vm1757_vm3, %v1632_v1, %v1795_v12 }
 0x176   : > { %1990 = vst.msk [vmem:[%s3293_s30 + $0xc] sm:$0xf] %vm1986_vm0, %v2449_v0  ;;  %v2447_v14 = vpack.c.bf16 %v3319_v13, %v3319_v13  ;;  %v1166_v7 = vpop.permute.xlu1 %1165 }
 0x177   : > { %v1164_v20 = vpop.permute.xlu0 %1163  ;;  %v1417_v40 = vsel %vm1385_vm10, %v1384_v5, %v1166_v7 }
 0x178   : > { %1988 = vst.msk [vmem:[%s3293_s30 + $0x4] sm:$0xf] %vm1986_vm0, %v2447_v14  ;;  %v1449_v28 = vsel %vm1418_vm11, %v1417_v40, %v3246_v26  ;;  %v1415_v33 = vsel %vm1385_vm10, %v1382_v25, %v1164_v20 }
 0x179   : > { %v1481_v29 = vsel %vm1450_vm12, %v1449_v28, %v3251_v19 }
 0x17a   : > { %v1226_v34 = vpop.permute.xlu1 %1225  ;;  %v1513_v42 = vsel %vm1482_vm13, %v1481_v29, %v3270_v24 }
 0x17b   : > { %v1196_v18 = vpop.permute.xlu0 %1195 }
 0x17c   : > { %v1448_v2 = vsel %vm1418_vm11, %v1415_v33, %v1196_v18 }
 0x17d   : > { %v1480_v36 = vsel %vm1450_vm12, %v1448_v2, %v1226_v34 }
 0x17f   : > { %v1256_v15 = vpop.permute.xlu0 %1255 }
 0x180   : > { %v1512_v6 = vsel %vm1482_vm13, %v1480_v36, %v1256_v15 }
 0x181   : > { %2537 = vmatprep.mubr.msk.bf16.mxu1 %vm1557_vm14, %v1512_v6 }
 0x182   : > { %2538 = vmatmul.mubr.msk.bf16.gmra.mxu1 %vm1557_vm14, %v1513_v42 }
 0x189   : > { %v2515_v26 = vpop.f32.mrf.mxu0 }
 0x18a   : > { %v1653_v43 = vadd.f32 %v2515_v26, %v3277_v51 }
 0x18b   : > { %v1644_v47 = vpop.f32.mrf.mxu0 }
 0x18c   : > { %vm1762_vm4 = vcmp.gt.f32.partialorder %v1653_v43, 0.0  ;;  %v1800_v19 = vmul.f32 %v3283_v54, %v1653_v43  ;;  %v1645_v32 = vadd.f32 %v3277_v51, %v1644_v47 }
 0x18d   : > { %v2516_v27 = vpop.f32.mrf.mxu0 }
 0x18e   : > { %v3350_v38 = vsel %vm1762_vm4, %v1653_v43, %v1800_v19  ;;  %vm1760_vm5 = vcmp.gt.f32.partialorder %v1645_v32, 0.0  ;;  %v1798_v48 = vmul.f32 %v3283_v54, %v1645_v32  ;;  %v1656_v62 = vadd.f32 %v2516_v27, %v3277_v51 }
 0x18f   : > { %v2452_v35 = vpack.c.bf16 %v3350_v38, %v3350_v38  ;;  %v1647_v49 = vpop.f32.mrf.mxu0 }
 0x190   : > { %v3356_v22 = vsel %vm1760_vm5, %v1645_v32, %v1798_v48  ;;  %vm1763_vm7 = vcmp.gt.f32.partialorder %v1656_v62, 0.0  ;;  %v1801_v23 = vmul.f32 %v3283_v54, %v1656_v62  ;;  %v1648_v24 = vadd.f32 %v3277_v51, %v1647_v49 }
 0x191   : > { %1993 = vst.msk [vmem:[%s3293_s30 + $0x18] sm:$0xf] %vm1986_vm0, %v2452_v35  ;;  %v2450_v44 = vpack.c.bf16 %v3356_v22, %v3356_v22 }
 0x192   : > { %v3364_v53 = vsel %vm1763_vm7, %v1656_v62, %v1801_v23  ;;  %vm1761_vm8 = vcmp.gt.f32.partialorder %v1648_v24, 0.0  ;;  %v1799_v57 = vmul.f32 %v3283_v54, %v1648_v24 }
 0x193   : > { %1991 = vst.msk [vmem:[%s3293_s30 + $0x10] sm:$0xf] %vm1986_vm0, %v2450_v44  ;;  %v2453_v50 = vpack.c.bf16 %v3364_v53, %v3364_v53 }
 0x194   : > { %v3371_v45 = vsel %vm1761_vm8, %v1648_v24, %v1799_v57 }
 0x195   : > { %1994 = vst.msk [vmem:[%s3293_s30 + $0x1c] sm:$0xf] %vm1986_vm0, %v2453_v50  ;;  %v2451_v41 = vpack.c.bf16 %v3371_v45, %v3371_v45 }
 0x197   : > { %1992 = vst.msk [vmem:[%s3293_s30 + $0x14] sm:$0xf] %vm1986_vm0, %v2451_v41 }
 0x1a9   : > { %v2519_v59 = vpop.f32.mrf.mxu0 }
 0x1aa   : > { %v1669_v16 = vadd.f32 %v2519_v59, %v3277_v51 }
 0x1ab   : > { %v1660_v58 = vpop.f32.mrf.mxu0 }
 0x1ac   : > { %vm1766_vm9 = vcmp.gt.f32.partialorder %v1669_v16, 0.0  ;;  %v1804_v60 = vmul.f32 %v3283_v54, %v1669_v16  ;;  %v1661_v3 = vadd.f32 %v3277_v51, %v1660_v58 }
 0x1ad   : > { %v2520_v37 = vpop.f32.mrf.mxu0 }
 0x1ae   : > { %v3382_v55 = vsel %vm1766_vm9, %v1669_v16, %v1804_v60  ;;  %vm1764_vm10 = vcmp.gt.f32.partialorder %v1661_v3, 0.0  ;;  %v1802_v46 = vmul.f32 %v3283_v54, %v1661_v3  ;;  %v1672_v8 = vadd.f32 %v2520_v37, %v3277_v51 }
 0x1af   : > { %v2456_v9 = vpack.c.bf16 %v3382_v55, %v3382_v55  ;;  %v1663_v1 = vpop.f32.mrf.mxu0 }
 0x1b0   : > { %v3388_v10 = vsel %vm1764_vm10, %v1661_v3, %v1802_v46  ;;  %vm1767_vm11 = vcmp.gt.f32.partialorder %v1672_v8, 0.0  ;;  %v1805_v63 = vmul.f32 %v3283_v54, %v1672_v8  ;;  %v1664_v11 = vadd.f32 %v3277_v51, %v1663_v1 }
 0x1b1   : > { %1997 = vst.msk [vmem:[%s3293_s30 + $0x28] sm:$0xf] %vm1986_vm0, %v2456_v9  ;;  %v2454_v12 = vpack.c.bf16 %v3388_v10, %v3388_v10  ;;  %v2020_v46 = vsel %vm1257_vm6, %v3319_v13, 0.0  ;;  %v2022_v1 = vsel %vm1257_vm6, %v3295_v61, 0.0 }
 0x1b2   : > { %v3396_v4 = vsel %vm1767_vm11, %v1672_v8, %v1805_v63  ;;  %vm1765_vm12 = vcmp.gt.f32.partialorder %v1664_v11, 0.0  ;;  %v1803_v0 = vmul.f32 %v3283_v54, %v1664_v11  ;;  %v2019_v8 = vsel %vm1257_vm6, %v3301_v52, 0.0 }
 0x1b3   : > { %1995 = vst.msk [vmem:[%s3293_s30 + $0x20] sm:$0xf] %vm1986_vm0, %v2454_v12  ;;  %v2457_v30 = vpack.c.bf16 %v3396_v4, %v3396_v4  ;;  %v2021_v9 = vadd.f32 %v2020_v46, %v2019_v8  ;;  %v2026_v12 = vsel %vm1257_vm6, %v3356_v22, 0.0 }
 0x1b4   : > { %v3403_v56 = vsel %vm1765_vm12, %v1664_v11, %v1803_v0  ;;  %v2024_v11 = vsel %vm1257_vm6, %v3311_v31, 0.0 }
 0x1b5   : > { %1998 = vst.msk [vmem:[%s3293_s30 + $0x2c] sm:$0xf] %vm1986_vm0, %v2457_v30  ;;  %v2455_v14 = vpack.c.bf16 %v3403_v56, %v3403_v56  ;;  %v2023_v63 = vadd.f32 %v2022_v1, %v2021_v9  ;;  %v2028_v30 = vsel %vm1257_vm6, %v3371_v45, 0.0 }
 0x1b7   : > { %1996 = vst.msk [vmem:[%s3293_s30 + $0x24] sm:$0xf] %vm1986_vm0, %v2455_v14  ;;  %v2025_v0 = vadd.f32 %v2024_v11, %v2023_v63 }
 0x1b9   : > { %v2027_v14 = vadd.f32 %v2026_v12, %v2025_v0 }
 0x1c9   : > { %v2523_v7 = vpop.f32.mrf.mxu0 }
 0x1ca   : > { %v1685_v17 = vadd.f32 %v2523_v7, %v3277_v51  ;;  %v2029_v7 = vadd.f32 %v2028_v30, %v2027_v14 }
 0x1cb   : > { %v1676_v5 = vpop.f32.mrf.mxu0 }
 0x1cc   : > { %vm1770_vm13 = vcmp.gt.f32.partialorder %v1685_v17, 0.0  ;;  %v1808_v20 = vmul.f32 %v3283_v54, %v1685_v17  ;;  %v1677_v39 = vadd.f32 %v3277_v51, %v1676_v5 }
 0x1cd   : > { %v2524_v40 = vpop.f32.mrf.mxu0 }
 0x1ce   : > { %v3414_v21 = vsel %vm1770_vm13, %v1685_v17, %v1808_v20  ;;  %vm1768_vm14 = vcmp.gt.f32.partialorder %v1677_v39, 0.0  ;;  %v1806_v25 = vmul.f32 %v3283_v54, %v1677_v39  ;;  %v1688_v28 = vadd.f32 %v2524_v40, %v3277_v51 }
 0x1cf   : > { %v2460_v33 = vpack.c.bf16 %v3414_v21, %v3414_v21  ;;  %v1679_v18 = vpop.f32.mrf.mxu0  ;;  %v2030_v17 = vsel %vm1257_vm6, %v3350_v38, 0.0  ;;  %v2032_v40 = vsel %vm1257_vm6, %v3364_v53, 0.0  ;;  %v2046_v11 = vsel %vm1257_vm6, %v3414_v21, 0.0 }
 0x1d0   : > { %v3420_v2 = vsel %vm1768_vm14, %v1677_v39, %v1806_v25  ;;  %vm1771_vm15 = vcmp.gt.f32.partialorder %v1688_v28, 0.0  ;;  %v1809_v34 = vmul.f32 %v3283_v54, %v1688_v28  ;;  %v1680_v29 = vadd.f32 %v3277_v51, %v1679_v18 }
 0x1d1   : > { %2001 = vst.msk [vmem:[%s3293_s30 + $0x38] sm:$0xf] %vm1986_vm0, %v2460_v33  ;;  %v2458_v36 = vpack.c.bf16 %v3420_v2, %v3420_v2  ;;  %v2031_v5 = vadd.f32 %v2030_v17, %v2029_v7  ;;  %v2042_v46 = vsel %vm1257_vm6, %v3420_v2, 0.0 }
 0x1d2   : > { %v3428_v15 = vsel %vm1771_vm15, %v1688_v28, %v1809_v34  ;;  %vm1769_vm1 = vcmp.gt.f32.partialorder %v1680_v29, 0.0  ;;  %v1807_v6 = vmul.f32 %v3283_v54, %v1680_v29  ;;  %v2034_v28 = vsel %vm1257_vm6, %v3388_v10, 0.0 }
 0x1d3   : > { %1999 = vst.msk [vmem:[%s3293_s30 + $0x30] sm:$0xf] %vm1986_vm0, %v2458_v36  ;;  %v2461_v42 = vpack.c.bf16 %v3428_v15, %v3428_v15  ;;  %v2033_v34 = vadd.f32 %v2032_v40, %v2031_v5  ;;  %v2048_v0 = vsel %vm1257_vm6, %v3428_v15, 0.0 }
 0x1d4   : > { %v3435_v26 = vsel %vm1769_vm1, %v1680_v29, %v1807_v6  ;;  %v2036_v29 = vsel %vm1257_vm6, %v3403_v56, 0.0 }
 0x1d5   : > { %2002 = vst.msk [vmem:[%s3293_s30 + $0x3c] sm:$0xf] %vm1986_vm0, %v2461_v42  ;;  %v2459_v43 = vpack.c.bf16 %v3435_v26, %v3435_v26  ;;  %v2044_v9 = vsel %vm1257_vm6, %v3435_v26, 0.0 }
 0x1d7   : > { %2000 = vst.msk [vmem:[%s3293_s30 + $0x34] sm:$0xf] %vm1986_vm0, %v2459_v43 }
 0x1e9   : > { %v2527_v47 = vpop.f32.mrf.mxu1 }
 0x1ea   : > { %v1701_v19 = vadd.f32 %v2527_v47, %v3277_v51  ;;  %v2035_v47 = vadd.f32 %v2034_v28, %v2033_v34 }
 0x1eb   : > { %v1692_v32 = vpop.f32.mrf.mxu1 }
 0x1ec   : > { %vm1774_vm2 = vcmp.gt.f32.partialorder %v1701_v19, 0.0  ;;  %v1812_v27 = vmul.f32 %v3283_v54, %v1701_v19  ;;  %v1693_v48 = vadd.f32 %v3277_v51, %v1692_v32 }
 0x1ed   : > { %v2528_v62 = vpop.f32.mrf.mxu1 }
 0x1ee   : > { %v3446_v35 = vsel %vm1774_vm2, %v1701_v19, %v1812_v27  ;;  %vm1772_vm3 = vcmp.gt.f32.partialorder %v1693_v48, 0.0  ;;  %v1810_v49 = vmul.f32 %v3283_v54, %v1693_v48  ;;  %v1704_v23 = vadd.f32 %v2528_v62, %v3277_v51 }
 0x1ef   : > { %v2464_v24 = vpack.c.bf16 %v3446_v35, %v3446_v35  ;;  %v1695_v44 = vpop.f32.mrf.mxu1 }
 0x1f0   : > { %v3452_v57 = vsel %vm1772_vm3, %v1693_v48, %v1810_v49  ;;  %vm1775_vm4 = vcmp.gt.f32.partialorder %v1704_v23, 0.0  ;;  %v1813_v50 = vmul.f32 %v3283_v54, %v1704_v23  ;;  %v1696_v41 = vadd.f32 %v3277_v51, %v1695_v44 }
 0x1f1   : > { %2005 = vst.msk [vmem:[%s3293_s30 + $0x48] sm:$0xf] %vm1986_vm0, %v2464_v24  ;;  %v2462_v59 = vpack.c.bf16 %v3452_v57, %v3452_v57  ;;  %v2037_v49 = vadd.f32 %v2036_v29, %v2035_v47  ;;  %v2050_v30 = vsel %vm1257_vm6, %v3452_v57, 0.0 }
 0x1f2   : > { %v3460_v16 = vsel %vm1775_vm4, %v1704_v23, %v1813_v50  ;;  %vm1773_vm5 = vcmp.gt.f32.partialorder %v1696_v41, 0.0  ;;  %v1811_v58 = vmul.f32 %v3283_v54, %v1696_v41  ;;  %vm2121_vm4 = vcmask 57344  }
 0x1f3   : > { %2003 = vst.msk [vmem:[%s3293_s30 + $0x40] sm:$0xf] %vm1986_vm0, %v2462_v59  ;;  %v2465_v60 = vpack.c.bf16 %v3460_v16, %v3460_v16 }
 0x1f4   : > { %v3467_v3 = vsel %vm1773_vm5, %v1696_v41, %v1811_v58  ;;  %v2038_v41 = vsel %vm1257_vm6, %v3382_v55, 0.0 }
 0x1f5   : > { %2006 = vst.msk [vmem:[%s3293_s30 + $0x4c] sm:$0xf] %vm1986_vm0, %v2465_v60  ;;  %v2463_v37 = vpack.c.bf16 %v3467_v3, %v3467_v3  ;;  %v2039_v58 = vadd.f32 %v2038_v41, %v2037_v49  ;;  %v2052_v7 = vsel %vm1257_vm6, %v3467_v3, 0.0 }
 0x1f7   : > { %2004 = vst.msk [vmem:[%s3293_s30 + $0x44] sm:$0xf] %vm1986_vm0, %v2463_v37  ;;  %v2040_v37 = vsel %vm1257_vm6, %v3396_v4, 0.0 }
 0x1f8   : > { %v2041_v8 = vadd.f32 %v2040_v37, %v2039_v58 }
 0x1fa   : > { %v2043_v1 = vadd.f32 %v2042_v46, %v2041_v8 }
 0x1fc   : > { %v2045_v63 = vadd.f32 %v2044_v9, %v2043_v1 }
 0x1fe   : > { %v2047_v12 = vadd.f32 %v2046_v11, %v2045_v63 }
 0x200   : > { %v2049_v14 = vadd.f32 %v2048_v0, %v2047_v12 }
 0x202   : > { %v2051_v17 = vadd.f32 %v2050_v30, %v2049_v14 }
 0x204   : > { %v2053_v5 = vadd.f32 %v2052_v7, %v2051_v17 }
 0x209   : > { %v2531_v20 = vpop.f32.mrf.mxu1 }
 0x20a   : > { %v1717_v39 = vadd.f32 %v2531_v20, %v3277_v51 }
 0x20b   : > { %v1708_v25 = vpop.f32.mrf.mxu1 }
 0x20c   : > { %vm1778_vm7 = vcmp.gt.f32.partialorder %v1717_v39, 0.0  ;;  %v1816_v33 = vmul.f32 %v3283_v54, %v1717_v39  ;;  %v1709_v18 = vadd.f32 %v3277_v51, %v1708_v25  ;;  %v2054_v25 = vsel %vm1257_vm6, %v3446_v35, 0.0 }
 0x20d   : > { %v2532_v36 = vpop.f32.mrf.mxu1 }
 0x20e   : > { %v3498_v6 = vsel %vm1778_vm7, %v1717_v39, %v1816_v33  ;;  %vm1776_vm8 = vcmp.gt.f32.partialorder %v1709_v18, 0.0  ;;  %v1814_v42 = vmul.f32 %v3283_v54, %v1709_v18  ;;  %v1720_v43 = vadd.f32 %v2532_v36, %v3277_v51 }
 0x20f   : > { %v2468_v19 = vpack.c.bf16 %v3498_v6, %v3498_v6  ;;  %v1711_v32 = vpop.f32.mrf.mxu1  ;;  %v2062_v1 = vsel %vm1257_vm6, %v3498_v6, 0.0 }
 0x210   : > { %v3504_v27 = vsel %vm1776_vm8, %v1709_v18, %v1814_v42  ;;  %vm1779_vm9 = vcmp.gt.f32.partialorder %v1720_v43, 0.0  ;;  %v1817_v48 = vmul.f32 %v3283_v54, %v1720_v43  ;;  %v1712_v62 = vadd.f32 %v3277_v51, %v1711_v32 }
 0x211   : > { %2009 = vst.msk [vmem:[%s3293_s30 + $0x58] sm:$0xf] %vm1986_vm0, %v2468_v19  ;;  %v2466_v23 = vpack.c.bf16 %v3504_v27, %v3504_v27  ;;  %v2055_v18 = vadd.f32 %v2054_v25, %v2053_v5  ;;  %v2058_v49 = vsel %vm1257_vm6, %v3504_v27, 0.0 }
 0x212   : > { %v3512_v24 = vsel %vm1779_vm9, %v1720_v43, %v1817_v48  ;;  %vm1777_vm10 = vcmp.gt.f32.partialorder %v1712_v62, 0.0  ;;  %v1815_v44 = vmul.f32 %v3283_v54, %v1712_v62 }
 0x213   : > { %2007 = vst.msk [vmem:[%s3293_s30 + $0x50] sm:$0xf] %vm1986_vm0, %v2466_v23  ;;  %v2469_v50 = vpack.c.bf16 %v3512_v24, %v3512_v24  ;;  %v2064_v11 = vsel %vm1257_vm6, %v3512_v24, 0.0 }
 0x214   : > { %v3521_v59 = vsel %vm1777_vm10, %v1712_v62, %v1815_v44  ;;  %v2056_v62 = vsel %vm1257_vm6, %v3460_v16, 0.0 }
 0x215   : > { %2010 = vst.msk [vmem:[%s3293_s30 + $0x5c] sm:$0xf] %vm1986_vm0, %v2469_v50  ;;  %v2467_v60 = vpack.c.bf16 %v3521_v59, %v3521_v59  ;;  %v2057_v44 = vadd.f32 %v2056_v62, %v2055_v18  ;;  %v2060_v58 = vsel %vm1257_vm6, %v3521_v59, 0.0 }
 0x217   : > { %2008 = vst.msk [vmem:[%s3293_s30 + $0x54] sm:$0xf] %vm1986_vm0, %v2467_v60  ;;  %v2059_v37 = vadd.f32 %v2058_v49, %v2057_v44 }
 0x219   : > { %v2061_v9 = vadd.f32 %v2060_v58, %v2059_v37 }
 0x21b   : > { %v2063_v63 = vadd.f32 %v2062_v1, %v2061_v9 }
 0x21d   : > { %v2065_v0 = vadd.f32 %v2064_v11, %v2063_v63 }
 0x229   : > { %v2535_v20 = vpop.f32.mrf.mxu1 }
 0x22a   : > { %v1733_v39 = vadd.f32 %v2535_v20, %v3277_v51 }
 0x22b   : > { %v1724_v40 = vpop.f32.mrf.mxu1 }
 0x22c   : > { %vm1782_vm11 = vcmp.gt.f32.partialorder %v1733_v39, 0.0  ;;  %v1820_v28 = vmul.f32 %v3283_v54, %v1733_v39  ;;  %v1725_v33 = vadd.f32 %v3277_v51, %v1724_v40 }
 0x22d   : > { %v2536_v34 = vpop.f32.mrf.mxu1 }
 0x22e   : > { %v3548_v29 = vsel %vm1782_vm11, %v1733_v39, %v1820_v28  ;;  %vm1780_vm12 = vcmp.gt.f32.partialorder %v1725_v33, 0.0  ;;  %v1818_v36 = vmul.f32 %v3283_v54, %v1725_v33  ;;  %v1736_v42 = vadd.f32 %v2536_v34, %v3277_v51 }
 0x22f   : > { %v2472_v43 = vpack.c.bf16 %v3548_v29, %v3548_v29  ;;  %v1727_v47 = vpop.f32.mrf.mxu1  ;;  %v2070_v39 = vsel %vm1257_vm6, %v3548_v29, 0.0 }
 0x230   : > { %v3554_v19 = vsel %vm1780_vm12, %v1725_v33, %v1818_v36  ;;  %vm1783_vm13 = vcmp.gt.f32.partialorder %v1736_v42, 0.0  ;;  %v1821_v32 = vmul.f32 %v3283_v54, %v1736_v42  ;;  %v1728_v48 = vadd.f32 %v3277_v51, %v1727_v47 }
 0x231   : > { %2013 = vst.msk [vmem:[%s3293_s30 + $0x68] sm:$0xf] %vm1986_vm0, %v2472_v43  ;;  %v2470_v23 = vpack.c.bf16 %v3554_v19, %v3554_v19  ;;  %v2066_v12 = vsel %vm1257_vm6, %v3554_v19, 0.0 }
 0x232   : > { %v3566_v50 = vsel %vm1783_vm13, %v1736_v42, %v1821_v32  ;;  %vm1781_vm14 = vcmp.gt.f32.partialorder %v1728_v48, 0.0  ;;  %v1819_v41 = vmul.f32 %v3283_v54, %v1728_v48  ;;  %v2067_v14 = vadd.f32 %v2066_v12, %v2065_v0 }
 0x233   : > { %2011 = vst.msk [vmem:[%s3293_s30 + $0x60] sm:$0xf] %vm1986_vm0, %v2470_v23  ;;  %v2473_v60 = vpack.c.bf16 %v3566_v50, %v3566_v50  ;;  %v2072_v62 = vsel %vm1257_vm6, %v3566_v50, 0.0 }
 0x234   : > { %v3575_v46 = vsel %vm1781_vm14, %v1728_v48, %v1819_v41 }
 0x235   : > { %2014 = vst.msk [vmem:[%s3293_s30 + $0x6c] sm:$0xf] %vm1986_vm0, %v2473_v60  ;;  %v2471_v8 = vpack.c.bf16 %v3575_v46, %v3575_v46  ;;  %v2068_v30 = vsel %vm1257_vm6, %v3575_v46, 0.0 }
 0x236   : > { %v2069_v7 = vadd.f32 %v2068_v30, %v2067_v14 }
 0x237   : > { %2012 = vst.msk [vmem:[%s3293_s30 + $0x64] sm:$0xf] %vm1986_vm0, %v2471_v8 }
 0x238   : > { %v2071_v28 = vadd.f32 %v2070_v39, %v2069_v7 }
 0x23a   : > { %v2073_v44 = vadd.f32 %v2072_v62, %v2071_v28 }
 0x242   : > { %v2539_v17 = vpop.f32.mrf.mxu1 }
 0x243   : > { %v1749_v5 = vadd.f32 %v2539_v17, %v3277_v51 }
 0x244   : > { %v1740_v20 = vpop.f32.mrf.mxu1 }
 0x245   : > { %vm1786_vm15 = vcmp.gt.f32.partialorder %v1749_v5, 0.0  ;;  %v1824_v40 = vmul.f32 %v3283_v54, %v1749_v5  ;;  %v1741_v25 = vadd.f32 %v3277_v51, %v1740_v20 }
 0x246   : > { %v2540_v33 = vpop.f32.mrf.mxu1 }
 0x247   : > { %v3596_v18 = vsel %vm1786_vm15, %v1749_v5, %v1824_v40  ;;  %vm1784_vm1 = vcmp.gt.f32.partialorder %v1741_v25, 0.0  ;;  %v1822_v34 = vmul.f32 %v3283_v54, %v1741_v25  ;;  %v1752_v36 = vadd.f32 %v2540_v33, %v3277_v51 }
 0x248   : > { %v2476_v42 = vpack.c.bf16 %v3596_v18, %v3596_v18  ;;  %v1743_v43 = vpop.f32.mrf.mxu1 }
 0x249   : > { %v3602_v47 = vsel %vm1784_vm1, %v1741_v25, %v1822_v34  ;;  %vm1787_vm2 = vcmp.gt.f32.partialorder %v1752_v36, 0.0  ;;  %v1825_v32 = vmul.f32 %v3283_v54, %v1752_v36  ;;  %v1744_v48 = vadd.f32 %v3277_v51, %v1743_v43 }
 0x24a   : > { %2017 = vst.msk [vmem:[%s3293_s30 + $0x78] sm:$0xf] %vm1986_vm0, %v2476_v42  ;;  %v2474_v49 = vpack.c.bf16 %v3602_v47, %v3602_v47  ;;  %v2074_v23 = vsel %vm1257_vm6, %v3602_v47, 0.0 }
 0x24b   : > { %v3614_v41 = vsel %vm1787_vm2, %v1752_v36, %v1825_v32  ;;  %vm1785_vm3 = vcmp.gt.f32.partialorder %v1744_v48, 0.0  ;;  %v1823_v58 = vmul.f32 %v3283_v54, %v1744_v48  ;;  %v2075_v60 = vadd.f32 %v2074_v23, %v2073_v44 }
 0x24c   : > { %2015 = vst.msk [vmem:[%s3293_s30 + $0x70] sm:$0xf] %vm1986_vm0, %v2474_v49  ;;  %v2477_v51 = vpack.c.bf16 %v3614_v41, %v3614_v41  ;;  %v2078_v54 = vsel %vm1257_vm6, %v3596_v18, 0.0  ;;  %v2080_v11 = vsel %vm1257_vm6, %v3614_v41, 0.0 }
 0x24d   : > { %v3621_v37 = vsel %vm1785_vm3, %v1744_v48, %v1823_v58 }
 0x24e   : > { %2018 = vst.msk [vmem:[%s3293_s30 + $0x7c] sm:$0xf] %vm1986_vm0, %v2477_v51  ;;  %v2475_v8 = vpack.c.bf16 %v3621_v37, %v3621_v37  ;;  %v2076_v9 = vsel %vm1257_vm6, %v3621_v37, 0.0 }
 0x24f   : > { %v2077_v1 = vadd.f32 %v2076_v9, %v2075_v60 }
 0x250   : > { %2016 = vst.msk [vmem:[%s3293_s30 + $0x74] sm:$0xf] %vm1986_vm0, %v2475_v8 }
 0x251   : > { %v2079_v63 = vadd.f32 %v2078_v54, %v2077_v1 }
 0x253   : > { %v2081_v12 = vadd.f32 %v2080_v11, %v2079_v63 }
 0x255   : > { %v2082_v0 = vrot.slane %v2081_v12, 4 }
 0x257   : > { %v2083_v30 = vadd.f32 %v2082_v0, %v2081_v12 }
 0x259   : > { %v2084_v14 = vrot.slane %v2083_v30, 2 }
 0x25b   : > { %v2085_v7 = vadd.f32 %v2084_v14, %v2083_v30 }
 0x25d   : > { %v2086_v17 = vrot.slane %v2085_v7, 1 }
 0x25f   : > { %v2087_v5 = vadd.f32 %v2086_v17, %v2085_v7 }
 0x261   : > { %2122 = vst.msk [vmem:[%s265_s8] sm:$0x1] %vm2121_vm4, %v2087_v5  ;;  %v3640_v20 = vmul.f32 0.00390625, %v2087_v5 }
 0x263   : > { %v2089_v39 = vsub.f32 %v3301_v52, %v3640_v20  ;;  %v2090_v40 = vsub.f32 %v3319_v13, %v3640_v20  ;;  %v2091_v25 = vsub.f32 %v3295_v61, %v3640_v20  ;;  %v2092_v28 = vsub.f32 %v3311_v31, %v3640_v20 }
 0x264   : > { %v2093_v36 = vsub.f32 %v3356_v22, %v3640_v20  ;;  %v2094_v43 = vsub.f32 %v3371_v45, %v3640_v20  ;;  %v2095_v61 = vsub.f32 %v3350_v38, %v3640_v20  ;;  %v2096_v22 = vsub.f32 %v3364_v53, %v3640_v20 }
 0x265   : > { %v2123_v33 = vmul.f32 %v2089_v39, %v2089_v39  ;;  %v2124_v34 = vmul.f32 %v2090_v40, %v2090_v40  ;;  %v2125_v42 = vmul.f32 %v2091_v25, %v2091_v25  ;;  %v2126_v32 = vmul.f32 %v2092_v28, %v2092_v28 }
 0x266   : > { %v2127_v62 = vmul.f32 %v2093_v36, %v2093_v36  ;;  %v2128_v23 = vmul.f32 %v2094_v43, %v2094_v43  ;;  %v2097_v58 = vsub.f32 %v3388_v10, %v3640_v20  ;;  %v2129_v51 = vmul.f32 %v2095_v61, %v2095_v61 }
 0x267   : > { %v2155_v52 = vsel %vm1257_vm6, %v2123_v33, 0.0  ;;  %v2156_v13 = vsel %vm1257_vm6, %v2124_v34, 0.0  ;;  %v2158_v31 = vsel %vm1257_vm6, %v2125_v42, 0.0  ;;  %v2160_v44 = vsel %vm1257_vm6, %v2126_v32, 0.0 }
 0x268   : > { %v2157_v48 = vadd.f32 %v2156_v13, %v2155_v52  ;;  %v2162_v60 = vsel %vm1257_vm6, %v2127_v62, 0.0  ;;  %v2098_v38 = vsub.f32 %v3403_v56, %v3640_v20  ;;  %v2130_v9 = vmul.f32 %v2096_v22, %v2096_v22 }
 0x269   : > { %v2164_v1 = vsel %vm1257_vm6, %v2128_v23, 0.0  ;;  %v2099_v53 = vsub.f32 %v3382_v55, %v3640_v20  ;;  %v2131_v63 = vmul.f32 %v2097_v58, %v2097_v58  ;;  %v2166_v11 = vsel %vm1257_vm6, %v2129_v51, 0.0 }
 0x26a   : > { %v2159_v49 = vadd.f32 %v2158_v31, %v2157_v48  ;;  %v2100_v10 = vsub.f32 %v3396_v4, %v3640_v20  ;;  %v2132_v0 = vmul.f32 %v2098_v38, %v2098_v38  ;;  %v2168_v30 = vsel %vm1257_vm6, %v2130_v9, 0.0 }
 0x26b   : > { %v2101_v56 = vsub.f32 %v3420_v2, %v3640_v20  ;;  %v2133_v7 = vmul.f32 %v2099_v53, %v2099_v53  ;;  %v2170_v17 = vsel %vm1257_vm6, %v2131_v63, 0.0  ;;  %v2102_v55 = vsub.f32 %v3435_v26, %v3640_v20 }
 0x26c   : > { %v2161_v45 = vadd.f32 %v2160_v44, %v2159_v49  ;;  %v2134_v39 = vmul.f32 %v2100_v10, %v2100_v10  ;;  %v2172_v40 = vsel %vm1257_vm6, %v2132_v0, 0.0  ;;  %v2103_v4 = vsub.f32 %v3414_v21, %v3640_v20 }
 0x26d   : > { %v2135_v28 = vmul.f32 %v2101_v56, %v2101_v56  ;;  %v2174_v33 = vsel %vm1257_vm6, %v2133_v7, 0.0  ;;  %v2104_v2 = vsub.f32 %v3428_v15, %v3640_v20  ;;  %v2136_v36 = vmul.f32 %v2102_v55, %v2102_v55 }
 0x26e   : > { %v2163_v8 = vadd.f32 %v2162_v60, %v2161_v45  ;;  %v2176_v42 = vsel %vm1257_vm6, %v2134_v39, 0.0  ;;  %v2105_v26 = vsub.f32 %v3452_v57, %v3640_v20  ;;  %v2137_v32 = vmul.f32 %v2103_v4, %v2103_v4 }
 0x26f   : > { %v2178_v52 = vsel %vm1257_vm6, %v2135_v28, 0.0  ;;  %v2106_v21 = vsub.f32 %v3467_v3, %v3640_v20  ;;  %v2138_v48 = vmul.f32 %v2104_v2, %v2104_v2  ;;  %v2180_v61 = vsel %vm1257_vm6, %v2136_v36, 0.0 }
 0x270   : > { %v2165_v54 = vadd.f32 %v2164_v1, %v2163_v8  ;;  %v2107_v15 = vsub.f32 %v3446_v35, %v3640_v20  ;;  %v2139_v31 = vmul.f32 %v2105_v26, %v2105_v26  ;;  %v2182_v49 = vsel %vm1257_vm6, %v2137_v32, 0.0 }
 0x271   : > { %v2108_v57 = vsub.f32 %v3460_v16, %v3640_v20  ;;  %v2140_v23 = vmul.f32 %v2106_v21, %v2106_v21  ;;  %v2184_v44 = vsel %vm1257_vm6, %v2138_v48, 0.0  ;;  %v2109_v3 = vsub.f32 %v3504_v27, %v3640_v20 }
 0x272   : > { %v2167_v12 = vadd.f32 %v2166_v11, %v2165_v54  ;;  %v2141_v58 = vmul.f32 %v2107_v15, %v2107_v15  ;;  %v2186_v51 = vsel %vm1257_vm6, %v2139_v31, 0.0  ;;  %v2110_v35 = vsub.f32 %v3521_v59, %v3640_v20 }
 0x273   : > { %v2142_v8 = vmul.f32 %v2108_v57, %v2108_v57  ;;  %v2188_v38 = vsel %vm1257_vm6, %v2140_v23, 0.0  ;;  %v2111_v16 = vsub.f32 %v3498_v6, %v3640_v20  ;;  %v2143_v1 = vmul.f32 %v2109_v3, %v2109_v3 }
 0x274   : > { %v2169_v14 = vadd.f32 %v2168_v30, %v2167_v12  ;;  %v2190_v54 = vsel %vm1257_vm6, %v2141_v58, 0.0  ;;  %v2112_v27 = vsub.f32 %v3512_v24, %v3640_v20  ;;  %v2144_v63 = vmul.f32 %v2110_v35, %v2110_v35 }
 0x275   : > { %v2192_v11 = vsel %vm1257_vm6, %v2142_v8, 0.0  ;;  %v2113_v59 = vsub.f32 %v3554_v19, %v3640_v20  ;;  %v2145_v10 = vmul.f32 %v2111_v16, %v2111_v16  ;;  %v2194_v0 = vsel %vm1257_vm6, %v2143_v1, 0.0 }
 0x276   : > { %v2171_v5 = vadd.f32 %v2170_v17, %v2169_v14  ;;  %v2114_v6 = vsub.f32 %v3575_v46, %v3640_v20  ;;  %v2146_v14 = vmul.f32 %v2112_v27, %v2112_v27  ;;  %v2196_v56 = vsel %vm1257_vm6, %v2144_v63, 0.0 }
 0x277   : > { %v2115_v24 = vsub.f32 %v3548_v29, %v3640_v20  ;;  %v2147_v17 = vmul.f32 %v2113_v59, %v2113_v59  ;;  %v2116_v19 = vsub.f32 %v3566_v50, %v3640_v20  ;;  %v2117_v46 = vsub.f32 %v3602_v47, %v3640_v20 }
 0x278   : > { %v2173_v25 = vadd.f32 %v2172_v40, %v2171_v5  ;;  %v2198_v5 = vsel %vm1257_vm6, %v2145_v10, 0.0  ;;  %v2148_v39 = vmul.f32 %v2114_v6, %v2114_v6  ;;  %v2200_v40 = vsel %vm1257_vm6, %v2146_v14, 0.0 }
 0x279   : > { %v2149_v4 = vmul.f32 %v2115_v24, %v2115_v24  ;;  %v2202_v28 = vsel %vm1257_vm6, %v2147_v17, 0.0  ;;  %v2118_v29 = vsub.f32 %v3621_v37, %v3640_v20  ;;  %v2119_v50 = vsub.f32 %v3596_v18, %v3640_v20 }
 0x27a   : > { %v2175_v34 = vadd.f32 %v2174_v33, %v2173_v25  ;;  %v2204_v2 = vsel %vm1257_vm6, %v2148_v39, 0.0  ;;  %v2120_v47 = vsub.f32 %v3614_v41, %v3640_v20 }
 0x27b   : > { %v2152_v32 = vmul.f32 %v2118_v29, %v2118_v29  ;;  %v2153_v37 = vmul.f32 %v2119_v50, %v2119_v50 }
 0x27c   : > { %v2177_v43 = vadd.f32 %v2176_v42, %v2175_v34  ;;  %v2150_v34 = vmul.f32 %v2116_v19, %v2116_v19  ;;  %v2151_v42 = vmul.f32 %v2117_v46, %v2117_v46 }
 0x27d   : > { %v2214_v15 = vsel %vm1257_vm6, %v2153_v37, 0.0 }
 0x27e   : > { %v2179_v13 = vadd.f32 %v2178_v52, %v2177_v43  ;;  %v2206_v43 = vsel %vm1257_vm6, %v2149_v4, 0.0  ;;  %v2208_v52 = vsel %vm1257_vm6, %v2150_v34, 0.0  ;;  %v2210_v21 = vsel %vm1257_vm6, %v2151_v42, 0.0 }
 0x280   : > { %v2181_v62 = vadd.f32 %v2180_v61, %v2179_v13  ;;  %v2154_v61 = vmul.f32 %v2120_v47, %v2120_v47 }
 0x282   : > { %v2183_v22 = vadd.f32 %v2182_v49, %v2181_v62  ;;  %v2212_v62 = vsel %vm1257_vm6, %v2152_v32, 0.0  ;;  %v2216_v49 = vsel %vm1257_vm6, %v2154_v61, 0.0 }
 0x284   : > { %v2185_v45 = vadd.f32 %v2184_v44, %v2183_v22 }
 0x286   : > { %v2187_v60 = vadd.f32 %v2186_v51, %v2185_v45 }
 0x288   : > { %v2189_v9 = vadd.f32 %v2188_v38, %v2187_v60 }
 0x28a   : > { %v2191_v53 = vadd.f32 %v2190_v54, %v2189_v9 }
 0x28c   : > { %v2193_v12 = vadd.f32 %v2192_v11, %v2191_v53 }
 0x28e   : > { %v2195_v30 = vadd.f32 %v2194_v0, %v2193_v12 }
 0x290   : > { %v2197_v7 = vadd.f32 %v2196_v56, %v2195_v30 }
 0x292   : > { %v2199_v55 = vadd.f32 %v2198_v5, %v2197_v7 }
 0x294   : > { %v2201_v25 = vadd.f32 %v2200_v40, %v2199_v55 }
 0x296   : > { %v2203_v33 = vadd.f32 %v2202_v28, %v2201_v25 }
 0x298   : > { %v2205_v36 = vadd.f32 %v2204_v2, %v2203_v33 }
 0x29a   : > { %v2207_v26 = vadd.f32 %v2206_v43, %v2205_v36 }
 0x29c   : > { %v2209_v13 = vadd.f32 %v2208_v52, %v2207_v26 }
 0x29e   : > { %v2211_v48 = vadd.f32 %v2210_v21, %v2209_v13 }
 0x2a0   : > { %v2213_v18 = vadd.f32 %v2212_v62, %v2211_v48 }
 0x2a2   : > { %v2215_v31 = vadd.f32 %v2214_v15, %v2213_v18 }
 0x2a4   : > { %v2217_v22 = vadd.f32 %v2216_v49, %v2215_v31 }
 0x2a6   : > { %v2218_v41 = vrot.slane %v2217_v22, 4 }
 0x2a8   : > { %v2219_v20 = vadd.f32 %v2218_v41, %v2217_v22 }
 0x2aa   : > { %v2220_v57 = vrot.slane %v2219_v20, 2 }
 0x2ac   : > { %v2221_v23 = vadd.f32 %v2220_v57, %v2219_v20 }
 0x2ae   : > { %v2222_v44 = vrot.slane %v2221_v23, 1 }
 0x2b0   : > { %v2223_v45 = vadd.f32 %v2222_v44, %v2221_v23 }
 0x2b2   : > { %2224 = vst.msk [vmem:[%s268_s11] sm:$0x1] %vm2121_vm4, %v2223_v45 }
 0x2b3 PF: > { %s17_s21 = sadd.s32 1, %s2628_s21  }
 0x2b4   : > { %p14_p4 = scmp.ge.s32.totalorder %s17_s21, 4  }
 0x2b6   :  { %16 = sbr.rel (!%p14_p4) target bundleno = 1 (0x1), region = 90 }

</bundles_post_ra>
